<compile_context>
chip_gen: v6e
topology: v6e:2x2x1
jax: 0.10.0
libtpu: 0.0.40
codegen_flags: <defaults>
</compile_context>

<pallas_src>
import functools

import jax
import jax.numpy as jnp
from jax.experimental import pallas as pl
from jax.experimental.pallas import tpu as pltpu


# ---------------------------------------------------------------------------
# Kernel
# ---------------------------------------------------------------------------
def _roll_lanes(x, shift):
    """Circular rotate along the lane (last) axis via the XLU; shift >= 0."""
    size = x.shape[-1]
    s = shift % size          # pltpu.roll wants a non-negative shift
    if s == 0:
        return x
    return pltpu.roll(x, s, axis=x.ndim - 1)


def _conv3x3_circular(a, w_ref, b_ref, on_left, on_right, W, apply_relu):
    """One circular-'same' 3x3 conv on a flattened (Cin, H*W) activation.

    a:        (Cin, H*W) f32, element p = h*W + w
    w_ref:    (3, Cout, 3*Cin) with w_ref[ky][o, kx*Cin + ci] = weight[o, ci, ky, kx]
    b_ref:    (Cout, 1)
    on_left:  (1, H*W) bool, w == 0
    on_right: (1, H*W) bool, w == W-1
    returns   (Cout, H*W) f32
    """
    # Column (x) shifts with the per-row circular wrap fix, computed ONCE.
    # Row rolls by +-W commute with the per-row wrap (mask depends only on the
    # column index), so these two variants are reused for all three ky groups:
    # 4 rolls + 2 selects instead of 8 rolls + 6 selects.
    a_xm = jnp.where(on_left, _roll_lanes(a, -(W - 1)), _roll_lanes(a, 1))    # kx = 0
    a_xp = jnp.where(on_right, _roll_lanes(a, W - 1), _roll_lanes(a, -1))     # kx = 2
    cols = (a_xm, a, a_xp)                                                    # kx = 0,1,2

    # Three (3*Cin, H*W) tap groups (one per ky) -> three K=3*Cin MXU matmuls
    # accumulated in f32.  Avoids one (9*Cin, H*W) slab (72 vregs for the hidden
    # layers) that overflows the 64-vreg file and spills to VMEM.
    out = jnp.dot(w_ref[1], jnp.concatenate(cols, axis=0),
                  preferred_element_type=jnp.float32)                         # ky = 1
    for ky, rshift in ((0, W), (2, -W)):                                      # dy = -1, +1
        group = jnp.concatenate([_roll_lanes(c, rshift) for c in cols], axis=0)
        out = out + jnp.dot(w_ref[ky], group,
                            preferred_element_type=jnp.float32)

    out = out + b_ref[...]                                                    # lane-broadcast bias
    if apply_relu:
        out = jnp.maximum(out, 0.0)
    return out


def _fused_cnn_kernel(x_ref, *refs, W, relu_flags):
    """Whole SimpleCNN forward for the images in this block.

    x_ref: (NB, Cin0, H*W)
    refs:  (w_0, b_0, w_1, b_1, ..., w_{L-1}, b_{L-1}, o_ref)
    """
    o_ref = refs[-1]
    hw = x_ref.shape[-1]

    # Column-id / wrap masks generated in-kernel: one iota + one AND/mod,
    # no extra operand / BlockSpec / DMA per grid step.
    col = jax.lax.broadcasted_iota(jnp.int32, (1, hw), 1)
    col = (col & (W - 1)) if (W & (W - 1)) == 0 else (col % W)
    on_left = col == 0
    on_right = col == (W - 1)

    for n in range(x_ref.shape[0]):          # static images-per-block, unrolled
        a = x_ref[n].astype(jnp.float32)     # (Cin0, H*W)
        for layer, relu in enumerate(relu_flags):
            a = _conv3x3_circular(a, refs[2 * layer], refs[2 * layer + 1],
                                  on_left, on_right, W, relu)
        o_ref[n] = a.astype(o_ref.dtype)


# ---------------------------------------------------------------------------
# Wrapper
# ---------------------------------------------------------------------------
def simple_cnn_forward(x_nchw, kernel_params, *, images_per_block=None):
    """x_nchw: (N, C0, H, W); kernel_params: [(w3 (3,Cout,3*Cin), b (Cout,1), relu)]."""
    N, c0, H, W = x_nchw.shape
    P = H * W
    c_last = kernel_params[-1][0].shape[1]

    x_flat = x_nchw.reshape(N, c0, P)        # NCHW -> (N, C, H*W): free reshape

    if images_per_block is None:
        kind = jax.devices()[0].device_kind.lower()
        # v7x has 2 TensorCores per chip -> keep one image per grid step so the
        # batch axis can be sharded across cores.  Single-TC v5e/v6e: collapse
        # the grid to one step (weights/masks staged once, no ~0.35us/step
        # overhead on a few-us kernel).
        images_per_block = 1 if "v7" in kind else N
    nb = max(1, min(images_per_block, N))
    assert N % nb == 0, (N, nb)
    n_blocks = N // nb

    in_specs = [pl.BlockSpec((nb, c0, P), lambda n: (n, 0, 0))]
    operands = [x_flat]
    relu_flags = []
    for w3, b2, relu in kernel_params:
        in_specs.append(pl.BlockSpec(w3.shape, lambda n: (0, 0, 0)))
        in_specs.append(pl.BlockSpec(b2.shape, lambda n: (0, 0)))
        operands += [w3, b2]
        relu_flags.append(bool(relu))

    kernel = functools.partial(_fused_cnn_kernel, W=W,
                               relu_flags=tuple(relu_flags))

    # NOTE: whole image per block (H*W=256, C<=32 -> well under 1 MiB live
    # VMEM).  For much larger H*W / channels this needs H-tiling with row-halo
    # BlockSpecs and an explicit vmem_limit_bytes (re-derive against 64 MiB/TC
    # on v7x).
    def run(semantics):
        return pl.pallas_call(
            kernel,
            out_shape=jax.ShapeDtypeStruct((N, c_last, P), x_nchw.dtype),
            grid_spec=pltpu.PrefetchScalarGridSpec(
                num_scalar_prefetch=0,
                grid=(n_blocks,),
                in_specs=in_specs,
                out_specs=pl.BlockSpec((nb, c_last, P), lambda n: (n, 0, 0)),
            ),
            compiler_params=pltpu.CompilerParams(
                dimension_semantics=semantics),
        )(*operands)

    if n_blocks > 1:
        # Only core_parallel actually shards a grid axis across TensorCores;
        # fall back to plain "parallel" if this chip/jax build rejects it.
        try:
            out_flat = run((pltpu.CORE_PARALLEL,))
        except Exception:
            out_flat = run((pltpu.PARALLEL,))
    else:
        out_flat = run((pltpu.ARBITRARY,))

    return out_flat.reshape(N, c_last, H, W)  # (N, C, H*W) -> NCHW: free reshape


# ---------------------------------------------------------------------------
# Parameters (PyTorch-Conv2d-style init) and plain-XLA reference
# ---------------------------------------------------------------------------
def init_conv_params(key, cin, cout, k=3, dtype=jnp.float32):
    """PyTorch Conv2d default init (uniform +-1/sqrt(fan_in)), OIHW layout."""
    kw_key, kb_key = jax.random.split(key)
    bound = 1.0 / float(cin * k * k) ** 0.5
    w_oihw = jax.random.uniform(kw_key, (cout, cin, k, k), dtype, -bound, bound)
    b = jax.random.uniform(kb_key, (cout,), dtype, -bound, bound)
    return w_oihw, b


def build_simple_cnn_params(key, input_size, lookback, hidden_layers,
                            hidden_channels):
    """[(w_oihw, bias, apply_relu)] matching SimpleCNN's nn.Sequential."""
    params = []
    keys = jax.random.split(key, hidden_layers + 2)
    w, b = init_conv_params(keys[0], lookback * input_size, hidden_channels)
    params.append((w, b, True))
    for i in range(hidden_layers):
        w, b = init_conv_params(keys[1 + i], hidden_channels, hidden_channels)
        params.append((w, b, True))
    w, b = init_conv_params(keys[-1], hidden_channels, input_size)
    params.append((w, b, False))
    return params


def prepare_kernel_params(params):
    """OIHW (Cout,Cin,3,3) -> (3, Cout, 3*Cin) grouped by ky, column order
    (kx, ci) inside each group; bias -> (Cout, 1).  One-time wrapper-side prep."""
    prepared = []
    for w_oihw, b, relu in params:
        cout, cin, kh, kw = w_oihw.shape
        w3 = jnp.transpose(w_oihw, (2, 0, 3, 1)).reshape(kh, cout, kw * cin)
        prepared.append((w3, b.reshape(cout, 1), relu))
    return prepared


def reference_forward(x_nchw, params):
    """Plain-XLA reference: circular 'same' 3x3 convs + ReLU (cross-correlation)."""
    y = x_nchw
    for w_oihw, b, relu in params:
        y_pad = jnp.pad(y, ((0, 0), (0, 0), (1, 1), (1, 1)), mode="wrap")
        y = jax.lax.conv_general_dilated(
            y_pad, w_oihw, window_strides=(1, 1), padding="VALID",
            dimension_numbers=("NCHW", "OIHW", "NCHW"),
            precision=jax.lax.Precision.HIGHEST)
        y = y + b[None, :, None, None]
        if relu:
            y = jnp.maximum(y, 0.0)
    return y


# ---------------------------------------------------------------------------
if __name__ == "__main__":
    input_size = 4
    lookback = 2
    hidden_layers = 2
    hidden_channels = 32
    N, H, W = 2, 16, 16

    key = jax.random.PRNGKey(0)
    k_x, k_p = jax.random.split(key)

    x = jax.random.normal(k_x, (N, lookback * input_size, H, W), jnp.float32)
    params = build_simple_cnn_params(k_p, input_size, lookback,
                                     hidden_layers, hidden_channels)
    kparams = prepare_kernel_params(params)

    out = simple_cnn_forward(x, kparams)
    out = jax.block_until_ready(out)
    assert out.shape == (N, input_size, H, W), out.shape

    # Validate forward-pass semantics against a plain-XLA reference.
    ref = jax.block_until_ready(reference_forward(x, params))
    max_err = float(jnp.max(jnp.abs(out - ref)))
    assert max_err < 5e-3, f"max abs error vs reference: {max_err}"

    print("KERNEL_OK")
</pallas_src>

<mosaic_0001>
module attributes {stable_mosaic.version = 11 : i64} {
  func.func @_fused_cnn_kernel(%arg0: i32, %arg1: memref<2x8x256xf32, #tpu.memory_space<vmem>>, %arg2: memref<3x32x24xf32, #tpu.memory_space<vmem>>, %arg3: memref<32x1xf32, #tpu.memory_space<vmem>>, %arg4: memref<3x32x96xf32, #tpu.memory_space<vmem>>, %arg5: memref<32x1xf32, #tpu.memory_space<vmem>>, %arg6: memref<3x32x96xf32, #tpu.memory_space<vmem>>, %arg7: memref<32x1xf32, #tpu.memory_space<vmem>>, %arg8: memref<3x4x96xf32, #tpu.memory_space<vmem>>, %arg9: memref<4x1xf32, #tpu.memory_space<vmem>>, %arg10: memref<2x4x256xf32, #tpu.memory_space<vmem>>) attributes {dimension_semantics = [#tpu.dimension_semantics<arbitrary>], iteration_bounds = array<i64: 1>, scalar_prefetch = 0 : i64, scratch_operands = 0 : i64, tpu.core_type = #tpu.core_type<tc>, window_params = [{transform_indices = @transform_0, window_bounds = array<i64: 2, 8, 256>}, {pipeline_mode = #tpu.pipeline_mode<synchronous>, transform_indices = @transform_1, window_bounds = array<i64: 3, 32, 24>}, {pipeline_mode = #tpu.pipeline_mode<synchronous>, transform_indices = @transform_2, window_bounds = array<i64: 32, 1>}, {pipeline_mode = #tpu.pipeline_mode<synchronous>, transform_indices = @transform_3, window_bounds = array<i64: 3, 32, 96>}, {pipeline_mode = #tpu.pipeline_mode<synchronous>, transform_indices = @transform_4, window_bounds = array<i64: 32, 1>}, {pipeline_mode = #tpu.pipeline_mode<synchronous>, transform_indices = @transform_5, window_bounds = array<i64: 3, 32, 96>}, {pipeline_mode = #tpu.pipeline_mode<synchronous>, transform_indices = @transform_6, window_bounds = array<i64: 32, 1>}, {pipeline_mode = #tpu.pipeline_mode<synchronous>, transform_indices = @transform_7, window_bounds = array<i64: 3, 4, 96>}, {pipeline_mode = #tpu.pipeline_mode<synchronous>, transform_indices = @transform_8, window_bounds = array<i64: 4, 1>}, {transform_indices = @transform_9, window_bounds = array<i64: 2, 4, 256>}]} {
    %0 = tpu.iota {dimensions = array<i32: 1>} : vector<1x256xi32>
    %c15_i32 = arith.constant 15 : i32
    %1 = vector.broadcast %c15_i32 : i32 to vector<1x256xi32>
    %2 = arith.andi %0, %1 : vector<1x256xi32>
    %c0_i32 = arith.constant 0 : i32
    %3 = vector.broadcast %c0_i32 : i32 to vector<1x256xi32>
    %4 = arith.cmpi eq, %2, %3 : vector<1x256xi32>
    %c15_i32_0 = arith.constant 15 : i32
    %5 = vector.broadcast %c15_i32_0 : i32 to vector<1x256xi32>
    %6 = arith.cmpi eq, %2, %5 : vector<1x256xi32>
    %c0 = arith.constant 0 : index
    %c0_1 = arith.constant 0 : index
    %c0_2 = arith.constant 0 : index
    %7 = vector.load %arg1[%c0, %c0_1, %c0_2] : memref<2x8x256xf32, #tpu.memory_space<vmem>>, vector<1x8x256xf32>
    %8 = vector.shape_cast %7 : vector<1x8x256xf32> to vector<8x256xf32>
    %c241_i32 = arith.constant 241 : i32
    %9 = tpu.dynamic_rotate %8 by %c241_i32 dim 1 : vector<8x256xf32>, i32 -> vector<8x256xf32>
    %c1_i32 = arith.constant 1 : i32
    %10 = tpu.dynamic_rotate %8 by %c1_i32 dim 1 : vector<8x256xf32>, i32 -> vector<8x256xf32>
    %11 = vector.shape_cast %4 : vector<1x256xi1> to vector<1x256xi1>
    %12 = vector.broadcast %11 : vector<1x256xi1> to vector<8x256xi1>
    %13 = arith.select %12, %9, %10 : vector<8x256xi1>, vector<8x256xf32>
    %c15_i32_3 = arith.constant 15 : i32
    %14 = tpu.dynamic_rotate %8 by %c15_i32_3 dim 1 : vector<8x256xf32>, i32 -> vector<8x256xf32>
    %c255_i32 = arith.constant 255 : i32
    %15 = tpu.dynamic_rotate %8 by %c255_i32 dim 1 : vector<8x256xf32>, i32 -> vector<8x256xf32>
    %16 = vector.shape_cast %6 : vector<1x256xi1> to vector<1x256xi1>
    %17 = vector.broadcast %16 : vector<1x256xi1> to vector<8x256xi1>
    %18 = arith.select %17, %14, %15 : vector<8x256xi1>, vector<8x256xf32>
    %c1 = arith.constant 1 : index
    %c0_4 = arith.constant 0 : index
    %c0_5 = arith.constant 0 : index
    %19 = vector.load %arg2[%c1, %c0_4, %c0_5] : memref<3x32x24xf32, #tpu.memory_space<vmem>>, vector<1x32x24xf32>
    %20 = vector.shape_cast %19 : vector<1x32x24xf32> to vector<32x24xf32>
    %21 = tpu.concatenate %13, %8, %18 in 0 : vector<8x256xf32>, vector<8x256xf32>, vector<8x256xf32> -> vector<24x256xf32>
    %cst = arith.constant dense<0.000000e+00> : vector<32x256xf32>
    %22 = tpu.matmul %20, %21, %cst {dimension_numbers = #tpu.dot_dimension_numbers<[1], [0], [0], [1], [0, 0, 1, 1], [], []>} : vector<32x24xf32>, vector<24x256xf32>, vector<32x256xf32> -> vector<32x256xf32>
    %c16_i32 = arith.constant 16 : i32
    %23 = tpu.dynamic_rotate %13 by %c16_i32 dim 1 : vector<8x256xf32>, i32 -> vector<8x256xf32>
    %c16_i32_6 = arith.constant 16 : i32
    %24 = tpu.dynamic_rotate %8 by %c16_i32_6 dim 1 : vector<8x256xf32>, i32 -> vector<8x256xf32>
    %c16_i32_7 = arith.constant 16 : i32
    %25 = tpu.dynamic_rotate %18 by %c16_i32_7 dim 1 : vector<8x256xf32>, i32 -> vector<8x256xf32>
    %26 = tpu.concatenate %23, %24, %25 in 0 : vector<8x256xf32>, vector<8x256xf32>, vector<8x256xf32> -> vector<24x256xf32>
    %c0_8 = arith.constant 0 : index
    %c0_9 = arith.constant 0 : index
    %c0_10 = arith.constant 0 : index
    %27 = vector.load %arg2[%c0_8, %c0_9, %c0_10] : memref<3x32x24xf32, #tpu.memory_space<vmem>>, vector<1x32x24xf32>
    %28 = vector.shape_cast %27 : vector<1x32x24xf32> to vector<32x24xf32>
    %cst_11 = arith.constant dense<0.000000e+00> : vector<32x256xf32>
    %29 = tpu.matmul %28, %26, %cst_11 {dimension_numbers = #tpu.dot_dimension_numbers<[1], [0], [0], [1], [0, 0, 1, 1], [], []>} : vector<32x24xf32>, vector<24x256xf32>, vector<32x256xf32> -> vector<32x256xf32>
    %30 = arith.addf %22, %29 : vector<32x256xf32>
    %c240_i32 = arith.constant 240 : i32
    %31 = tpu.dynamic_rotate %13 by %c240_i32 dim 1 : vector<8x256xf32>, i32 -> vector<8x256xf32>
    %c240_i32_12 = arith.constant 240 : i32
    %32 = tpu.dynamic_rotate %8 by %c240_i32_12 dim 1 : vector<8x256xf32>, i32 -> vector<8x256xf32>
    %c240_i32_13 = arith.constant 240 : i32
    %33 = tpu.dynamic_rotate %18 by %c240_i32_13 dim 1 : vector<8x256xf32>, i32 -> vector<8x256xf32>
    %34 = tpu.concatenate %31, %32, %33 in 0 : vector<8x256xf32>, vector<8x256xf32>, vector<8x256xf32> -> vector<24x256xf32>
    %c2 = arith.constant 2 : index
    %c0_14 = arith.constant 0 : index
    %c0_15 = arith.constant 0 : index
    %35 = vector.load %arg2[%c2, %c0_14, %c0_15] : memref<3x32x24xf32, #tpu.memory_space<vmem>>, vector<1x32x24xf32>
    %36 = vector.shape_cast %35 : vector<1x32x24xf32> to vector<32x24xf32>
    %cst_16 = arith.constant dense<0.000000e+00> : vector<32x256xf32>
    %37 = tpu.matmul %36, %34, %cst_16 {dimension_numbers = #tpu.dot_dimension_numbers<[1], [0], [0], [1], [0, 0, 1, 1], [], []>} : vector<32x24xf32>, vector<24x256xf32>, vector<32x256xf32> -> vector<32x256xf32>
    %38 = arith.addf %30, %37 : vector<32x256xf32>
    %c0_17 = arith.constant 0 : index
    %c0_18 = arith.constant 0 : index
    %39 = vector.load %arg3[%c0_17, %c0_18] : memref<32x1xf32, #tpu.memory_space<vmem>>, vector<32x1xf32>
    %40 = vector.broadcast %39 : vector<32x1xf32> to vector<32x256xf32>
    %41 = arith.addf %38, %40 : vector<32x256xf32>
    %cst_19 = arith.constant 0.000000e+00 : f32
    %42 = vector.broadcast %cst_19 : f32 to vector<32x256xf32>
    %43 = arith.maximumf %41, %42 : vector<32x256xf32>
    %c241_i32_20 = arith.constant 241 : i32
    %44 = tpu.dynamic_rotate %43 by %c241_i32_20 dim 1 : vector<32x256xf32>, i32 -> vector<32x256xf32>
    %c1_i32_21 = arith.constant 1 : i32
    %45 = tpu.dynamic_rotate %43 by %c1_i32_21 dim 1 : vector<32x256xf32>, i32 -> vector<32x256xf32>
    %46 = vector.shape_cast %4 : vector<1x256xi1> to vector<1x256xi1>
    %47 = vector.broadcast %46 : vector<1x256xi1> to vector<32x256xi1>
    %48 = arith.select %47, %44, %45 : vector<32x256xi1>, vector<32x256xf32>
    %c15_i32_22 = arith.constant 15 : i32
    %49 = tpu.dynamic_rotate %43 by %c15_i32_22 dim 1 : vector<32x256xf32>, i32 -> vector<32x256xf32>
    %c255_i32_23 = arith.constant 255 : i32
    %50 = tpu.dynamic_rotate %43 by %c255_i32_23 dim 1 : vector<32x256xf32>, i32 -> vector<32x256xf32>
    %51 = vector.shape_cast %6 : vector<1x256xi1> to vector<1x256xi1>
    %52 = vector.broadcast %51 : vector<1x256xi1> to vector<32x256xi1>
    %53 = arith.select %52, %49, %50 : vector<32x256xi1>, vector<32x256xf32>
    %c1_24 = arith.constant 1 : index
    %c0_25 = arith.constant 0 : index
    %c0_26 = arith.constant 0 : index
    %54 = vector.load %arg4[%c1_24, %c0_25, %c0_26] : memref<3x32x96xf32, #tpu.memory_space<vmem>>, vector<1x32x96xf32>
    %55 = vector.shape_cast %54 : vector<1x32x96xf32> to vector<32x96xf32>
    %56 = tpu.concatenate %48, %43, %53 in 0 : vector<32x256xf32>, vector<32x256xf32>, vector<32x256xf32> -> vector<96x256xf32>
    %cst_27 = arith.constant dense<0.000000e+00> : vector<32x256xf32>
    %57 = tpu.matmul %55, %56, %cst_27 {dimension_numbers = #tpu.dot_dimension_numbers<[1], [0], [0], [1], [0, 0, 1, 1], [], []>} : vector<32x96xf32>, vector<96x256xf32>, vector<32x256xf32> -> vector<32x256xf32>
    %c16_i32_28 = arith.constant 16 : i32
    %58 = tpu.dynamic_rotate %48 by %c16_i32_28 dim 1 : vector<32x256xf32>, i32 -> vector<32x256xf32>
    %c16_i32_29 = arith.constant 16 : i32
    %59 = tpu.dynamic_rotate %43 by %c16_i32_29 dim 1 : vector<32x256xf32>, i32 -> vector<32x256xf32>
    %c16_i32_30 = arith.constant 16 : i32
    %60 = tpu.dynamic_rotate %53 by %c16_i32_30 dim 1 : vector<32x256xf32>, i32 -> vector<32x256xf32>
    %61 = tpu.concatenate %58, %59, %60 in 0 : vector<32x256xf32>, vector<32x256xf32>, vector<32x256xf32> -> vector<96x256xf32>
    %c0_31 = arith.constant 0 : index
    %c0_32 = arith.constant 0 : index
    %c0_33 = arith.constant 0 : index
    %62 = vector.load %arg4[%c0_31, %c0_32, %c0_33] : memref<3x32x96xf32, #tpu.memory_space<vmem>>, vector<1x32x96xf32>
    %63 = vector.shape_cast %62 : vector<1x32x96xf32> to vector<32x96xf32>
    %cst_34 = arith.constant dense<0.000000e+00> : vector<32x256xf32>
    %64 = tpu.matmul %63, %61, %cst_34 {dimension_numbers = #tpu.dot_dimension_numbers<[1], [0], [0], [1], [0, 0, 1, 1], [], []>} : vector<32x96xf32>, vector<96x256xf32>, vector<32x256xf32> -> vector<32x256xf32>
    %65 = arith.addf %57, %64 : vector<32x256xf32>
    %c240_i32_35 = arith.constant 240 : i32
    %66 = tpu.dynamic_rotate %48 by %c240_i32_35 dim 1 : vector<32x256xf32>, i32 -> vector<32x256xf32>
    %c240_i32_36 = arith.constant 240 : i32
    %67 = tpu.dynamic_rotate %43 by %c240_i32_36 dim 1 : vector<32x256xf32>, i32 -> vector<32x256xf32>
    %c240_i32_37 = arith.constant 240 : i32
    %68 = tpu.dynamic_rotate %53 by %c240_i32_37 dim 1 : vector<32x256xf32>, i32 -> vector<32x256xf32>
    %69 = tpu.concatenate %66, %67, %68 in 0 : vector<32x256xf32>, vector<32x256xf32>, vector<32x256xf32> -> vector<96x256xf32>
    %c2_38 = arith.constant 2 : index
    %c0_39 = arith.constant 0 : index
    %c0_40 = arith.constant 0 : index
    %70 = vector.load %arg4[%c2_38, %c0_39, %c0_40] : memref<3x32x96xf32, #tpu.memory_space<vmem>>, vector<1x32x96xf32>
    %71 = vector.shape_cast %70 : vector<1x32x96xf32> to vector<32x96xf32>
    %cst_41 = arith.constant dense<0.000000e+00> : vector<32x256xf32>
    %72 = tpu.matmul %71, %69, %cst_41 {dimension_numbers = #tpu.dot_dimension_numbers<[1], [0], [0], [1], [0, 0, 1, 1], [], []>} : vector<32x96xf32>, vector<96x256xf32>, vector<32x256xf32> -> vector<32x256xf32>
    %73 = arith.addf %65, %72 : vector<32x256xf32>
    %c0_42 = arith.constant 0 : index
    %c0_43 = arith.constant 0 : index
    %74 = vector.load %arg5[%c0_42, %c0_43] : memref<32x1xf32, #tpu.memory_space<vmem>>, vector<32x1xf32>
    %75 = vector.broadcast %74 : vector<32x1xf32> to vector<32x256xf32>
    %76 = arith.addf %73, %75 : vector<32x256xf32>
    %cst_44 = arith.constant 0.000000e+00 : f32
    %77 = vector.broadcast %cst_44 : f32 to vector<32x256xf32>
    %78 = arith.maximumf %76, %77 : vector<32x256xf32>
    %c241_i32_45 = arith.constant 241 : i32
    %79 = tpu.dynamic_rotate %78 by %c241_i32_45 dim 1 : vector<32x256xf32>, i32 -> vector<32x256xf32>
    %c1_i32_46 = arith.constant 1 : i32
    %80 = tpu.dynamic_rotate %78 by %c1_i32_46 dim 1 : vector<32x256xf32>, i32 -> vector<32x256xf32>
    %81 = vector.shape_cast %4 : vector<1x256xi1> to vector<1x256xi1>
    %82 = vector.broadcast %81 : vector<1x256xi1> to vector<32x256xi1>
    %83 = arith.select %82, %79, %80 : vector<32x256xi1>, vector<32x256xf32>
    %c15_i32_47 = arith.constant 15 : i32
    %84 = tpu.dynamic_rotate %78 by %c15_i32_47 dim 1 : vector<32x256xf32>, i32 -> vector<32x256xf32>
    %c255_i32_48 = arith.constant 255 : i32
    %85 = tpu.dynamic_rotate %78 by %c255_i32_48 dim 1 : vector<32x256xf32>, i32 -> vector<32x256xf32>
    %86 = vector.shape_cast %6 : vector<1x256xi1> to vector<1x256xi1>
    %87 = vector.broadcast %86 : vector<1x256xi1> to vector<32x256xi1>
    %88 = arith.select %87, %84, %85 : vector<32x256xi1>, vector<32x256xf32>
    %c1_49 = arith.constant 1 : index
    %c0_50 = arith.constant 0 : index
    %c0_51 = arith.constant 0 : index
    %89 = vector.load %arg6[%c1_49, %c0_50, %c0_51] : memref<3x32x96xf32, #tpu.memory_space<vmem>>, vector<1x32x96xf32>
    %90 = vector.shape_cast %89 : vector<1x32x96xf32> to vector<32x96xf32>
    %91 = tpu.concatenate %83, %78, %88 in 0 : vector<32x256xf32>, vector<32x256xf32>, vector<32x256xf32> -> vector<96x256xf32>
    %cst_52 = arith.constant dense<0.000000e+00> : vector<32x256xf32>
    %92 = tpu.matmul %90, %91, %cst_52 {dimension_numbers = #tpu.dot_dimension_numbers<[1], [0], [0], [1], [0, 0, 1, 1], [], []>} : vector<32x96xf32>, vector<96x256xf32>, vector<32x256xf32> -> vector<32x256xf32>
    %c16_i32_53 = arith.constant 16 : i32
    %93 = tpu.dynamic_rotate %83 by %c16_i32_53 dim 1 : vector<32x256xf32>, i32 -> vector<32x256xf32>
    %c16_i32_54 = arith.constant 16 : i32
    %94 = tpu.dynamic_rotate %78 by %c16_i32_54 dim 1 : vector<32x256xf32>, i32 -> vector<32x256xf32>
    %c16_i32_55 = arith.constant 16 : i32
    %95 = tpu.dynamic_rotate %88 by %c16_i32_55 dim 1 : vector<32x256xf32>, i32 -> vector<32x256xf32>
    %96 = tpu.concatenate %93, %94, %95 in 0 : vector<32x256xf32>, vector<32x256xf32>, vector<32x256xf32> -> vector<96x256xf32>
    %c0_56 = arith.constant 0 : index
    %c0_57 = arith.constant 0 : index
    %c0_58 = arith.constant 0 : index
    %97 = vector.load %arg6[%c0_56, %c0_57, %c0_58] : memref<3x32x96xf32, #tpu.memory_space<vmem>>, vector<1x32x96xf32>
    %98 = vector.shape_cast %97 : vector<1x32x96xf32> to vector<32x96xf32>
    %cst_59 = arith.constant dense<0.000000e+00> : vector<32x256xf32>
    %99 = tpu.matmul %98, %96, %cst_59 {dimension_numbers = #tpu.dot_dimension_numbers<[1], [0], [0], [1], [0, 0, 1, 1], [], []>} : vector<32x96xf32>, vector<96x256xf32>, vector<32x256xf32> -> vector<32x256xf32>
    %100 = arith.addf %92, %99 : vector<32x256xf32>
    %c240_i32_60 = arith.constant 240 : i32
    %101 = tpu.dynamic_rotate %83 by %c240_i32_60 dim 1 : vector<32x256xf32>, i32 -> vector<32x256xf32>
    %c240_i32_61 = arith.constant 240 : i32
    %102 = tpu.dynamic_rotate %78 by %c240_i32_61 dim 1 : vector<32x256xf32>, i32 -> vector<32x256xf32>
    %c240_i32_62 = arith.constant 240 : i32
    %103 = tpu.dynamic_rotate %88 by %c240_i32_62 dim 1 : vector<32x256xf32>, i32 -> vector<32x256xf32>
    %104 = tpu.concatenate %101, %102, %103 in 0 : vector<32x256xf32>, vector<32x256xf32>, vector<32x256xf32> -> vector<96x256xf32>
    %c2_63 = arith.constant 2 : index
    %c0_64 = arith.constant 0 : index
    %c0_65 = arith.constant 0 : index
    %105 = vector.load %arg6[%c2_63, %c0_64, %c0_65] : memref<3x32x96xf32, #tpu.memory_space<vmem>>, vector<1x32x96xf32>
    %106 = vector.shape_cast %105 : vector<1x32x96xf32> to vector<32x96xf32>
    %cst_66 = arith.constant dense<0.000000e+00> : vector<32x256xf32>
    %107 = tpu.matmul %106, %104, %cst_66 {dimension_numbers = #tpu.dot_dimension_numbers<[1], [0], [0], [1], [0, 0, 1, 1], [], []>} : vector<32x96xf32>, vector<96x256xf32>, vector<32x256xf32> -> vector<32x256xf32>
    %108 = arith.addf %100, %107 : vector<32x256xf32>
    %c0_67 = arith.constant 0 : index
    %c0_68 = arith.constant 0 : index
    %109 = vector.load %arg7[%c0_67, %c0_68] : memref<32x1xf32, #tpu.memory_space<vmem>>, vector<32x1xf32>
    %110 = vector.broadcast %109 : vector<32x1xf32> to vector<32x256xf32>
    %111 = arith.addf %108, %110 : vector<32x256xf32>
    %cst_69 = arith.constant 0.000000e+00 : f32
    %112 = vector.broadcast %cst_69 : f32 to vector<32x256xf32>
    %113 = arith.maximumf %111, %112 : vector<32x256xf32>
    %c241_i32_70 = arith.constant 241 : i32
    %114 = tpu.dynamic_rotate %113 by %c241_i32_70 dim 1 : vector<32x256xf32>, i32 -> vector<32x256xf32>
    %c1_i32_71 = arith.constant 1 : i32
    %115 = tpu.dynamic_rotate %113 by %c1_i32_71 dim 1 : vector<32x256xf32>, i32 -> vector<32x256xf32>
    %116 = vector.shape_cast %4 : vector<1x256xi1> to vector<1x256xi1>
    %117 = vector.broadcast %116 : vector<1x256xi1> to vector<32x256xi1>
    %118 = arith.select %117, %114, %115 : vector<32x256xi1>, vector<32x256xf32>
    %c15_i32_72 = arith.constant 15 : i32
    %119 = tpu.dynamic_rotate %113 by %c15_i32_72 dim 1 : vector<32x256xf32>, i32 -> vector<32x256xf32>
    %c255_i32_73 = arith.constant 255 : i32
    %120 = tpu.dynamic_rotate %113 by %c255_i32_73 dim 1 : vector<32x256xf32>, i32 -> vector<32x256xf32>
    %121 = vector.shape_cast %6 : vector<1x256xi1> to vector<1x256xi1>
    %122 = vector.broadcast %121 : vector<1x256xi1> to vector<32x256xi1>
    %123 = arith.select %122, %119, %120 : vector<32x256xi1>, vector<32x256xf32>
    %c1_74 = arith.constant 1 : index
    %c0_75 = arith.constant 0 : index
    %c0_76 = arith.constant 0 : index
    %124 = vector.load %arg8[%c1_74, %c0_75, %c0_76] : memref<3x4x96xf32, #tpu.memory_space<vmem>>, vector<1x4x96xf32>
    %125 = vector.shape_cast %124 : vector<1x4x96xf32> to vector<4x96xf32>
    %126 = tpu.concatenate %118, %113, %123 in 0 : vector<32x256xf32>, vector<32x256xf32>, vector<32x256xf32> -> vector<96x256xf32>
    %cst_77 = arith.constant dense<0.000000e+00> : vector<4x256xf32>
    %127 = tpu.matmul %125, %126, %cst_77 {dimension_numbers = #tpu.dot_dimension_numbers<[1], [0], [0], [1], [0, 0, 1, 1], [], []>} : vector<4x96xf32>, vector<96x256xf32>, vector<4x256xf32> -> vector<4x256xf32>
    %c16_i32_78 = arith.constant 16 : i32
    %128 = tpu.dynamic_rotate %118 by %c16_i32_78 dim 1 : vector<32x256xf32>, i32 -> vector<32x256xf32>
    %c16_i32_79 = arith.constant 16 : i32
    %129 = tpu.dynamic_rotate %113 by %c16_i32_79 dim 1 : vector<32x256xf32>, i32 -> vector<32x256xf32>
    %c16_i32_80 = arith.constant 16 : i32
    %130 = tpu.dynamic_rotate %123 by %c16_i32_80 dim 1 : vector<32x256xf32>, i32 -> vector<32x256xf32>
    %131 = tpu.concatenate %128, %129, %130 in 0 : vector<32x256xf32>, vector<32x256xf32>, vector<32x256xf32> -> vector<96x256xf32>
    %c0_81 = arith.constant 0 : index
    %c0_82 = arith.constant 0 : index
    %c0_83 = arith.constant 0 : index
    %132 = vector.load %arg8[%c0_81, %c0_82, %c0_83] : memref<3x4x96xf32, #tpu.memory_space<vmem>>, vector<1x4x96xf32>
    %133 = vector.shape_cast %132 : vector<1x4x96xf32> to vector<4x96xf32>
    %cst_84 = arith.constant dense<0.000000e+00> : vector<4x256xf32>
    %134 = tpu.matmul %133, %131, %cst_84 {dimension_numbers = #tpu.dot_dimension_numbers<[1], [0], [0], [1], [0, 0, 1, 1], [], []>} : vector<4x96xf32>, vector<96x256xf32>, vector<4x256xf32> -> vector<4x256xf32>
    %135 = arith.addf %127, %134 : vector<4x256xf32>
    %c240_i32_85 = arith.constant 240 : i32
    %136 = tpu.dynamic_rotate %118 by %c240_i32_85 dim 1 : vector<32x256xf32>, i32 -> vector<32x256xf32>
    %c240_i32_86 = arith.constant 240 : i32
    %137 = tpu.dynamic_rotate %113 by %c240_i32_86 dim 1 : vector<32x256xf32>, i32 -> vector<32x256xf32>
    %c240_i32_87 = arith.constant 240 : i32
    %138 = tpu.dynamic_rotate %123 by %c240_i32_87 dim 1 : vector<32x256xf32>, i32 -> vector<32x256xf32>
    %139 = tpu.concatenate %136, %137, %138 in 0 : vector<32x256xf32>, vector<32x256xf32>, vector<32x256xf32> -> vector<96x256xf32>
    %c2_88 = arith.constant 2 : index
    %c0_89 = arith.constant 0 : index
    %c0_90 = arith.constant 0 : index
    %140 = vector.load %arg8[%c2_88, %c0_89, %c0_90] : memref<3x4x96xf32, #tpu.memory_space<vmem>>, vector<1x4x96xf32>
    %141 = vector.shape_cast %140 : vector<1x4x96xf32> to vector<4x96xf32>
    %cst_91 = arith.constant dense<0.000000e+00> : vector<4x256xf32>
    %142 = tpu.matmul %141, %139, %cst_91 {dimension_numbers = #tpu.dot_dimension_numbers<[1], [0], [0], [1], [0, 0, 1, 1], [], []>} : vector<4x96xf32>, vector<96x256xf32>, vector<4x256xf32> -> vector<4x256xf32>
    %143 = arith.addf %135, %142 : vector<4x256xf32>
    %c0_92 = arith.constant 0 : index
    %c0_93 = arith.constant 0 : index
    %144 = vector.load %arg9[%c0_92, %c0_93] : memref<4x1xf32, #tpu.memory_space<vmem>>, vector<4x1xf32>
    %145 = vector.broadcast %144 : vector<4x1xf32> to vector<4x256xf32>
    %146 = arith.addf %143, %145 : vector<4x256xf32>
    %c0_94 = arith.constant 0 : index
    %c0_95 = arith.constant 0 : index
    %c0_96 = arith.constant 0 : index
    %147 = vector.load %arg10[%c0_94, %c0_95, %c0_96] : memref<2x4x256xf32, #tpu.memory_space<vmem>>, vector<1x4x256xf32>
    %148 = vector.shape_cast %147 : vector<1x4x256xf32> to vector<4x256xf32>
    %149 = vector.shape_cast %146 : vector<4x256xf32> to vector<1x4x256xf32>
    tpu.vector_store %arg10[%c0_94, %c0_95, %c0_96], %149 {strides = array<i32>} : memref<2x4x256xf32, #tpu.memory_space<vmem>>, vector<1x4x256xf32>,
    %c1_97 = arith.constant 1 : index
    %c0_98 = arith.constant 0 : index
    %c0_99 = arith.constant 0 : index
    %150 = vector.load %arg1[%c1_97, %c0_98, %c0_99] : memref<2x8x256xf32, #tpu.memory_space<vmem>>, vector<1x8x256xf32>
    %151 = vector.shape_cast %150 : vector<1x8x256xf32> to vector<8x256xf32>
    %c241_i32_100 = arith.constant 241 : i32
    %152 = tpu.dynamic_rotate %151 by %c241_i32_100 dim 1 : vector<8x256xf32>, i32 -> vector<8x256xf32>
    %c1_i32_101 = arith.constant 1 : i32
    %153 = tpu.dynamic_rotate %151 by %c1_i32_101 dim 1 : vector<8x256xf32>, i32 -> vector<8x256xf32>
    %154 = vector.shape_cast %4 : vector<1x256xi1> to vector<1x256xi1>
    %155 = vector.broadcast %154 : vector<1x256xi1> to vector<8x256xi1>
    %156 = arith.select %155, %152, %153 : vector<8x256xi1>, vector<8x256xf32>
    %c15_i32_102 = arith.constant 15 : i32
    %157 = tpu.dynamic_rotate %151 by %c15_i32_102 dim 1 : vector<8x256xf32>, i32 -> vector<8x256xf32>
    %c255_i32_103 = arith.constant 255 : i32
    %158 = tpu.dynamic_rotate %151 by %c255_i32_103 dim 1 : vector<8x256xf32>, i32 -> vector<8x256xf32>
    %159 = vector.shape_cast %6 : vector<1x256xi1> to vector<1x256xi1>
    %160 = vector.broadcast %159 : vector<1x256xi1> to vector<8x256xi1>
    %161 = arith.select %160, %157, %158 : vector<8x256xi1>, vector<8x256xf32>
    %c1_104 = arith.constant 1 : index
    %c0_105 = arith.constant 0 : index
    %c0_106 = arith.constant 0 : index
    %162 = vector.load %arg2[%c1_104, %c0_105, %c0_106] : memref<3x32x24xf32, #tpu.memory_space<vmem>>, vector<1x32x24xf32>
    %163 = vector.shape_cast %162 : vector<1x32x24xf32> to vector<32x24xf32>
    %164 = tpu.concatenate %156, %151, %161 in 0 : vector<8x256xf32>, vector<8x256xf32>, vector<8x256xf32> -> vector<24x256xf32>
    %cst_107 = arith.constant dense<0.000000e+00> : vector<32x256xf32>
    %165 = tpu.matmul %163, %164, %cst_107 {dimension_numbers = #tpu.dot_dimension_numbers<[1], [0], [0], [1], [0, 0, 1, 1], [], []>} : vector<32x24xf32>, vector<24x256xf32>, vector<32x256xf32> -> vector<32x256xf32>
    %c16_i32_108 = arith.constant 16 : i32
    %166 = tpu.dynamic_rotate %156 by %c16_i32_108 dim 1 : vector<8x256xf32>, i32 -> vector<8x256xf32>
    %c16_i32_109 = arith.constant 16 : i32
    %167 = tpu.dynamic_rotate %151 by %c16_i32_109 dim 1 : vector<8x256xf32>, i32 -> vector<8x256xf32>
    %c16_i32_110 = arith.constant 16 : i32
    %168 = tpu.dynamic_rotate %161 by %c16_i32_110 dim 1 : vector<8x256xf32>, i32 -> vector<8x256xf32>
    %169 = tpu.concatenate %166, %167, %168 in 0 : vector<8x256xf32>, vector<8x256xf32>, vector<8x256xf32> -> vector<24x256xf32>
    %c0_111 = arith.constant 0 : index
    %c0_112 = arith.constant 0 : index
    %c0_113 = arith.constant 0 : index
    %170 = vector.load %arg2[%c0_111, %c0_112, %c0_113] : memref<3x32x24xf32, #tpu.memory_space<vmem>>, vector<1x32x24xf32>
    %171 = vector.shape_cast %170 : vector<1x32x24xf32> to vector<32x24xf32>
    %cst_114 = arith.constant dense<0.000000e+00> : vector<32x256xf32>
    %172 = tpu.matmul %171, %169, %cst_114 {dimension_numbers = #tpu.dot_dimension_numbers<[1], [0], [0], [1], [0, 0, 1, 1], [], []>} : vector<32x24xf32>, vector<24x256xf32>, vector<32x256xf32> -> vector<32x256xf32>
    %173 = arith.addf %165, %172 : vector<32x256xf32>
    %c240_i32_115 = arith.constant 240 : i32
    %174 = tpu.dynamic_rotate %156 by %c240_i32_115 dim 1 : vector<8x256xf32>, i32 -> vector<8x256xf32>
    %c240_i32_116 = arith.constant 240 : i32
    %175 = tpu.dynamic_rotate %151 by %c240_i32_116 dim 1 : vector<8x256xf32>, i32 -> vector<8x256xf32>
    %c240_i32_117 = arith.constant 240 : i32
    %176 = tpu.dynamic_rotate %161 by %c240_i32_117 dim 1 : vector<8x256xf32>, i32 -> vector<8x256xf32>
    %177 = tpu.concatenate %174, %175, %176 in 0 : vector<8x256xf32>, vector<8x256xf32>, vector<8x256xf32> -> vector<24x256xf32>
    %c2_118 = arith.constant 2 : index
    %c0_119 = arith.constant 0 : index
    %c0_120 = arith.constant 0 : index
    %178 = vector.load %arg2[%c2_118, %c0_119, %c0_120] : memref<3x32x24xf32, #tpu.memory_space<vmem>>, vector<1x32x24xf32>
    %179 = vector.shape_cast %178 : vector<1x32x24xf32> to vector<32x24xf32>
    %cst_121 = arith.constant dense<0.000000e+00> : vector<32x256xf32>
    %180 = tpu.matmul %179, %177, %cst_121 {dimension_numbers = #tpu.dot_dimension_numbers<[1], [0], [0], [1], [0, 0, 1, 1], [], []>} : vector<32x24xf32>, vector<24x256xf32>, vector<32x256xf32> -> vector<32x256xf32>
    %181 = arith.addf %173, %180 : vector<32x256xf32>
    %c0_122 = arith.constant 0 : index
    %c0_123 = arith.constant 0 : index
    %182 = vector.load %arg3[%c0_122, %c0_123] : memref<32x1xf32, #tpu.memory_space<vmem>>, vector<32x1xf32>
    %183 = vector.broadcast %182 : vector<32x1xf32> to vector<32x256xf32>
    %184 = arith.addf %181, %183 : vector<32x256xf32>
    %cst_124 = arith.constant 0.000000e+00 : f32
    %185 = vector.broadcast %cst_124 : f32 to vector<32x256xf32>
    %186 = arith.maximumf %184, %185 : vector<32x256xf32>
    %c241_i32_125 = arith.constant 241 : i32
    %187 = tpu.dynamic_rotate %186 by %c241_i32_125 dim 1 : vector<32x256xf32>, i32 -> vector<32x256xf32>
    %c1_i32_126 = arith.constant 1 : i32
    %188 = tpu.dynamic_rotate %186 by %c1_i32_126 dim 1 : vector<32x256xf32>, i32 -> vector<32x256xf32>
    %189 = vector.shape_cast %4 : vector<1x256xi1> to vector<1x256xi1>
    %190 = vector.broadcast %189 : vector<1x256xi1> to vector<32x256xi1>
    %191 = arith.select %190, %187, %188 : vector<32x256xi1>, vector<32x256xf32>
    %c15_i32_127 = arith.constant 15 : i32
    %192 = tpu.dynamic_rotate %186 by %c15_i32_127 dim 1 : vector<32x256xf32>, i32 -> vector<32x256xf32>
    %c255_i32_128 = arith.constant 255 : i32
    %193 = tpu.dynamic_rotate %186 by %c255_i32_128 dim 1 : vector<32x256xf32>, i32 -> vector<32x256xf32>
    %194 = vector.shape_cast %6 : vector<1x256xi1> to vector<1x256xi1>
    %195 = vector.broadcast %194 : vector<1x256xi1> to vector<32x256xi1>
    %196 = arith.select %195, %192, %193 : vector<32x256xi1>, vector<32x256xf32>
    %c1_129 = arith.constant 1 : index
    %c0_130 = arith.constant 0 : index
    %c0_131 = arith.constant 0 : index
    %197 = vector.load %arg4[%c1_129, %c0_130, %c0_131] : memref<3x32x96xf32, #tpu.memory_space<vmem>>, vector<1x32x96xf32>
    %198 = vector.shape_cast %197 : vector<1x32x96xf32> to vector<32x96xf32>
    %199 = tpu.concatenate %191, %186, %196 in 0 : vector<32x256xf32>, vector<32x256xf32>, vector<32x256xf32> -> vector<96x256xf32>
    %cst_132 = arith.constant dense<0.000000e+00> : vector<32x256xf32>
    %200 = tpu.matmul %198, %199, %cst_132 {dimension_numbers = #tpu.dot_dimension_numbers<[1], [0], [0], [1], [0, 0, 1, 1], [], []>} : vector<32x96xf32>, vector<96x256xf32>, vector<32x256xf32> -> vector<32x256xf32>
    %c16_i32_133 = arith.constant 16 : i32
    %201 = tpu.dynamic_rotate %191 by %c16_i32_133 dim 1 : vector<32x256xf32>, i32 -> vector<32x256xf32>
    %c16_i32_134 = arith.constant 16 : i32
    %202 = tpu.dynamic_rotate %186 by %c16_i32_134 dim 1 : vector<32x256xf32>, i32 -> vector<32x256xf32>
    %c16_i32_135 = arith.constant 16 : i32
    %203 = tpu.dynamic_rotate %196 by %c16_i32_135 dim 1 : vector<32x256xf32>, i32 -> vector<32x256xf32>
    %204 = tpu.concatenate %201, %202, %203 in 0 : vector<32x256xf32>, vector<32x256xf32>, vector<32x256xf32> -> vector<96x256xf32>
    %c0_136 = arith.constant 0 : index
    %c0_137 = arith.constant 0 : index
    %c0_138 = arith.constant 0 : index
    %205 = vector.load %arg4[%c0_136, %c0_137, %c0_138] : memref<3x32x96xf32, #tpu.memory_space<vmem>>, vector<1x32x96xf32>
    %206 = vector.shape_cast %205 : vector<1x32x96xf32> to vector<32x96xf32>
    %cst_139 = arith.constant dense<0.000000e+00> : vector<32x256xf32>
    %207 = tpu.matmul %206, %204, %cst_139 {dimension_numbers = #tpu.dot_dimension_numbers<[1], [0], [0], [1], [0, 0, 1, 1], [], []>} : vector<32x96xf32>, vector<96x256xf32>, vector<32x256xf32> -> vector<32x256xf32>
    %208 = arith.addf %200, %207 : vector<32x256xf32>
    %c240_i32_140 = arith.constant 240 : i32
    %209 = tpu.dynamic_rotate %191 by %c240_i32_140 dim 1 : vector<32x256xf32>, i32 -> vector<32x256xf32>
    %c240_i32_141 = arith.constant 240 : i32
    %210 = tpu.dynamic_rotate %186 by %c240_i32_141 dim 1 : vector<32x256xf32>, i32 -> vector<32x256xf32>
    %c240_i32_142 = arith.constant 240 : i32
    %211 = tpu.dynamic_rotate %196 by %c240_i32_142 dim 1 : vector<32x256xf32>, i32 -> vector<32x256xf32>
    %212 = tpu.concatenate %209, %210, %211 in 0 : vector<32x256xf32>, vector<32x256xf32>, vector<32x256xf32> -> vector<96x256xf32>
    %c2_143 = arith.constant 2 : index
    %c0_144 = arith.constant 0 : index
    %c0_145 = arith.constant 0 : index
    %213 = vector.load %arg4[%c2_143, %c0_144, %c0_145] : memref<3x32x96xf32, #tpu.memory_space<vmem>>, vector<1x32x96xf32>
    %214 = vector.shape_cast %213 : vector<1x32x96xf32> to vector<32x96xf32>
    %cst_146 = arith.constant dense<0.000000e+00> : vector<32x256xf32>
    %215 = tpu.matmul %214, %212, %cst_146 {dimension_numbers = #tpu.dot_dimension_numbers<[1], [0], [0], [1], [0, 0, 1, 1], [], []>} : vector<32x96xf32>, vector<96x256xf32>, vector<32x256xf32> -> vector<32x256xf32>
    %216 = arith.addf %208, %215 : vector<32x256xf32>
    %c0_147 = arith.constant 0 : index
    %c0_148 = arith.constant 0 : index
    %217 = vector.load %arg5[%c0_147, %c0_148] : memref<32x1xf32, #tpu.memory_space<vmem>>, vector<32x1xf32>
    %218 = vector.broadcast %217 : vector<32x1xf32> to vector<32x256xf32>
    %219 = arith.addf %216, %218 : vector<32x256xf32>
    %cst_149 = arith.constant 0.000000e+00 : f32
    %220 = vector.broadcast %cst_149 : f32 to vector<32x256xf32>
    %221 = arith.maximumf %219, %220 : vector<32x256xf32>
    %c241_i32_150 = arith.constant 241 : i32
    %222 = tpu.dynamic_rotate %221 by %c241_i32_150 dim 1 : vector<32x256xf32>, i32 -> vector<32x256xf32>
    %c1_i32_151 = arith.constant 1 : i32
    %223 = tpu.dynamic_rotate %221 by %c1_i32_151 dim 1 : vector<32x256xf32>, i32 -> vector<32x256xf32>
    %224 = vector.shape_cast %4 : vector<1x256xi1> to vector<1x256xi1>
    %225 = vector.broadcast %224 : vector<1x256xi1> to vector<32x256xi1>
    %226 = arith.select %225, %222, %223 : vector<32x256xi1>, vector<32x256xf32>
    %c15_i32_152 = arith.constant 15 : i32
    %227 = tpu.dynamic_rotate %221 by %c15_i32_152 dim 1 : vector<32x256xf32>, i32 -> vector<32x256xf32>
    %c255_i32_153 = arith.constant 255 : i32
    %228 = tpu.dynamic_rotate %221 by %c255_i32_153 dim 1 : vector<32x256xf32>, i32 -> vector<32x256xf32>
    %229 = vector.shape_cast %6 : vector<1x256xi1> to vector<1x256xi1>
    %230 = vector.broadcast %229 : vector<1x256xi1> to vector<32x256xi1>
    %231 = arith.select %230, %227, %228 : vector<32x256xi1>, vector<32x256xf32>
    %c1_154 = arith.constant 1 : index
    %c0_155 = arith.constant 0 : index
    %c0_156 = arith.constant 0 : index
    %232 = vector.load %arg6[%c1_154, %c0_155, %c0_156] : memref<3x32x96xf32, #tpu.memory_space<vmem>>, vector<1x32x96xf32>
    %233 = vector.shape_cast %232 : vector<1x32x96xf32> to vector<32x96xf32>
    %234 = tpu.concatenate %226, %221, %231 in 0 : vector<32x256xf32>, vector<32x256xf32>, vector<32x256xf32> -> vector<96x256xf32>
    %cst_157 = arith.constant dense<0.000000e+00> : vector<32x256xf32>
    %235 = tpu.matmul %233, %234, %cst_157 {dimension_numbers = #tpu.dot_dimension_numbers<[1], [0], [0], [1], [0, 0, 1, 1], [], []>} : vector<32x96xf32>, vector<96x256xf32>, vector<32x256xf32> -> vector<32x256xf32>
    %c16_i32_158 = arith.constant 16 : i32
    %236 = tpu.dynamic_rotate %226 by %c16_i32_158 dim 1 : vector<32x256xf32>, i32 -> vector<32x256xf32>
    %c16_i32_159 = arith.constant 16 : i32
    %237 = tpu.dynamic_rotate %221 by %c16_i32_159 dim 1 : vector<32x256xf32>, i32 -> vector<32x256xf32>
    %c16_i32_160 = arith.constant 16 : i32
    %238 = tpu.dynamic_rotate %231 by %c16_i32_160 dim 1 : vector<32x256xf32>, i32 -> vector<32x256xf32>
    %239 = tpu.concatenate %236, %237, %238 in 0 : vector<32x256xf32>, vector<32x256xf32>, vector<32x256xf32> -> vector<96x256xf32>
    %c0_161 = arith.constant 0 : index
    %c0_162 = arith.constant 0 : index
    %c0_163 = arith.constant 0 : index
    %240 = vector.load %arg6[%c0_161, %c0_162, %c0_163] : memref<3x32x96xf32, #tpu.memory_space<vmem>>, vector<1x32x96xf32>
    %241 = vector.shape_cast %240 : vector<1x32x96xf32> to vector<32x96xf32>
    %cst_164 = arith.constant dense<0.000000e+00> : vector<32x256xf32>
    %242 = tpu.matmul %241, %239, %cst_164 {dimension_numbers = #tpu.dot_dimension_numbers<[1], [0], [0], [1], [0, 0, 1, 1], [], []>} : vector<32x96xf32>, vector<96x256xf32>, vector<32x256xf32> -> vector<32x256xf32>
    %243 = arith.addf %235, %242 : vector<32x256xf32>
    %c240_i32_165 = arith.constant 240 : i32
    %244 = tpu.dynamic_rotate %226 by %c240_i32_165 dim 1 : vector<32x256xf32>, i32 -> vector<32x256xf32>
    %c240_i32_166 = arith.constant 240 : i32
    %245 = tpu.dynamic_rotate %221 by %c240_i32_166 dim 1 : vector<32x256xf32>, i32 -> vector<32x256xf32>
    %c240_i32_167 = arith.constant 240 : i32
    %246 = tpu.dynamic_rotate %231 by %c240_i32_167 dim 1 : vector<32x256xf32>, i32 -> vector<32x256xf32>
    %247 = tpu.concatenate %244, %245, %246 in 0 : vector<32x256xf32>, vector<32x256xf32>, vector<32x256xf32> -> vector<96x256xf32>
    %c2_168 = arith.constant 2 : index
    %c0_169 = arith.constant 0 : index
    %c0_170 = arith.constant 0 : index
    %248 = vector.load %arg6[%c2_168, %c0_169, %c0_170] : memref<3x32x96xf32, #tpu.memory_space<vmem>>, vector<1x32x96xf32>
    %249 = vector.shape_cast %248 : vector<1x32x96xf32> to vector<32x96xf32>
    %cst_171 = arith.constant dense<0.000000e+00> : vector<32x256xf32>
    %250 = tpu.matmul %249, %247, %cst_171 {dimension_numbers = #tpu.dot_dimension_numbers<[1], [0], [0], [1], [0, 0, 1, 1], [], []>} : vector<32x96xf32>, vector<96x256xf32>, vector<32x256xf32> -> vector<32x256xf32>
    %251 = arith.addf %243, %250 : vector<32x256xf32>
    %c0_172 = arith.constant 0 : index
    %c0_173 = arith.constant 0 : index
    %252 = vector.load %arg7[%c0_172, %c0_173] : memref<32x1xf32, #tpu.memory_space<vmem>>, vector<32x1xf32>
    %253 = vector.broadcast %252 : vector<32x1xf32> to vector<32x256xf32>
    %254 = arith.addf %251, %253 : vector<32x256xf32>
    %cst_174 = arith.constant 0.000000e+00 : f32
    %255 = vector.broadcast %cst_174 : f32 to vector<32x256xf32>
    %256 = arith.maximumf %254, %255 : vector<32x256xf32>
    %c241_i32_175 = arith.constant 241 : i32
    %257 = tpu.dynamic_rotate %256 by %c241_i32_175 dim 1 : vector<32x256xf32>, i32 -> vector<32x256xf32>
    %c1_i32_176 = arith.constant 1 : i32
    %258 = tpu.dynamic_rotate %256 by %c1_i32_176 dim 1 : vector<32x256xf32>, i32 -> vector<32x256xf32>
    %259 = vector.shape_cast %4 : vector<1x256xi1> to vector<1x256xi1>
    %260 = vector.broadcast %259 : vector<1x256xi1> to vector<32x256xi1>
    %261 = arith.select %260, %257, %258 : vector<32x256xi1>, vector<32x256xf32>
    %c15_i32_177 = arith.constant 15 : i32
    %262 = tpu.dynamic_rotate %256 by %c15_i32_177 dim 1 : vector<32x256xf32>, i32 -> vector<32x256xf32>
    %c255_i32_178 = arith.constant 255 : i32
    %263 = tpu.dynamic_rotate %256 by %c255_i32_178 dim 1 : vector<32x256xf32>, i32 -> vector<32x256xf32>
    %264 = vector.shape_cast %6 : vector<1x256xi1> to vector<1x256xi1>
    %265 = vector.broadcast %264 : vector<1x256xi1> to vector<32x256xi1>
    %266 = arith.select %265, %262, %263 : vector<32x256xi1>, vector<32x256xf32>
    %c1_179 = arith.constant 1 : index
    %c0_180 = arith.constant 0 : index
    %c0_181 = arith.constant 0 : index
    %267 = vector.load %arg8[%c1_179, %c0_180, %c0_181] : memref<3x4x96xf32, #tpu.memory_space<vmem>>, vector<1x4x96xf32>
    %268 = vector.shape_cast %267 : vector<1x4x96xf32> to vector<4x96xf32>
    %269 = tpu.concatenate %261, %256, %266 in 0 : vector<32x256xf32>, vector<32x256xf32>, vector<32x256xf32> -> vector<96x256xf32>
    %cst_182 = arith.constant dense<0.000000e+00> : vector<4x256xf32>
    %270 = tpu.matmul %268, %269, %cst_182 {dimension_numbers = #tpu.dot_dimension_numbers<[1], [0], [0], [1], [0, 0, 1, 1], [], []>} : vector<4x96xf32>, vector<96x256xf32>, vector<4x256xf32> -> vector<4x256xf32>
    %c16_i32_183 = arith.constant 16 : i32
    %271 = tpu.dynamic_rotate %261 by %c16_i32_183 dim 1 : vector<32x256xf32>, i32 -> vector<32x256xf32>
    %c16_i32_184 = arith.constant 16 : i32
    %272 = tpu.dynamic_rotate %256 by %c16_i32_184 dim 1 : vector<32x256xf32>, i32 -> vector<32x256xf32>
    %c16_i32_185 = arith.constant 16 : i32
    %273 = tpu.dynamic_rotate %266 by %c16_i32_185 dim 1 : vector<32x256xf32>, i32 -> vector<32x256xf32>
    %274 = tpu.concatenate %271, %272, %273 in 0 : vector<32x256xf32>, vector<32x256xf32>, vector<32x256xf32> -> vector<96x256xf32>
    %c0_186 = arith.constant 0 : index
    %c0_187 = arith.constant 0 : index
    %c0_188 = arith.constant 0 : index
    %275 = vector.load %arg8[%c0_186, %c0_187, %c0_188] : memref<3x4x96xf32, #tpu.memory_space<vmem>>, vector<1x4x96xf32>
    %276 = vector.shape_cast %275 : vector<1x4x96xf32> to vector<4x96xf32>
    %cst_189 = arith.constant dense<0.000000e+00> : vector<4x256xf32>
    %277 = tpu.matmul %276, %274, %cst_189 {dimension_numbers = #tpu.dot_dimension_numbers<[1], [0], [0], [1], [0, 0, 1, 1], [], []>} : vector<4x96xf32>, vector<96x256xf32>, vector<4x256xf32> -> vector<4x256xf32>
    %278 = arith.addf %270, %277 : vector<4x256xf32>
    %c240_i32_190 = arith.constant 240 : i32
    %279 = tpu.dynamic_rotate %261 by %c240_i32_190 dim 1 : vector<32x256xf32>, i32 -> vector<32x256xf32>
    %c240_i32_191 = arith.constant 240 : i32
    %280 = tpu.dynamic_rotate %256 by %c240_i32_191 dim 1 : vector<32x256xf32>, i32 -> vector<32x256xf32>
    %c240_i32_192 = arith.constant 240 : i32
    %281 = tpu.dynamic_rotate %266 by %c240_i32_192 dim 1 : vector<32x256xf32>, i32 -> vector<32x256xf32>
    %282 = tpu.concatenate %279, %280, %281 in 0 : vector<32x256xf32>, vector<32x256xf32>, vector<32x256xf32> -> vector<96x256xf32>
    %c2_193 = arith.constant 2 : index
    %c0_194 = arith.constant 0 : index
    %c0_195 = arith.constant 0 : index
    %283 = vector.load %arg8[%c2_193, %c0_194, %c0_195] : memref<3x4x96xf32, #tpu.memory_space<vmem>>, vector<1x4x96xf32>
    %284 = vector.shape_cast %283 : vector<1x4x96xf32> to vector<4x96xf32>
    %cst_196 = arith.constant dense<0.000000e+00> : vector<4x256xf32>
    %285 = tpu.matmul %284, %282, %cst_196 {dimension_numbers = #tpu.dot_dimension_numbers<[1], [0], [0], [1], [0, 0, 1, 1], [], []>} : vector<4x96xf32>, vector<96x256xf32>, vector<4x256xf32> -> vector<4x256xf32>
    %286 = arith.addf %278, %285 : vector<4x256xf32>
    %c0_197 = arith.constant 0 : index
    %c0_198 = arith.constant 0 : index
    %287 = vector.load %arg9[%c0_197, %c0_198] : memref<4x1xf32, #tpu.memory_space<vmem>>, vector<4x1xf32>
    %288 = vector.broadcast %287 : vector<4x1xf32> to vector<4x256xf32>
    %289 = arith.addf %286, %288 : vector<4x256xf32>
    %c1_199 = arith.constant 1 : index
    %c0_200 = arith.constant 0 : index
    %c0_201 = arith.constant 0 : index
    %290 = vector.load %arg10[%c1_199, %c0_200, %c0_201] : memref<2x4x256xf32, #tpu.memory_space<vmem>>, vector<1x4x256xf32>
    %291 = vector.shape_cast %290 : vector<1x4x256xf32> to vector<4x256xf32>
    %292 = vector.shape_cast %289 : vector<4x256xf32> to vector<1x4x256xf32>
    tpu.vector_store %arg10[%c1_199, %c0_200, %c0_201], %292 {strides = array<i32>} : memref<2x4x256xf32, #tpu.memory_space<vmem>>, vector<1x4x256xf32>,
    return
  }
  func.func @transform_0(%arg0: i32) -> (i32, i32, i32) {
    %c0_i32 = arith.constant 0 : i32
    %c0_i32_0 = arith.constant 0 : i32
    %c0_i32_1 = arith.constant 0 : i32
    return %arg0, %c0_i32, %c0_i32_0 : i32, i32, i32
  }
  func.func @transform_1(%arg0: i32) -> (i32, i32, i32) {
    %c0_i32 = arith.constant 0 : i32
    %c0_i32_0 = arith.constant 0 : i32
    %c0_i32_1 = arith.constant 0 : i32
    %c0_i32_2 = arith.constant 0 : i32
    return %c0_i32, %c0_i32_0, %c0_i32_1 : i32, i32, i32
  }
  func.func @transform_2(%arg0: i32) -> (i32, i32) {
    %c0_i32 = arith.constant 0 : i32
    %c0_i32_0 = arith.constant 0 : i32
    %c0_i32_1 = arith.constant 0 : i32
    return %c0_i32, %c0_i32_0 : i32, i32
  }
  func.func @transform_3(%arg0: i32) -> (i32, i32, i32) {
    %c0_i32 = arith.constant 0 : i32
    %c0_i32_0 = arith.constant 0 : i32
    %c0_i32_1 = arith.constant 0 : i32
    %c0_i32_2 = arith.constant 0 : i32
    return %c0_i32, %c0_i32_0, %c0_i32_1 : i32, i32, i32
  }
  func.func @transform_4(%arg0: i32) -> (i32, i32) {
    %c0_i32 = arith.constant 0 : i32
    %c0_i32_0 = arith.constant 0 : i32
    %c0_i32_1 = arith.constant 0 : i32
    return %c0_i32, %c0_i32_0 : i32, i32
  }
  func.func @transform_5(%arg0: i32) -> (i32, i32, i32) {
    %c0_i32 = arith.constant 0 : i32
    %c0_i32_0 = arith.constant 0 : i32
    %c0_i32_1 = arith.constant 0 : i32
    %c0_i32_2 = arith.constant 0 : i32
    return %c0_i32, %c0_i32_0, %c0_i32_1 : i32, i32, i32
  }
  func.func @transform_6(%arg0: i32) -> (i32, i32) {
    %c0_i32 = arith.constant 0 : i32
    %c0_i32_0 = arith.constant 0 : i32
    %c0_i32_1 = arith.constant 0 : i32
    return %c0_i32, %c0_i32_0 : i32, i32
  }
  func.func @transform_7(%arg0: i32) -> (i32, i32, i32) {
    %c0_i32 = arith.constant 0 : i32
    %c0_i32_0 = arith.constant 0 : i32
    %c0_i32_1 = arith.constant 0 : i32
    %c0_i32_2 = arith.constant 0 : i32
    return %c0_i32, %c0_i32_0, %c0_i32_1 : i32, i32, i32
  }
  func.func @transform_8(%arg0: i32) -> (i32, i32) {
    %c0_i32 = arith.constant 0 : i32
    %c0_i32_0 = arith.constant 0 : i32
    %c0_i32_1 = arith.constant 0 : i32
    return %c0_i32, %c0_i32_0 : i32, i32
  }
  func.func @transform_9(%arg0: i32) -> (i32, i32, i32) {
    %c0_i32 = arith.constant 0 : i32
    %c0_i32_0 = arith.constant 0 : i32
    %c0_i32_1 = arith.constant 0 : i32
    return %arg0, %c0_i32, %c0_i32_0 : i32, i32, i32
  }
}

</mosaic_0001>

<bundles_post_ra>
// kernel: tpu_custom_call.1
= control target key start
LH: loop header
LB: loop body
LE: loop exit
PB: predicated region body
PF: predicated region fallthrough
CT: control target
= control target key end

     0   :  { %14 = vsyncpa [#allocation3], 0  ;;  %s8186_s0 = inlined_call_operand.hbm [shape: f32[2,8,256], index: 0, kind: input, shape index: {}]   ;;  %s8187_s1 = inlined_call_operand.vmem [shape: f32[3,32,24], index: 1, kind: input, shape index: {}]   ;;  %s8188_s2 = inlined_call_operand.vmem [shape: f32[32,1], index: 2, kind: input, shape index: {}]   ;;  %s8189_s3 = inlined_call_operand.vmem [shape: f32[3,32,96], index: 3, kind: input, shape index: {}]   ;;  %s8190_s4 = inlined_call_operand.vmem [shape: f32[32,1], index: 4, kind: input, shape index: {}]   ;;  %s8191_s5 = inlined_call_operand.vmem [shape: f32[3,32,96], index: 5, kind: input, shape index: {}]   ;;  %s8192_s6 = inlined_call_operand.vmem [shape: f32[32,1], index: 6, kind: input, shape index: {}]   ;;  %s8193_s7 = inlined_call_operand.vmem [shape: f32[3,4,96], index: 7, kind: input, shape index: {}]   ;;  %s8194_s8 = inlined_call_operand.vmem [shape: f32[4,1], index: 8, kind: input, shape index: {}]   ;;  %s8195_s9 = inlined_call_operand.hbm [shape: f32[2,4,256], index: 9, kind: output, shape index: {}]  }
   0x1   :  { %15 = vsyncpa [#allocation4], 0  ;;  %s4614_s30 = smov [#allocation2]  }
   0x2   :  { %s21_s10 = sshll.u32 %s4614_s30, 4  ;;  %s22_s10 = int_to_ptr.vmem [resolvable:$true] %s21_s10 }
   0x3   :  { %s4578_s11 = scalar_lea.vmem %s22_s10, 512  ;;  %p4583_p1 = scmp.lt.s32.totalorder %s22_s10, %s22_s10 }
   0x4   :  { %p4579_p0 = scmp.ne.s32.totalorder %s22_s10, %s4578_s11  ;;  %p4584_p2 = scmp.lt.s32.totalorder %s4578_s11, %s4578_s11 }
   0x6   :  { %p4585_p3 = por %p4584_p2, %p4583_p1 }
   0x8   :  { %p4586_p4 = pnand %p4585_p3, %p4579_p0 }
   0xa   :  { %4589 = shalt.err (!%p4586_p4)
}
   0xb   :  { %s4615_s12 = smov 256   ;;  %s4616_s13 = smov 16  }
   0xc   :  { %27 = dma.hbm_to_vmem [thread:$0]  %s8186_s0, 512, %s22_s10, [#allocation3], %s4615_s12, %s4615_s12, %s4616_s13  }
   0xd   :  { %4610 = dma.done.wait [#allocation3], 512  }
   0xe   :  { %4611 = vsyncadd [#allocation3], 4294966784  ;;  %v4681_v0 = vld [vmem:[#allocation2] sm:$0xff]  ;;  %s4617_s16 = smov 127   ;;  %s4618_s17 = smov 15   ;;  %v57_v1 = vld [vmem:[#allocation2 + $0x8] sm:$0xff]  ;;  %v47_v2 = vlaneseq }
   0xf   :  { %85 = vrot.lane.b32.xlu1 %v4681_v0, %s4617_s16  ;;  %78 = vrot.lane.b32.xlu0 %v4681_v0, %s4618_s17  ;;  %s4619_s18 = smov 113   ;;  %s4620_s0 = smov 1   ;;  %v4621_v17 = vmov 0.0   ;;  %vm126_vm8 = vcmask 195584   ;;  %v4425_v32 = vld [vmem:[%s8187_s1 + $0x20] sm:$0xff]  ;;  %v4426_v33 = vld [vmem:[%s8187_s1 + $0x28] sm:$0xff] }
  0x10   :  { %v4698_v3 = vand.u32 127, %v47_v2  ;;  %203 = vmatprep.mubr.f32.mxu0 %v4621_v17  ;;  %304 = vmatprep.mubr.f32.mxu1 %v4621_v17  ;;  %s4622_s21 = smov 112   ;;  %v4427_v34 = vld [vmem:[%s8187_s1 + $0x30] sm:$0xff]  ;;  %v4428_v35 = vld [vmem:[%s8187_s1 + $0x38] sm:$0xff]  ;;  %v4623_v38 = vmov 0   ;;  %v462_v39 = vld [vmem:[%s8188_s2] sm:$0xff] }
  0x11   :  { %v465_v36 = vld [vmem:[%s8188_s2 + $0x18] sm:$0xff]  ;;  %v464_v37 = vld [vmem:[%s8188_s2 + $0x10] sm:$0xff]  ;;  %4568 = vset.pattern.permute.xlu0 %v4623_v38  ;;  %4569 = vset.pattern.permute.xlu1 %v4623_v38  ;;  %v463_v40 = vld [vmem:[%s8188_s2 + $0x8] sm:$0xff]  ;;  %vm695_vm11 = vcmask 785408  }
  0x12   :  { %v49_v4 = vadd.s32 128, %v4698_v3  ;;  %v50_v5 = vand.u32 15, %v4698_v3  ;;  %vm89_vm0 = vcmp.lt.s32.totalorder %v4698_v3, 127  ;;  %vm82_vm1 = vcmp.lt.s32.totalorder %v4698_v3, 15  ;;  %v122_v53 = vld [vmem:[%s8187_s1] sm:$0xff]  ;;  %v123_v56 = vld [vmem:[%s8187_s1 + $0x8] sm:$0xff] }
  0x13   :  { %87 = vrot.lane.b32.xlu1 %v57_v1, %s4617_s16  ;;  %80 = vrot.lane.b32.xlu0 %v57_v1, %s4618_s17  ;;  %vm62_vm4 = vcmp.lt.s32.totalorder %v4698_v3, 113  ;;  %vm69_vm5 = vcmp.lt.s32.totalorder %v4698_v3, 1  ;;  %vm107_vm9 = vcmp.lt.s32.totalorder %v4698_v3, 16  ;;  %vm333_vm10 = vcmp.lt.s32.totalorder %v4698_v3, 112  ;;  %v124_v61 = vld [vmem:[%s8187_s1 + $0x10] sm:$0xff] }
  0x14   :  { %v51_v6 = vand.u32 15, %v49_v4  ;;  %vm4704_vm2 = vcmp.eq.s32.totalorder %v50_v5, 15  ;;  %vm4731_vm6 = vcmp.eq.s32.totalorder %v50_v5, 0  ;;  %v125_v5 = vld [vmem:[%s8187_s1 + $0x18] sm:$0xff]  ;;  %v4550_v22 = vld [vmem:[%s8193_s7 + $0x4] sm:$0xf] }
  0x15   :  { %v2230_v23 = vld [vmem:[%s8194_s8] sm:$0xf] }
  0x16   :  { %vm4708_vm3 = vcmp.eq.s32.totalorder %v51_v6, 15  ;;  %vm4735_vm7 = vcmp.eq.s32.totalorder %v51_v6, 0  ;;  %v4437_v6 = vld [vmem:[%s8187_s1 + $0x40] sm:$0xff] }
  0x17   :  { %60 = vrot.lane.b32.xlu1 %v57_v1, %s4619_s18  ;;  %58 = vrot.lane.b32.xlu0 %v4681_v0, %s4619_s18 }
  0x1b   :  { %67 = vrot.lane.b32.xlu1 %v57_v1, %s4620_s0  ;;  %65 = vrot.lane.b32.xlu0 %v4681_v0, %s4620_s0 }
  0x1f   :  { %112 = vrot.lane.b32.xlu1 %v57_v1, %s4616_s13  ;;  %110 = vrot.lane.b32.xlu0 %v4681_v0, %s4616_s13 }
  0x81   :  { %v86_v7 = vpop.permute.xlu1 %85  ;;  %v79_v8 = vpop.permute.xlu0 %78 }
  0x85   :  { %v88_v11 = vpop.permute.xlu1 %87  ;;  %v81_v12 = vpop.permute.xlu0 %80 }
  0x86   :  { %v90_v13 = vsel %vm89_vm0, %v86_v7, %v88_v11  ;;  %v91_v14 = vsel %vm89_vm0, %v88_v11, %v86_v7  ;;  %v83_v15 = vsel %vm82_vm1, %v79_v8, %v81_v12  ;;  %v84_v16 = vsel %vm82_vm1, %v81_v12, %v79_v8  ;;  %v4438_v7 = vld [vmem:[%s8187_s1 + $0x48] sm:$0xff]  ;;  %v4439_v8 = vld [vmem:[%s8187_s1 + $0x50] sm:$0xff]  ;;  %v4440_v11 = vld [vmem:[%s8187_s1 + $0x58] sm:$0xff] }
  0x87   :  { %v96_v18 = vsel %vm4704_vm2, %v84_v16, %v90_v13  ;;  %v97_v19 = vsel %vm4708_vm3, %v83_v15, %v91_v14 }
  0x88   :  { %116 = vrot.lane.b32.xlu0 %v96_v18, %s4616_s13  ;;  %118 = vrot.lane.b32.xlu1 %v97_v19, %s4616_s13 }
  0x89   :  { %266 = vmatprep.subr.mxu1 %v97_v19  ;;  %v61_v20 = vpop.permute.xlu1 %60  ;;  %v59_v21 = vpop.permute.xlu0 %58 }
  0x8a   :  { %267 = vmatpush1.msra.mxu1 %v96_v18  ;;  %v63_v26 = vsel %vm62_vm4, %v59_v21, %v61_v20  ;;  %v64_v27 = vsel %vm62_vm4, %v61_v20, %v59_v21 }
  0x8b   :  { %268 = vmatprep.subr.mxu1 %v57_v1 }
  0x8c   :  { %269 = vmatpush1.msra.mxu1 %v4681_v0 }
  0x8d   :  { %v68_v24 = vpop.permute.xlu1 %67  ;;  %v66_v25 = vpop.permute.xlu0 %65 }
  0x8e   :  { %v70_v28 = vsel %vm69_vm5, %v66_v25, %v68_v24  ;;  %v71_v29 = vsel %vm69_vm5, %v68_v24, %v66_v25 }
  0x8f   :  { %v76_v30 = vsel %vm4731_vm6, %v63_v26, %v71_v29  ;;  %v77_v31 = vsel %vm4735_vm7, %v64_v27, %v70_v28 }
  0x90   :  { %103 = vrot.lane.b32.xlu0 %v76_v30, %s4616_s13  ;;  %105 = vrot.lane.b32.xlu1 %v77_v31, %s4616_s13 }
  0x91   :  { %270 = vmatprep.subr.mxu1 %v77_v31  ;;  %v113_v41 = vpop.permute.xlu1 %112  ;;  %v111_v42 = vpop.permute.xlu0 %110 }
  0x92   :  { %271 = vmatpush1.msra.mxu1 %v76_v30  ;;  %v114_v47 = vsel %vm107_vm9, %v111_v42, %v113_v41  ;;  %v115_v48 = vsel %vm107_vm9, %v113_v41, %v111_v42 }
  0x93   :  { %4433 = vmatmul.mubr.msk.f32.vlgmr.msra.gmra.mxu1 %vm126_vm8, %v4425_v32 }
  0x94   :  { %336 = vrot.lane.b32.xlu0 %v4681_v0, %s4622_s21  ;;  %338 = vrot.lane.b32.xlu1 %v57_v1, %s4622_s21 }
  0x95   :  { %310 = vmatprep.mubr.f32.mxu1 %v4621_v17 }
  0x97   :  { %4434 = vmatmul.mubr.msk.f32.gmra.mxu1 %vm126_vm8, %v4426_v33 }
  0x98   :  { %342 = vrot.lane.b32.xlu0 %v96_v18, %s4622_s21  ;;  %344 = vrot.lane.b32.xlu1 %v97_v19, %s4622_s21 }
  0x99   :  { %316 = vmatprep.mubr.f32.mxu1 %v4621_v17 }
  0x9b   :  { %4435 = vmatmul.mubr.msk.f32.gmra.mxu1 %vm126_vm8, %v4427_v34 }
  0x9c   :  { %329 = vrot.lane.b32.xlu0 %v76_v30, %s4622_s21  ;;  %331 = vrot.lane.b32.xlu1 %v77_v31, %s4622_s21 }
  0x9d   :  { %322 = vmatprep.mubr.f32.mxu1 %v4621_v17 }
  0x9f   :  { %4436 = vmatmul.mubr.msk.f32.gmra.mxu1 %vm126_vm8, %v4428_v35 }
  0xa0   :  { %772 = vmatprep.mubr.f32.mxu1 %v4621_v17  ;;  %483 = vperm.xlu0 %4568, %v465_v36  }
  0xa1   :  { %478 = vperm.xlu1 %4569, %v464_v37  }
  0xa4   :  { %468 = vperm.xlu0 %4568, %v462_v39  }
  0xa5   :  { %473 = vperm.xlu1 %4569, %v463_v40  }
  0xfa   :  { %v119_v43 = vpop.permute.xlu1 %118  ;;  %v117_v44 = vpop.permute.xlu0 %116 }
  0xfb   :  { %v120_v45 = vsel %vm107_vm9, %v117_v44, %v119_v43  ;;  %v121_v46 = vsel %vm107_vm9, %v119_v43, %v117_v44 }
  0xfc   :  { %165 = vmatprep.subr.mxu0 %v120_v45 }
  0xfd   :  { %166 = vmatpush1.msra.mxu0 %v121_v46 }
  0xfe   :  { %167 = vmatprep.subr.mxu0 %v114_v47 }
  0xff   :  { %168 = vmatpush1.msra.mxu0 %v115_v48 }
 0x102   :  { %v106_v49 = vpop.permute.xlu1 %105  ;;  %v104_v50 = vpop.permute.xlu0 %103 }
 0x103   :  { %v108_v51 = vsel %vm107_vm9, %v104_v50, %v106_v49  ;;  %v109_v52 = vsel %vm107_vm9, %v106_v49, %v104_v50 }
 0x104   :  { %169 = vmatprep.subr.mxu0 %v108_v51 }
 0x105   :  { %170 = vmatpush1.msra.mxu0 %v109_v52 }
 0x106   :  { %v339_v54 = vpop.permute.xlu1 %338  ;;  %4429 = vmatmul.mubr.msk.f32.vlgmr.msra.gmra.mxu0 %vm126_vm8, %v122_v53  ;;  %v337_v55 = vpop.permute.xlu0 %336 }
 0x107   :  { %209 = vmatprep.mubr.f32.mxu0 %v4621_v17  ;;  %v341_v62 = vsel %vm333_vm10, %v339_v54, %v337_v55  ;;  %v340_v1 = vsel %vm333_vm10, %v337_v55, %v339_v54 }
 0x10a   :  { %v345_v57 = vpop.permute.xlu1 %344  ;;  %4430 = vmatmul.mubr.msk.f32.gmra.mxu0 %vm126_vm8, %v123_v56  ;;  %v343_v58 = vpop.permute.xlu0 %342 }
 0x10b   :  { %v347_v59 = vsel %vm333_vm10, %v345_v57, %v343_v58  ;;  %215 = vmatprep.mubr.f32.mxu0 %v4621_v17  ;;  %v346_v60 = vsel %vm333_vm10, %v343_v58, %v345_v57 }
 0x10c   :  { %391 = vmatprep.subr.mxu0 %v347_v59 }
 0x10d   :  { %392 = vmatpush1.msra.mxu0 %v346_v60 }
 0x10e   :  { %v332_v63 = vpop.permute.xlu1 %331  ;;  %4431 = vmatmul.mubr.msk.f32.gmra.mxu0 %vm126_vm8, %v124_v61  ;;  %393 = vmatprep.subr.mxu0 %v341_v62  ;;  %v330_v0 = vpop.permute.xlu0 %329 }
 0x10f   :  { %394 = vmatpush1.msra.mxu0 %v340_v1  ;;  %v335_v2 = vsel %vm333_vm10, %v332_v63, %v330_v0  ;;  %221 = vmatprep.mubr.f32.mxu0 %v4621_v17  ;;  %v334_v4 = vsel %vm333_vm10, %v330_v0, %v332_v63 }
 0x110   :  { %395 = vmatprep.subr.mxu0 %v335_v2 }
 0x111   :  { %396 = vmatpush1.msra.mxu0 %v334_v4 }
 0x112   :  { %4432 = vmatmul.mubr.msk.f32.gmra.mxu0 %vm126_vm8, %v125_v5 }
 0x113   :  { %429 = vmatprep.mubr.f32.mxu0 %v4621_v17 }
 0x116   :  { %4441 = vmatmul.mubr.msk.f32.vlgmr.msra.gmra.mxu0 %vm126_vm8, %v4437_v6 }
 0x117   :  { %435 = vmatprep.mubr.f32.mxu0 %v4621_v17 }
 0x11a   :  { %4442 = vmatmul.mubr.msk.f32.gmra.mxu0 %vm126_vm8, %v4438_v7 }
 0x11b   :  { %441 = vmatprep.mubr.f32.mxu0 %v4621_v17  ;;  %v4858_v21 = vpop.permute.xlu0 %483 }
 0x11c   :  { %v479_v35 = vpop.permute.xlu1 %478 }
 0x11e   :  { %4443 = vmatmul.mubr.msk.f32.gmra.mxu0 %vm126_vm8, %v4439_v8 }
 0x11f   :  { %447 = vmatprep.mubr.f32.mxu0 %v4621_v17  ;;  %v469_v31 = vpop.permute.xlu0 %468 }
 0x120   :  { %v474_v45 = vpop.permute.xlu1 %473 }
 0x122   :  { %4444 = vmatmul.mubr.msk.f32.gmra.mxu0 %vm126_vm8, %v4440_v11 }
 0x123   :  { %873 = vmatprep.mubr.f32.mxu0 %v4621_v17 }
 0x153   :  { %v306_v18 = vpop.f32.mrf.mxu1 }
 0x155   :  { %v308_v24 = vpop.f32.mrf.mxu1 }
 0x157   :  { %v312_v29 = vpop.f32.mrf.mxu1 }
 0x159   :  { %v314_v39 = vpop.f32.mrf.mxu1 }
 0x15b   :  { %v318_v50 = vpop.f32.mrf.mxu1 }
 0x15d   :  { %v320_v53 = vpop.f32.mrf.mxu1 }
 0x15f   :  { %v324_v62 = vpop.f32.mrf.mxu1 }
 0x161   :  { %v326_v1 = vpop.f32.mrf.mxu1 }
 0x1c6   :  { %v205_v12 = vpop.f32.mrf.mxu0 }
 0x1c7   :  { %v307_v26 = vadd.f32 %v306_v18, %v205_v12 }
 0x1c8   :  { %v207_v13 = vpop.f32.mrf.mxu0 }
 0x1c9   :  { %v309_v28 = vadd.f32 %v308_v24, %v207_v13 }
 0x1ca   :  { %v211_v14 = vpop.f32.mrf.mxu0 }
 0x1cb   :  { %v313_v40 = vadd.f32 %v312_v29, %v211_v14 }
 0x1cc   :  { %v213_v15 = vpop.f32.mrf.mxu0 }
 0x1cd   :  { %v315_v43 = vadd.f32 %v314_v39, %v213_v15 }
 0x1ce   :  { %v217_v16 = vpop.f32.mrf.mxu0 }
 0x1cf   :  { %v319_v54 = vadd.f32 %v318_v50, %v217_v16 }
 0x1d0   :  { %v219_v19 = vpop.f32.mrf.mxu0 }
 0x1d1   :  { %v321_v56 = vadd.f32 %v320_v53, %v219_v19 }
 0x1d2   :  { %v223_v20 = vpop.f32.mrf.mxu0 }
 0x1d3   :  { %v325_v2 = vadd.f32 %v324_v62, %v223_v20 }
 0x1d4   :  { %v225_v25 = vpop.f32.mrf.mxu0 }
 0x1d5   :  { %v327_v5 = vadd.f32 %v326_v1, %v225_v25 }
 0x1d6   :  { %v431_v27 = vpop.f32.mrf.mxu0 }
 0x1d7   :  { %v454_v30 = vadd.f32 %v431_v27, %v307_v26 }
 0x1d8   :  { %v433_v32 = vpop.f32.mrf.mxu0 }
 0x1d9   :  { %v486_v33 = vadd.f32 %v469_v31, %v454_v30  ;;  %v455_v34 = vadd.f32 %v433_v32, %v309_v28 }
 0x1da   :  { %v437_v36 = vpop.f32.mrf.mxu0 }
 0x1db   :  { %v4860_v37 = vmax.f32 %v486_v33, 0.0  ;;  %v487_v38 = vadd.f32 %v469_v31, %v455_v34  ;;  %v456_v44 = vadd.f32 %v437_v36, %v313_v40 }
 0x1dc   :  { %v439_v42 = vpop.f32.mrf.mxu0 }
 0x1dd   :  { %v4862_v41 = vmax.f32 %v487_v38, 0.0  ;;  %558 = vrot.lane.b32.xlu1 %v4860_v37, %s4618_s17  ;;  %v457_v46 = vadd.f32 %v439_v42, %v315_v43  ;;  %v488_v47 = vadd.f32 %v474_v45, %v456_v44 }
 0x1de   :  { %v443_v52 = vpop.f32.mrf.mxu0 }
 0x1df   :  { %566 = vrot.lane.b32.xlu0 %v4862_v41, %s4618_s17  ;;  %v489_v48 = vadd.f32 %v474_v45, %v457_v46  ;;  %v4874_v49 = vmax.f32 %v488_v47, 0.0  ;;  %v458_v57 = vadd.f32 %v443_v52, %v319_v54 }
 0x1e0   :  { %v445_v55 = vpop.f32.mrf.mxu0 }
 0x1e1   :  { %582 = vrot.lane.b32.xlu1 %v4860_v37, %s4617_s16  ;;  %v4878_v51 = vmax.f32 %v489_v48, 0.0  ;;  %v459_v58 = vadd.f32 %v445_v55, %v321_v56  ;;  %v490_v59 = vadd.f32 %v479_v35, %v458_v57 }
 0x1e2   :  { %v449_v0 = vpop.f32.mrf.mxu0 }
 0x1e3   :  { %590 = vrot.lane.b32.xlu0 %v4862_v41, %s4617_s16  ;;  %v491_v60 = vadd.f32 %v479_v35, %v459_v58  ;;  %v4894_v61 = vmax.f32 %v490_v59, 0.0  ;;  %v460_v6 = vadd.f32 %v449_v0, %v325_v2 }
 0x1e4   :  { %v451_v4 = vpop.f32.mrf.mxu0 }
 0x1e5   :  { %502 = vrot.lane.b32.xlu1 %v4860_v37, %s4619_s18  ;;  %v4898_v63 = vmax.f32 %v491_v60, 0.0  ;;  %v461_v7 = vadd.f32 %v451_v4, %v327_v5  ;;  %v492_v8 = vadd.f32 %v4858_v21, %v460_v6 }
 0x1e7   :  { %510 = vrot.lane.b32.xlu0 %v4862_v41, %s4619_s18  ;;  %v493_v11 = vadd.f32 %v4858_v21, %v461_v7  ;;  %v4916_v12 = vmax.f32 %v492_v8, 0.0 }
 0x1e9   :  { %560 = vrot.lane.b32.xlu1 %v4874_v49, %s4618_s17  ;;  %v4920_v13 = vmax.f32 %v493_v11, 0.0 }
 0x1eb   :  { %568 = vrot.lane.b32.xlu0 %v4878_v51, %s4618_s17 }
 0x1ed   :  { %584 = vrot.lane.b32.xlu1 %v4874_v49, %s4617_s16 }
 0x1ef   :  { %592 = vrot.lane.b32.xlu0 %v4878_v51, %s4617_s16 }
 0x1f1   :  { %504 = vrot.lane.b32.xlu1 %v4874_v49, %s4619_s18 }
 0x1f3   :  { %512 = vrot.lane.b32.xlu0 %v4878_v51, %s4619_s18 }
 0x1f5   :  { %528 = vrot.lane.b32.xlu1 %v4874_v49, %s4620_s0 }
 0x1f7   :  { %536 = vrot.lane.b32.xlu0 %v4878_v51, %s4620_s0 }
 0x1f9   :  { %562 = vrot.lane.b32.xlu1 %v4894_v61, %s4618_s17 }
 0x1fb   :  { %570 = vrot.lane.b32.xlu0 %v4898_v63, %s4618_s17 }
 0x1fd   :  { %586 = vrot.lane.b32.xlu1 %v4894_v61, %s4617_s16 }
 0x1ff   :  { %594 = vrot.lane.b32.xlu0 %v4898_v63, %s4617_s16 }
 0x201   :  { %506 = vrot.lane.b32.xlu1 %v4894_v61, %s4619_s18 }
 0x203   :  { %514 = vrot.lane.b32.xlu0 %v4898_v63, %s4619_s18 }
 0x205   :  { %530 = vrot.lane.b32.xlu1 %v4894_v61, %s4620_s0 }
 0x207   :  { %538 = vrot.lane.b32.xlu0 %v4898_v63, %s4620_s0 }
 0x209   :  { %564 = vrot.lane.b32.xlu1 %v4916_v12, %s4618_s17 }
 0x20b   :  { %572 = vrot.lane.b32.xlu0 %v4920_v13, %s4618_s17 }
 0x20d   :  { %588 = vrot.lane.b32.xlu1 %v4916_v12, %s4617_s16 }
 0x20f   :  { %596 = vrot.lane.b32.xlu0 %v4920_v13, %s4617_s16 }
 0x211   :  { %526 = vrot.lane.b32.xlu1 %v4860_v37, %s4620_s0 }
 0x213   :  { %534 = vrot.lane.b32.xlu0 %v4862_v41, %s4620_s0 }
 0x215   :  { %508 = vrot.lane.b32.xlu1 %v4916_v12, %s4619_s18 }
 0x217   :  { %655 = vrot.lane.b32.xlu0 %v4898_v63, %s4616_s13 }
 0x219   :  { %532 = vrot.lane.b32.xlu1 %v4916_v12, %s4620_s0 }
 0x21b   :  { %516 = vrot.lane.b32.xlu0 %v4920_v13, %s4619_s18 }
 0x21d   :  { %649 = vrot.lane.b32.xlu1 %v4916_v12, %s4616_s13 }
 0x21f   :  { %540 = vrot.lane.b32.xlu0 %v4920_v13, %s4620_s0 }
 0x221   :  { %647 = vrot.lane.b32.xlu1 %v4894_v61, %s4616_s13 }
 0x223   :  { %653 = vrot.lane.b32.xlu0 %v4878_v51, %s4616_s13 }
 0x225   :  { %645 = vrot.lane.b32.xlu1 %v4874_v49, %s4616_s13 }
 0x227   :  { %651 = vrot.lane.b32.xlu0 %v4862_v41, %s4616_s13 }
 0x229   :  { %643 = vrot.lane.b32.xlu1 %v4860_v37, %s4616_s13 }
 0x22b   :  { %657 = vrot.lane.b32.xlu0 %v4920_v13, %s4616_s13 }
 0x24f   :  { %v559_v14 = vpop.permute.xlu1 %558 }
 0x251   :  { %v567_v15 = vpop.permute.xlu0 %566 }
 0x252   :  { %v574_v19 = vsel %vm82_vm1, %v559_v14, %v567_v15  ;;  %v578_v20 = vsel %vm82_vm1, %v567_v15, %v559_v14 }
 0x253   :  { %v583_v16 = vpop.permute.xlu1 %582 }
 0x255   :  { %v591_v18 = vpop.permute.xlu0 %590 }
 0x256   :  { %v598_v21 = vsel %vm89_vm0, %v583_v16, %v591_v18  ;;  %v602_v24 = vsel %vm89_vm0, %v591_v18, %v583_v16 }
 0x257   :  { %v503_v25 = vpop.permute.xlu1 %502  ;;  %v4968_v26 = vsel %vm4708_vm3, %v574_v19, %v602_v24  ;;  %v4972_v27 = vsel %vm4704_vm2, %v578_v20, %v598_v21 }
 0x258   :  { %675 = vrot.lane.b32.xlu0 %v4968_v26, %s4616_s13  ;;  %667 = vrot.lane.b32.xlu1 %v4972_v27, %s4616_s13 }
 0x259   :  { %v511_v28 = vpop.permute.xlu0 %510 }
 0x25a   :  { %v518_v62 = vsel %vm62_vm4, %v503_v25, %v511_v28  ;;  %v522_v2 = vsel %vm62_vm4, %v511_v28, %v503_v25 }
 0x25b   :  { %v561_v29 = vpop.permute.xlu1 %560 }
 0x25d   :  { %v569_v30 = vpop.permute.xlu0 %568 }
 0x25e   :  { %v575_v11 = vsel %vm82_vm1, %v561_v29, %v569_v30  ;;  %v579_v18 = vsel %vm82_vm1, %v569_v30, %v561_v29 }
 0x25f   :  { %v585_v31 = vpop.permute.xlu1 %584 }
 0x261   :  { %v593_v32 = vpop.permute.xlu0 %592 }
 0x262   :  { %v603_v0 = vsel %vm89_vm0, %v593_v32, %v585_v31  ;;  %v599_v4 = vsel %vm89_vm0, %v585_v31, %v593_v32 }
 0x263   :  { %v4978_v33 = vpop.permute.xlu1 %504  ;;  %v609_v19 = vsel %vm4708_vm3, %v575_v11, %v603_v0  ;;  %v608_v24 = vsel %vm4704_vm2, %v579_v18, %v599_v4 }
 0x265   :  { %v4980_v34 = vpop.permute.xlu0 %512 }
 0x266   :  { %v519_v32 = vsel %vm62_vm4, %v4978_v33, %v4980_v34 }
 0x267   :  { %v529_v35 = vpop.permute.xlu1 %528 }
 0x269   :  { %v537_v36 = vpop.permute.xlu0 %536 }
 0x26a   :  { %v547_v29 = vsel %vm69_vm5, %v537_v36, %v529_v35  ;;  %v543_v30 = vsel %vm69_vm5, %v529_v35, %v537_v36 }
 0x26b   :  { %v563_v38 = vpop.permute.xlu1 %562  ;;  %v5079_v35 = vsel %vm4731_vm6, %v519_v32, %v547_v29 }
 0x26d   :  { %v571_v39 = vpop.permute.xlu0 %570 }
 0x26e   :  { %v576_v1 = vsel %vm82_vm1, %v563_v38, %v571_v39  ;;  %v580_v5 = vsel %vm82_vm1, %v571_v39, %v563_v38  ;;  %v523_v38 = vsel %vm62_vm4, %v4980_v34, %v4978_v33 }
 0x26f   :  { %v587_v40 = vpop.permute.xlu1 %586  ;;  %v5086_v36 = vsel %vm4735_vm7, %v523_v38, %v543_v30 }
 0x271   :  { %v595_v42 = vpop.permute.xlu0 %594 }
 0x272   :  { %v604_v52 = vsel %vm89_vm0, %v595_v42, %v587_v40  ;;  %v600_v58 = vsel %vm89_vm0, %v587_v40, %v595_v42 }
 0x273   :  { %v4982_v43 = vpop.permute.xlu1 %506  ;;  %v5026_v8 = vsel %vm4708_vm3, %v576_v1, %v604_v52  ;;  %v610_v16 = vsel %vm4704_vm2, %v580_v5, %v600_v58 }
 0x275   :  { %v4984_v44 = vpop.permute.xlu0 %514 }
 0x277   :  { %v4986_v45 = vpop.permute.xlu1 %530 }
 0x279   :  { %v4988_v46 = vpop.permute.xlu0 %538 }
 0x27a   :  { %v544_v33 = vsel %vm69_vm5, %v4986_v45, %v4988_v46 }
 0x27b   :  { %v565_v47 = vpop.permute.xlu1 %564 }
 0x27d   :  { %v573_v48 = vpop.permute.xlu0 %572 }
 0x27e   :  { %v577_v54 = vsel %vm82_vm1, %v565_v47, %v573_v48  ;;  %v581_v55 = vsel %vm82_vm1, %v573_v48, %v565_v47 }
 0x27f   :  { %v589_v50 = vpop.permute.xlu1 %588 }
 0x281   :  { %v597_v53 = vpop.permute.xlu0 %596 }
 0x282   :  { %v601_v56 = vsel %vm89_vm0, %v589_v50, %v597_v53  ;;  %v605_v57 = vsel %vm89_vm0, %v597_v53, %v589_v50  ;;  %v548_v50 = vsel %vm69_vm5, %v4988_v46, %v4986_v45  ;;  %v520_v45 = vsel %vm62_vm4, %v4982_v43, %v4984_v44 }
 0x283   :  { %v5004_v59 = vsel %vm4708_vm3, %v577_v54, %v605_v57  ;;  %v5008_v60 = vsel %vm4704_vm2, %v581_v55, %v601_v56  ;;  %v527_v6 = vpop.permute.xlu1 %526  ;;  %v524_v54 = vsel %vm62_vm4, %v4984_v44, %v4982_v43  ;;  %v554_v55 = vsel %vm4731_vm6, %v520_v45, %v548_v50  ;;  %v4445_v43 = vld [vmem:[%s8189_s3 + $0x20] sm:$0xff] }
 0x284   :  { %817 = vmatprep.subr.mxu0 %v5004_v59  ;;  %v555_v46 = vsel %vm4735_vm7, %v524_v54, %v544_v33 }
 0x285   :  { %v535_v7 = vpop.permute.xlu0 %534  ;;  %818 = vmatpush1.msra.mxu0 %v5008_v60 }
 0x286   :  { %v542_v14 = vsel %vm69_vm5, %v527_v6, %v535_v7  ;;  %v546_v15 = vsel %vm69_vm5, %v535_v7, %v527_v6  ;;  %819 = vmatprep.subr.mxu0 %v5026_v8 }
 0x287   :  { %820 = vmatpush1.msra.mxu0 %v610_v16  ;;  %v5043_v20 = vsel %vm4731_vm6, %v518_v62, %v546_v15  ;;  %v5047_v21 = vsel %vm4735_vm7, %v522_v2, %v542_v14  ;;  %v509_v28 = vpop.permute.xlu1 %508 }
 0x288   :  { %821 = vmatprep.subr.mxu0 %v609_v19  ;;  %619 = vrot.lane.b32.xlu1 %v5043_v20, %s4616_s13 }
 0x289   :  { %627 = vrot.lane.b32.xlu0 %v5047_v21, %s4616_s13  ;;  %v5055_v25 = vpop.permute.xlu0 %655  ;;  %822 = vmatpush1.msra.mxu0 %v608_v24 }
 0x28a   :  { %823 = vmatprep.subr.mxu0 %v4968_v26 }
 0x28b   :  { %824 = vmatpush1.msra.mxu0 %v4972_v27  ;;  %v533_v34 = vpop.permute.xlu1 %532 }
 0x28c   :  { %825 = vmatprep.subr.mxu0 %v4920_v13  ;;  %669 = vrot.lane.b32.xlu1 %v608_v24, %s4616_s13 }
 0x28d   :  { %677 = vrot.lane.b32.xlu0 %v609_v19, %s4616_s13  ;;  %v517_v31 = vpop.permute.xlu0 %516  ;;  %826 = vmatpush1.msra.mxu0 %v4916_v12 }
 0x28e   :  { %827 = vmatprep.subr.mxu0 %v4898_v63  ;;  %v521_v40 = vsel %vm62_vm4, %v509_v28, %v517_v31  ;;  %v525_v42 = vsel %vm62_vm4, %v517_v31, %v509_v28 }
 0x28f   :  { %828 = vmatpush1.msra.mxu0 %v4894_v61 }
 0x290   :  { %829 = vmatprep.subr.mxu0 %v4878_v51  ;;  %621 = vrot.lane.b32.xlu1 %v5079_v35, %s4616_s13 }
 0x291   :  { %629 = vrot.lane.b32.xlu0 %v5086_v36, %s4616_s13  ;;  %v541_v39 = vpop.permute.xlu0 %540  ;;  %830 = vmatpush1.msra.mxu0 %v4874_v49 }
 0x292   :  { %v545_v47 = vsel %vm69_vm5, %v533_v34, %v541_v39  ;;  %v549_v48 = vsel %vm69_vm5, %v541_v39, %v533_v34  ;;  %831 = vmatprep.subr.mxu0 %v4862_v41 }
 0x293   :  { %832 = vmatpush1.msra.mxu0 %v4860_v37  ;;  %v557_v52 = vsel %vm4735_vm7, %v525_v42, %v545_v47  ;;  %v556_v53 = vsel %vm4731_vm6, %v521_v40, %v549_v48 }
 0x294   :  { %671 = vrot.lane.b32.xlu1 %v610_v16, %s4616_s13  ;;  %833 = vmatprep.subr.mxu0 %v557_v52 }
 0x295   :  { %679 = vrot.lane.b32.xlu0 %v5026_v8, %s4616_s13  ;;  %834 = vmatpush1.msra.mxu0 %v556_v53 }
 0x296   :  { %835 = vmatprep.subr.mxu0 %v555_v46 }
 0x297   :  { %836 = vmatpush1.msra.mxu0 %v554_v55 }
 0x298   :  { %623 = vrot.lane.b32.xlu1 %v554_v55, %s4616_s13  ;;  %837 = vmatprep.subr.mxu0 %v5086_v36 }
 0x299   :  { %631 = vrot.lane.b32.xlu0 %v555_v46, %s4616_s13  ;;  %838 = vmatpush1.msra.mxu0 %v5079_v35 }
 0x29a   :  { %839 = vmatprep.subr.mxu0 %v5047_v21 }
 0x29b   :  { %840 = vmatpush1.msra.mxu0 %v5043_v20 }
 0x29c   :  { %950 = vrot.lane.b32.xlu1 %v610_v16, %s4622_s21  ;;  %4453 = vmatmul.mubr.msk.f32.vlgmr.msra.gmra.mxu0 %vm695_vm11, %v4445_v43 }
 0x29d   :  { %958 = vrot.lane.b32.xlu0 %v5026_v8, %s4622_s21  ;;  %879 = vmatprep.mubr.f32.mxu0 %v4621_v17 }
 0x2a0   :  { %673 = vrot.lane.b32.xlu1 %v5008_v60, %s4616_s13 }
 0x2a1   :  { %681 = vrot.lane.b32.xlu0 %v5004_v59, %s4616_s13 }
 0x2a4   :  { %948 = vrot.lane.b32.xlu1 %v608_v24, %s4622_s21 }
 0x2a5   :  { %956 = vrot.lane.b32.xlu0 %v609_v19, %s4622_s21 }
 0x2a8   :  { %946 = vrot.lane.b32.xlu1 %v4972_v27, %s4622_s21  ;;  %v654_v27 = vpop.permute.xlu0 %653 }
 0x2a9   :  { %954 = vrot.lane.b32.xlu0 %v4968_v26, %s4622_s21 }
 0x2ac   :  { %928 = vrot.lane.b32.xlu1 %v4916_v12, %s4622_s21  ;;  %v4446_v12 = vld [vmem:[%s8189_s3 + $0x28] sm:$0xff]  ;;  %v652_v56 = vpop.permute.xlu0 %651 }
 0x2ad   :  { %936 = vrot.lane.b32.xlu0 %v4920_v13, %s4622_s21  ;;  %4454 = vmatmul.mubr.msk.f32.gmra.mxu0 %vm695_vm11, %v4446_v12  ;;  %v650_v13 = vpop.permute.xlu1 %649 }
 0x2ae   :  { %885 = vmatprep.mubr.f32.mxu0 %v4621_v17 }
 0x2b0   :  { %625 = vrot.lane.b32.xlu1 %v556_v53, %s4616_s13  ;;  %v658_v58 = vpop.permute.xlu0 %657 }
 0x2b1   :  { %633 = vrot.lane.b32.xlu0 %v557_v52, %s4616_s13  ;;  %v648_v26 = vpop.permute.xlu1 %647  ;;  %v662_v33 = vsel %vm107_vm9, %v650_v13, %v658_v58  ;;  %v666_v34 = vsel %vm107_vm9, %v658_v58, %v650_v13  ;;  %v692_v58 = vld [vmem:[%s8189_s3 + $0x8] sm:$0xff] }
 0x2b2   :  { %v661_v39 = vsel %vm107_vm9, %v648_v26, %v5055_v25  ;;  %v665_v47 = vsel %vm107_vm9, %v5055_v25, %v648_v26 }
 0x2b4   :  { %926 = vrot.lane.b32.xlu1 %v4894_v61, %s4622_s21  ;;  %v4447_v61 = vld [vmem:[%s8189_s3 + $0x30] sm:$0xff] }
 0x2b5   :  { %934 = vrot.lane.b32.xlu0 %v4898_v63, %s4622_s21  ;;  %4455 = vmatmul.mubr.msk.f32.gmra.mxu0 %vm695_vm11, %v4447_v61  ;;  %v4448_v63 = vld [vmem:[%s8189_s3 + $0x38] sm:$0xff]  ;;  %v646_v44 = vpop.permute.xlu1 %645 }
 0x2b6   :  { %891 = vmatprep.mubr.f32.mxu0 %v4621_v17  ;;  %v660_v48 = vsel %vm107_vm9, %v646_v44, %v654_v27  ;;  %v664_v50 = vsel %vm107_vm9, %v654_v27, %v646_v44 }
 0x2b8   :  { %952 = vrot.lane.b32.xlu1 %v5008_v60, %s4622_s21 }
 0x2b9   :  { %960 = vrot.lane.b32.xlu0 %v5004_v59, %s4622_s21  ;;  %4456 = vmatmul.mubr.msk.f32.gmra.mxu0 %vm695_vm11, %v4448_v63  ;;  %v644_v57 = vpop.permute.xlu1 %643 }
 0x2ba   :  { %1393 = vmatprep.mubr.f32.mxu0 %v4621_v17  ;;  %v663_v45 = vsel %vm107_vm9, %v652_v56, %v644_v57 }
 0x2bc   :  { %924 = vrot.lane.b32.xlu1 %v4874_v49, %s4622_s21  ;;  %v1085_v49 = vld [vmem:[%s8190_s4 + $0x8] sm:$0xff] }
 0x2bd   :  { %932 = vrot.lane.b32.xlu0 %v4878_v51, %s4622_s21  ;;  %v1084_v51 = vld [vmem:[%s8190_s4] sm:$0xff] }
 0x2c0   :  { %922 = vrot.lane.b32.xlu1 %v4860_v37, %s4622_s21  ;;  %v1087_v37 = vld [vmem:[%s8190_s4 + $0x18] sm:$0xff] }
 0x2c1   :  { %930 = vrot.lane.b32.xlu0 %v4862_v41, %s4622_s21  ;;  %v1086_v41 = vld [vmem:[%s8190_s4 + $0x10] sm:$0xff] }
 0x2c4   :  { %902 = vrot.lane.b32.xlu1 %v554_v55, %s4622_s21 }
 0x2c5   :  { %910 = vrot.lane.b32.xlu0 %v555_v46, %s4622_s21 }
 0x2c8   :  { %904 = vrot.lane.b32.xlu1 %v556_v53, %s4622_s21 }
 0x2c9   :  { %912 = vrot.lane.b32.xlu0 %v557_v52, %s4622_s21  ;;  %v659_v52 = vsel %vm107_vm9, %v644_v57, %v652_v56 }
 0x2ca   :  { %v668_v59 = vpop.permute.xlu1 %667  ;;  %v676_v60 = vpop.permute.xlu0 %675 }
 0x2cb   :  { %v683_v32 = vsel %vm107_vm9, %v668_v59, %v676_v60 }
 0x2cc   :  { %900 = vrot.lane.b32.xlu1 %v5079_v35, %s4622_s21 }
 0x2cd   :  { %908 = vrot.lane.b32.xlu0 %v5086_v36, %s4622_s21  ;;  %v687_v36 = vsel %vm107_vm9, %v676_v60, %v668_v59 }
 0x2d0   :  { %898 = vrot.lane.b32.xlu1 %v5043_v20, %s4622_s21 }
 0x2d1   :  { %906 = vrot.lane.b32.xlu0 %v5047_v21, %s4622_s21 }
 0x2d4   :  { %1105 = vperm.xlu1 %4569, %v1087_v37  }
 0x2d5   :  { %1100 = vperm.xlu0 %4568, %v1086_v41  }
 0x2d8   :  { %1095 = vperm.xlu1 %4569, %v1085_v49  }
 0x2d9   :  { %1090 = vperm.xlu0 %4568, %v1084_v51   ;;  %v691_v51 = vld [vmem:[%s8189_s3] sm:$0xff] }
 0x2fa   :  { %v5213_v62 = vpop.permute.xlu1 %619 }
 0x2fb   :  { %v5215_v0 = vpop.permute.xlu0 %627 }
 0x2fc   :  { %v635_v41 = vsel %vm107_vm9, %v5213_v62, %v5215_v0  ;;  %v639_v26 = vsel %vm107_vm9, %v5215_v0, %v5213_v62 }
 0x2fe   :  { %v670_v1 = vpop.permute.xlu1 %669 }
 0x2ff   :  { %v678_v2 = vpop.permute.xlu0 %677 }
 0x300   :  { %v684_v30 = vsel %vm107_vm9, %v670_v1, %v678_v2  ;;  %v688_v31 = vsel %vm107_vm9, %v678_v2, %v670_v1 }
 0x302   :  { %v5217_v4 = vpop.permute.xlu1 %621 }
 0x303   :  { %v630_v5 = vpop.permute.xlu0 %629 }
 0x304   :  { %v636_v63 = vsel %vm107_vm9, %v5217_v4, %v630_v5  ;;  %v640_v37 = vsel %vm107_vm9, %v630_v5, %v5217_v4  ;;  %v693_v4 = vld [vmem:[%s8189_s3 + $0x10] sm:$0xff] }
 0x306   :  { %v672_v6 = vpop.permute.xlu1 %671 }
 0x307   :  { %v680_v7 = vpop.permute.xlu0 %679 }
 0x308   :  { %v685_v21 = vsel %vm107_vm9, %v672_v6, %v680_v7  ;;  %v689_v29 = vsel %vm107_vm9, %v680_v7, %v672_v6 }
 0x30a   :  { %v624_v8 = vpop.permute.xlu1 %623 }
 0x30b   :  { %v632_v11 = vpop.permute.xlu0 %631 }
 0x30c   :  { %v637_v55 = vsel %vm107_vm9, %v624_v8, %v632_v11  ;;  %v641_v61 = vsel %vm107_vm9, %v632_v11, %v624_v8 }
 0x30e   :  { %v5219_v14 = vpop.permute.xlu1 %950 }
 0x30f   :  { %v5221_v15 = vpop.permute.xlu0 %958 }
 0x310   :  { %v968_v56 = vsel %vm333_vm10, %v5221_v15, %v5219_v14  ;;  %v964_v60 = vsel %vm333_vm10, %v5219_v14, %v5221_v15  ;;  %v694_v15 = vld [vmem:[%s8189_s3 + $0x18] sm:$0xff] }
 0x312   :  { %v674_v16 = vpop.permute.xlu1 %673 }
 0x313   :  { %v682_v18 = vpop.permute.xlu0 %681 }
 0x314   :  { %v686_v19 = vsel %vm107_vm9, %v674_v16, %v682_v18  ;;  %v690_v20 = vsel %vm107_vm9, %v682_v18, %v674_v16 }
 0x315   :  { %716 = vmatprep.subr.mxu1 %v686_v19 }
 0x316   :  { %717 = vmatpush1.msra.mxu1 %v690_v20  ;;  %v5229_v24 = vpop.permute.xlu1 %948 }
 0x317   :  { %v5231_v28 = vpop.permute.xlu0 %956  ;;  %718 = vmatprep.subr.mxu1 %v685_v21 }
 0x318   :  { %719 = vmatpush1.msra.mxu1 %v689_v29  ;;  %v967_v62 = vsel %vm333_vm10, %v5231_v28, %v5229_v24  ;;  %v963_v0 = vsel %vm333_vm10, %v5229_v24, %v5231_v28 }
 0x319   :  { %720 = vmatprep.subr.mxu1 %v684_v30 }
 0x31a   :  { %721 = vmatpush1.msra.mxu1 %v688_v31  ;;  %v5241_v38 = vpop.permute.xlu1 %946 }
 0x31b   :  { %v5243_v35 = vpop.permute.xlu0 %954  ;;  %722 = vmatprep.subr.mxu1 %v683_v32 }
 0x31c   :  { %723 = vmatpush1.msra.mxu1 %v687_v36  ;;  %v966_v1 = vsel %vm333_vm10, %v5243_v35, %v5241_v38  ;;  %v962_v6 = vsel %vm333_vm10, %v5241_v38, %v5243_v35 }
 0x31d   :  { %724 = vmatprep.subr.mxu1 %v662_v33 }
 0x31e   :  { %725 = vmatpush1.msra.mxu1 %v666_v34  ;;  %v5254_v40 = vpop.permute.xlu1 %928 }
 0x31f   :  { %v5256_v42 = vpop.permute.xlu0 %936  ;;  %726 = vmatprep.subr.mxu1 %v661_v39 }
 0x320   :  { %727 = vmatpush1.msra.mxu1 %v665_v47  ;;  %v945_v7 = vsel %vm333_vm10, %v5256_v42, %v5254_v40  ;;  %v941_v8 = vsel %vm333_vm10, %v5254_v40, %v5256_v42 }
 0x321   :  { %728 = vmatprep.subr.mxu1 %v660_v48  ;;  %v4457_v48 = vld [vmem:[%s8189_s3 + $0x40] sm:$0xff] }
 0x322   :  { %729 = vmatpush1.msra.mxu1 %v664_v50  ;;  %v626_v53 = vpop.permute.xlu1 %625  ;;  %v4458_v50 = vld [vmem:[%s8189_s3 + $0x48] sm:$0xff] }
 0x323   :  { %v634_v54 = vpop.permute.xlu0 %633  ;;  %730 = vmatprep.subr.mxu1 %v659_v52  ;;  %v4459_v52 = vld [vmem:[%s8189_s3 + $0x50] sm:$0xff] }
 0x324   :  { %731 = vmatpush1.msra.mxu1 %v663_v45  ;;  %v638_v25 = vsel %vm107_vm9, %v626_v53, %v634_v54  ;;  %v642_v46 = vsel %vm107_vm9, %v634_v54, %v626_v53  ;;  %v4460_v53 = vld [vmem:[%s8189_s3 + $0x58] sm:$0xff] }
 0x325   :  { %732 = vmatprep.subr.mxu1 %v638_v25 }
 0x326   :  { %733 = vmatpush1.msra.mxu1 %v642_v46  ;;  %v927_v43 = vpop.permute.xlu1 %926 }
 0x327   :  { %v935_v12 = vpop.permute.xlu0 %934  ;;  %734 = vmatprep.subr.mxu1 %v637_v55 }
 0x328   :  { %735 = vmatpush1.msra.mxu1 %v641_v61  ;;  %v944_v11 = vsel %vm333_vm10, %v935_v12, %v927_v43  ;;  %v940_v18 = vsel %vm333_vm10, %v927_v43, %v935_v12 }
 0x329   :  { %736 = vmatprep.subr.mxu1 %v636_v63 }
 0x32a   :  { %737 = vmatpush1.msra.mxu1 %v640_v37  ;;  %v953_v49 = vpop.permute.xlu1 %952 }
 0x32b   :  { %v961_v13 = vpop.permute.xlu0 %960  ;;  %738 = vmatprep.subr.mxu1 %v635_v41 }
 0x32c   :  { %739 = vmatpush1.msra.mxu1 %v639_v26  ;;  %v969_v27 = vsel %vm333_vm10, %v961_v13, %v953_v49  ;;  %v965_v44 = vsel %vm333_vm10, %v953_v49, %v961_v13 }
 0x32d   :  { %995 = vmatprep.subr.mxu1 %v969_v27  ;;  %4449 = vmatmul.mubr.msk.f32.vlgmr.msra.gmra.mxu1 %vm695_vm11, %v691_v51 }
 0x32e   :  { %996 = vmatpush1.msra.mxu1 %v965_v44  ;;  %v925_v57 = vpop.permute.xlu1 %924  ;;  %778 = vmatprep.mubr.f32.mxu1 %v4621_v17 }
 0x32f   :  { %v933_v59 = vpop.permute.xlu0 %932  ;;  %997 = vmatprep.subr.mxu1 %v968_v56 }
 0x330   :  { %998 = vmatpush1.msra.mxu1 %v964_v60  ;;  %v943_v19 = vsel %vm333_vm10, %v933_v59, %v925_v57  ;;  %v939_v20 = vsel %vm333_vm10, %v925_v57, %v933_v59 }
 0x331   :  { %999 = vmatprep.subr.mxu1 %v967_v62  ;;  %4450 = vmatmul.mubr.msk.f32.gmra.mxu1 %vm695_vm11, %v692_v58 }
 0x332   :  { %1000 = vmatpush1.msra.mxu1 %v963_v0  ;;  %v923_v2 = vpop.permute.xlu1 %922  ;;  %784 = vmatprep.mubr.f32.mxu1 %v4621_v17 }
 0x333   :  { %v931_v5 = vpop.permute.xlu0 %930  ;;  %1001 = vmatprep.subr.mxu1 %v966_v1 }
 0x334   :  { %1002 = vmatpush1.msra.mxu1 %v962_v6  ;;  %v942_v21 = vsel %vm333_vm10, %v931_v5, %v923_v2  ;;  %v938_v29 = vsel %vm333_vm10, %v923_v2, %v931_v5 }
 0x335   :  { %1003 = vmatprep.subr.mxu1 %v945_v7  ;;  %4451 = vmatmul.mubr.msk.f32.gmra.mxu1 %vm695_vm11, %v693_v4 }
 0x336   :  { %1004 = vmatpush1.msra.mxu1 %v941_v8  ;;  %v903_v14 = vpop.permute.xlu1 %902  ;;  %790 = vmatprep.mubr.f32.mxu1 %v4621_v17 }
 0x337   :  { %v911_v16 = vpop.permute.xlu0 %910  ;;  %1005 = vmatprep.subr.mxu1 %v944_v11 }
 0x338   :  { %1006 = vmatpush1.msra.mxu1 %v940_v18  ;;  %v920_v32 = vsel %vm333_vm10, %v911_v16, %v903_v14  ;;  %v916_v36 = vsel %vm333_vm10, %v903_v14, %v911_v16 }
 0x339   :  { %1007 = vmatprep.subr.mxu1 %v943_v19  ;;  %4452 = vmatmul.mubr.msk.f32.gmra.mxu1 %vm695_vm11, %v694_v15 }
 0x33a   :  { %1008 = vmatpush1.msra.mxu1 %v939_v20  ;;  %v905_v24 = vpop.permute.xlu1 %904  ;;  %1051 = vmatprep.mubr.f32.mxu1 %v4621_v17 }
 0x33b   :  { %v913_v28 = vpop.permute.xlu0 %912  ;;  %1009 = vmatprep.subr.mxu1 %v942_v21 }
 0x33c   :  { %1010 = vmatpush1.msra.mxu1 %v938_v29  ;;  %v921_v30 = vsel %vm333_vm10, %v913_v28, %v905_v24  ;;  %v917_v31 = vsel %vm333_vm10, %v905_v24, %v913_v28 }
 0x33d   :  { %1011 = vmatprep.subr.mxu1 %v921_v30 }
 0x33e   :  { %1012 = vmatpush1.msra.mxu1 %v917_v31  ;;  %v901_v38 = vpop.permute.xlu1 %900 }
 0x33f   :  { %v909_v35 = vpop.permute.xlu0 %908  ;;  %1013 = vmatprep.subr.mxu1 %v920_v32 }
 0x340   :  { %1014 = vmatpush1.msra.mxu1 %v916_v36  ;;  %v919_v33 = vsel %vm333_vm10, %v909_v35, %v901_v38  ;;  %v915_v34 = vsel %vm333_vm10, %v901_v38, %v909_v35 }
 0x341   :  { %1015 = vmatprep.subr.mxu1 %v919_v33 }
 0x342   :  { %1016 = vmatpush1.msra.mxu1 %v915_v34  ;;  %v899_v39 = vpop.permute.xlu1 %898 }
 0x343   :  { %v907_v40 = vpop.permute.xlu0 %906 }
 0x344   :  { %v918_v42 = vsel %vm333_vm10, %v907_v40, %v899_v39  ;;  %v914_v47 = vsel %vm333_vm10, %v899_v39, %v907_v40 }
 0x345   :  { %1017 = vmatprep.subr.mxu1 %v918_v42 }
 0x346   :  { %1018 = vmatpush1.msra.mxu1 %v914_v47 }
 0x347   :  { %4461 = vmatmul.mubr.msk.f32.vlgmr.msra.gmra.mxu1 %vm695_vm11, %v4457_v48 }
 0x348   :  { %1057 = vmatprep.mubr.f32.mxu1 %v4621_v17 }
 0x34b   :  { %4462 = vmatmul.mubr.msk.f32.gmra.mxu1 %vm695_vm11, %v4458_v50 }
 0x34c   :  { %1063 = vmatprep.mubr.f32.mxu1 %v4621_v17 }
 0x34f   :  { %4463 = vmatmul.mubr.msk.f32.gmra.mxu1 %vm695_vm11, %v4459_v52  ;;  %v1106_v0 = vpop.permute.xlu1 %1105 }
 0x350   :  { %1069 = vmatprep.mubr.f32.mxu1 %v4621_v17  ;;  %v1101_v63 = vpop.permute.xlu0 %1100 }
 0x353   :  { %4464 = vmatmul.mubr.msk.f32.gmra.mxu1 %vm695_vm11, %v4460_v53  ;;  %v1096_v11 = vpop.permute.xlu1 %1095 }
 0x354   :  { %1494 = vmatprep.mubr.f32.mxu1 %v4621_v17  ;;  %v1091_v13 = vpop.permute.xlu0 %1090 }
 0x35c   :  { %v875_v12 = vpop.f32.mrf.mxu0 }
 0x35e   :  { %v877_v37 = vpop.f32.mrf.mxu0 }
 0x36d   :  { %v881_v44 = vpop.f32.mrf.mxu0 }
 0x36f   :  { %v883_v1 = vpop.f32.mrf.mxu0 }
 0x375   :  { %v887_v18 = vpop.f32.mrf.mxu0 }
 0x377   :  { %v889_v21 = vpop.f32.mrf.mxu0 }
 0x379   :  { %v893_v36 = vpop.f32.mrf.mxu0 }
 0x37b   :  { %v895_v39 = vpop.f32.mrf.mxu0 }
 0x3ed   :  { %v774_v54 = vpop.f32.mrf.mxu1 }
 0x3ee   :  { %v876_v49 = vadd.f32 %v875_v12, %v774_v54 }
 0x3ef   :  { %v776_v45 = vpop.f32.mrf.mxu1 }
 0x3f0   :  { %v878_v26 = vadd.f32 %v877_v37, %v776_v45 }
 0x3f1   :  { %v780_v25 = vpop.f32.mrf.mxu1 }
 0x3f2   :  { %v882_v2 = vadd.f32 %v881_v44, %v780_v25 }
 0x3f3   :  { %v782_v46 = vpop.f32.mrf.mxu1 }
 0x3f4   :  { %v884_v6 = vadd.f32 %v883_v1, %v782_v46 }
 0x3f5   :  { %v786_v55 = vpop.f32.mrf.mxu1 }
 0x3f6   :  { %v888_v24 = vadd.f32 %v887_v18, %v786_v55 }
 0x3f7   :  { %v788_v43 = vpop.f32.mrf.mxu1 }
 0x3f8   :  { %v890_v29 = vadd.f32 %v889_v21, %v788_v43 }
 0x3f9   :  { %v792_v61 = vpop.f32.mrf.mxu1 }
 0x3fa   :  { %v894_v40 = vadd.f32 %v893_v36, %v792_v61 }
 0x3fb   :  { %v794_v41 = vpop.f32.mrf.mxu1 }
 0x3fc   :  { %v896_v47 = vadd.f32 %v895_v39, %v794_v41 }
 0x407   :  { %v1053_v51 = vpop.f32.mrf.mxu1 }
 0x408   :  { %v1076_v27 = vadd.f32 %v1053_v51, %v876_v49 }
 0x409   :  { %v1055_v56 = vpop.f32.mrf.mxu1 }
 0x40a   :  { %v1108_v57 = vadd.f32 %v1091_v13, %v1076_v27  ;;  %v1077_v58 = vadd.f32 %v1055_v56, %v878_v26 }
 0x40b   :  { %v1059_v59 = vpop.f32.mrf.mxu1 }
 0x40c   :  { %v5395_v60 = vmax.f32 %v1108_v57, 0.0  ;;  %v1109_v62 = vadd.f32 %v1091_v13, %v1077_v58  ;;  %v1078_v7 = vadd.f32 %v1059_v59, %v882_v2 }
 0x40d   :  { %v1061_v5 = vpop.f32.mrf.mxu1 }
 0x40e   :  { %v5397_v4 = vmax.f32 %v1109_v62, 0.0  ;;  %1180 = vrot.lane.b32.xlu1 %v5395_v60, %s4618_s17  ;;  %v1079_v8 = vadd.f32 %v1061_v5, %v884_v6  ;;  %v1110_v14 = vadd.f32 %v1096_v11, %v1078_v7 }
 0x40f   :  { %v1065_v20 = vpop.f32.mrf.mxu1 }
 0x410   :  { %1188 = vrot.lane.b32.xlu0 %v5397_v4, %s4618_s17  ;;  %v1111_v15 = vadd.f32 %v1096_v11, %v1079_v8  ;;  %v5409_v16 = vmax.f32 %v1110_v14, 0.0  ;;  %v1080_v30 = vadd.f32 %v1065_v20, %v888_v24 }
 0x411   :  { %v1067_v28 = vpop.f32.mrf.mxu1 }
 0x412   :  { %1204 = vrot.lane.b32.xlu1 %v5395_v60, %s4617_s16  ;;  %v5413_v19 = vmax.f32 %v1111_v15, 0.0  ;;  %v1081_v31 = vadd.f32 %v1067_v28, %v890_v29  ;;  %v1112_v32 = vadd.f32 %v1101_v63, %v1080_v30 }
 0x413   :  { %v1071_v34 = vpop.f32.mrf.mxu1 }
 0x414   :  { %1212 = vrot.lane.b32.xlu0 %v5397_v4, %s4617_s16  ;;  %v1113_v38 = vadd.f32 %v1101_v63, %v1081_v31  ;;  %v5429_v35 = vmax.f32 %v1112_v32, 0.0  ;;  %v1082_v48 = vadd.f32 %v1071_v34, %v894_v40 }
 0x415   :  { %v1073_v42 = vpop.f32.mrf.mxu1 }
 0x416   :  { %1124 = vrot.lane.b32.xlu1 %v5395_v60, %s4619_s18  ;;  %v5433_v33 = vmax.f32 %v1113_v38, 0.0  ;;  %v1083_v50 = vadd.f32 %v1073_v42, %v896_v47  ;;  %v1114_v52 = vadd.f32 %v1106_v0, %v1082_v48 }
 0x418   :  { %1132 = vrot.lane.b32.xlu0 %v5397_v4, %s4619_s18  ;;  %v1115_v53 = vadd.f32 %v1106_v0, %v1083_v50  ;;  %v5449_v54 = vmax.f32 %v1114_v52, 0.0 }
 0x41a   :  { %1182 = vrot.lane.b32.xlu1 %v5409_v16, %s4618_s17  ;;  %v5453_v45 = vmax.f32 %v1115_v53, 0.0 }
 0x41c   :  { %1190 = vrot.lane.b32.xlu0 %v5413_v19, %s4618_s17 }
 0x41e   :  { %1206 = vrot.lane.b32.xlu1 %v5409_v16, %s4617_s16 }
 0x420   :  { %1214 = vrot.lane.b32.xlu0 %v5413_v19, %s4617_s16 }
 0x422   :  { %1126 = vrot.lane.b32.xlu1 %v5409_v16, %s4619_s18 }
 0x424   :  { %1134 = vrot.lane.b32.xlu0 %v5413_v19, %s4619_s18 }
 0x426   :  { %1150 = vrot.lane.b32.xlu1 %v5409_v16, %s4620_s0 }
 0x428   :  { %1158 = vrot.lane.b32.xlu0 %v5413_v19, %s4620_s0 }
 0x42a   :  { %1184 = vrot.lane.b32.xlu1 %v5429_v35, %s4618_s17 }
 0x42c   :  { %1192 = vrot.lane.b32.xlu0 %v5433_v33, %s4618_s17 }
 0x42e   :  { %1208 = vrot.lane.b32.xlu1 %v5429_v35, %s4617_s16 }
 0x430   :  { %1216 = vrot.lane.b32.xlu0 %v5433_v33, %s4617_s16 }
 0x432   :  { %1128 = vrot.lane.b32.xlu1 %v5429_v35, %s4619_s18 }
 0x434   :  { %1136 = vrot.lane.b32.xlu0 %v5433_v33, %s4619_s18 }
 0x436   :  { %1152 = vrot.lane.b32.xlu1 %v5429_v35, %s4620_s0 }
 0x438   :  { %1160 = vrot.lane.b32.xlu0 %v5433_v33, %s4620_s0 }
 0x43a   :  { %1186 = vrot.lane.b32.xlu1 %v5449_v54, %s4618_s17 }
 0x43c   :  { %1194 = vrot.lane.b32.xlu0 %v5453_v45, %s4618_s17 }
 0x43e   :  { %1210 = vrot.lane.b32.xlu1 %v5449_v54, %s4617_s16 }
 0x440   :  { %1218 = vrot.lane.b32.xlu0 %v5453_v45, %s4617_s16 }
 0x442   :  { %1148 = vrot.lane.b32.xlu1 %v5395_v60, %s4620_s0 }
 0x444   :  { %1156 = vrot.lane.b32.xlu0 %v5397_v4, %s4620_s0 }
 0x446   :  { %1130 = vrot.lane.b32.xlu1 %v5449_v54, %s4619_s18 }
 0x448   :  { %1277 = vrot.lane.b32.xlu0 %v5433_v33, %s4616_s13 }
 0x44a   :  { %1154 = vrot.lane.b32.xlu1 %v5449_v54, %s4620_s0 }
 0x44c   :  { %1138 = vrot.lane.b32.xlu0 %v5453_v45, %s4619_s18 }
 0x44e   :  { %1271 = vrot.lane.b32.xlu1 %v5449_v54, %s4616_s13 }
 0x450   :  { %1162 = vrot.lane.b32.xlu0 %v5453_v45, %s4620_s0 }
 0x452   :  { %1269 = vrot.lane.b32.xlu1 %v5429_v35, %s4616_s13 }
 0x454   :  { %1275 = vrot.lane.b32.xlu0 %v5413_v19, %s4616_s13 }
 0x456   :  { %1267 = vrot.lane.b32.xlu1 %v5409_v16, %s4616_s13 }
 0x458   :  { %1273 = vrot.lane.b32.xlu0 %v5397_v4, %s4616_s13 }
 0x45a   :  { %1265 = vrot.lane.b32.xlu1 %v5395_v60, %s4616_s13 }
 0x45c   :  { %1279 = vrot.lane.b32.xlu0 %v5453_v45, %s4616_s13 }
 0x480   :  { %v1181_v25 = vpop.permute.xlu1 %1180 }
 0x482   :  { %v1189_v46 = vpop.permute.xlu0 %1188 }
 0x483   :  { %v1196_v12 = vsel %vm82_vm1, %v1181_v25, %v1189_v46  ;;  %v1200_v61 = vsel %vm82_vm1, %v1189_v46, %v1181_v25 }
 0x484   :  { %v1205_v55 = vpop.permute.xlu1 %1204 }
 0x486   :  { %v1213_v43 = vpop.permute.xlu0 %1212 }
 0x487   :  { %v1220_v63 = vsel %vm89_vm0, %v1205_v55, %v1213_v43  ;;  %v1224_v37 = vsel %vm89_vm0, %v1213_v43, %v1205_v55 }
 0x488   :  { %v1125_v41 = vpop.permute.xlu1 %1124  ;;  %v5501_v49 = vsel %vm4708_vm3, %v1196_v12, %v1224_v37  ;;  %v5505_v51 = vsel %vm4704_vm2, %v1200_v61, %v1220_v63 }
 0x489   :  { %1297 = vrot.lane.b32.xlu0 %v5501_v49, %s4616_s13  ;;  %1289 = vrot.lane.b32.xlu1 %v5505_v51, %s4616_s13 }
 0x48a   :  { %v1133_v13 = vpop.permute.xlu0 %1132 }
 0x48b   :  { %v1140_v36 = vsel %vm62_vm4, %v1125_v41, %v1133_v13  ;;  %v1144_v40 = vsel %vm62_vm4, %v1133_v13, %v1125_v41 }
 0x48c   :  { %v1183_v26 = vpop.permute.xlu1 %1182 }
 0x48e   :  { %v1191_v27 = vpop.permute.xlu0 %1190 }
 0x48f   :  { %v1197_v53 = vsel %vm82_vm1, %v1183_v26, %v1191_v27  ;;  %v1201_v43 = vsel %vm82_vm1, %v1191_v27, %v1183_v26 }
 0x490   :  { %v1207_v44 = vpop.permute.xlu1 %1206 }
 0x492   :  { %v1215_v56 = vpop.permute.xlu0 %1214 }
 0x493   :  { %v1225_v34 = vsel %vm89_vm0, %v1215_v56, %v1207_v44  ;;  %v1221_v42 = vsel %vm89_vm0, %v1207_v44, %v1215_v56 }
 0x494   :  { %v5511_v57 = vpop.permute.xlu1 %1126  ;;  %v1231_v12 = vsel %vm4708_vm3, %v1197_v53, %v1225_v34  ;;  %v1230_v37 = vsel %vm4704_vm2, %v1201_v43, %v1221_v42 }
 0x496   :  { %v5513_v58 = vpop.permute.xlu0 %1134 }
 0x497   :  { %v1141_v56 = vsel %vm62_vm4, %v5511_v57, %v5513_v58 }
 0x498   :  { %v1151_v59 = vpop.permute.xlu1 %1150 }
 0x49a   :  { %v1159_v62 = vpop.permute.xlu0 %1158 }
 0x49b   :  { %v1169_v26 = vsel %vm69_vm5, %v1159_v62, %v1151_v59  ;;  %v1165_v27 = vsel %vm69_vm5, %v1151_v59, %v1159_v62 }
 0x49c   :  { %v1185_v0 = vpop.permute.xlu1 %1184  ;;  %v5612_v59 = vsel %vm4731_vm6, %v1141_v56, %v1169_v26 }
 0x49e   :  { %v1193_v1 = vpop.permute.xlu0 %1192 }
 0x49f   :  { %v1198_v39 = vsel %vm82_vm1, %v1185_v0, %v1193_v1  ;;  %v1202_v47 = vsel %vm82_vm1, %v1193_v1, %v1185_v0  ;;  %v1145_v0 = vsel %vm62_vm4, %v5513_v58, %v5511_v57 }
 0x4a0   :  { %v1209_v2 = vpop.permute.xlu1 %1208  ;;  %v5619_v62 = vsel %vm4735_vm7, %v1145_v0, %v1165_v27 }
 0x4a2   :  { %v1217_v5 = vpop.permute.xlu0 %1216 }
 0x4a3   :  { %v1226_v20 = vsel %vm89_vm0, %v1217_v5, %v1209_v2  ;;  %v1222_v31 = vsel %vm89_vm0, %v1209_v2, %v1217_v5 }
 0x4a4   :  { %v5515_v6 = vpop.permute.xlu1 %1128  ;;  %v5559_v52 = vsel %vm4708_vm3, %v1198_v39, %v1226_v20  ;;  %v1232_v55 = vsel %vm4704_vm2, %v1202_v47, %v1222_v31 }
 0x4a6   :  { %v5517_v7 = vpop.permute.xlu0 %1136 }
 0x4a8   :  { %v5519_v8 = vpop.permute.xlu1 %1152 }
 0x4aa   :  { %v5521_v11 = vpop.permute.xlu0 %1160 }
 0x4ab   :  { %v1166_v57 = vsel %vm69_vm5, %v5519_v8, %v5521_v11 }
 0x4ac   :  { %v1187_v14 = vpop.permute.xlu1 %1186 }
 0x4ae   :  { %v1195_v15 = vpop.permute.xlu0 %1194 }
 0x4af   :  { %v1199_v24 = vsel %vm82_vm1, %v1187_v14, %v1195_v15  ;;  %v1203_v28 = vsel %vm82_vm1, %v1195_v15, %v1187_v14 }
 0x4b0   :  { %v1211_v18 = vpop.permute.xlu1 %1210 }
 0x4b2   :  { %v1219_v21 = vpop.permute.xlu0 %1218 }
 0x4b3   :  { %v1223_v29 = vsel %vm89_vm0, %v1211_v18, %v1219_v21  ;;  %v1227_v30 = vsel %vm89_vm0, %v1219_v21, %v1211_v18  ;;  %v1170_v18 = vsel %vm69_vm5, %v5521_v11, %v5519_v8  ;;  %v1142_v8 = vsel %vm62_vm4, %v5515_v6, %v5517_v7 }
 0x4b4   :  { %v5537_v32 = vsel %vm4708_vm3, %v1199_v24, %v1227_v30  ;;  %v5541_v38 = vsel %vm4704_vm2, %v1203_v28, %v1223_v29  ;;  %v1149_v48 = vpop.permute.xlu1 %1148  ;;  %v1146_v24 = vsel %vm62_vm4, %v5517_v7, %v5515_v6  ;;  %v1176_v28 = vsel %vm4731_vm6, %v1142_v8, %v1170_v18  ;;  %v4465_v6 = vld [vmem:[%s8191_s5 + $0x20] sm:$0xff] }
 0x4b5   :  { %1438 = vmatprep.subr.mxu1 %v5537_v32  ;;  %v1177_v11 = vsel %vm4735_vm7, %v1146_v24, %v1166_v57 }
 0x4b6   :  { %v1157_v50 = vpop.permute.xlu0 %1156  ;;  %1439 = vmatpush1.msra.mxu1 %v5541_v38 }
 0x4b7   :  { %v1164_v25 = vsel %vm69_vm5, %v1149_v48, %v1157_v50  ;;  %v1168_v46 = vsel %vm69_vm5, %v1157_v50, %v1149_v48  ;;  %1440 = vmatprep.subr.mxu1 %v5559_v52 }
 0x4b8   :  { %1441 = vmatpush1.msra.mxu1 %v1232_v55  ;;  %v5576_v61 = vsel %vm4731_vm6, %v1140_v36, %v1168_v46  ;;  %v5580_v63 = vsel %vm4735_vm7, %v1144_v40, %v1164_v25  ;;  %v1131_v13 = vpop.permute.xlu1 %1130 }
 0x4b9   :  { %1442 = vmatprep.subr.mxu1 %v1231_v12  ;;  %1241 = vrot.lane.b32.xlu1 %v5576_v61, %s4616_s13 }
 0x4ba   :  { %1249 = vrot.lane.b32.xlu0 %v5580_v63, %s4616_s13  ;;  %v5588_v41 = vpop.permute.xlu0 %1277  ;;  %1443 = vmatpush1.msra.mxu1 %v1230_v37 }
 0x4bb   :  { %1444 = vmatprep.subr.mxu1 %v5501_v49 }
 0x4bc   :  { %1445 = vmatpush1.msra.mxu1 %v5505_v51  ;;  %v1155_v58 = vpop.permute.xlu1 %1154 }
 0x4bd   :  { %1446 = vmatprep.subr.mxu1 %v5453_v45  ;;  %1291 = vrot.lane.b32.xlu1 %v1230_v37, %s4616_s13 }
 0x4be   :  { %1299 = vrot.lane.b32.xlu0 %v1231_v12, %s4616_s13  ;;  %v1139_v44 = vpop.permute.xlu0 %1138  ;;  %1447 = vmatpush1.msra.mxu1 %v5449_v54 }
 0x4bf   :  { %1448 = vmatprep.subr.mxu1 %v5433_v33  ;;  %v1143_v2 = vsel %vm62_vm4, %v1131_v13, %v1139_v44  ;;  %v1147_v5 = vsel %vm62_vm4, %v1139_v44, %v1131_v13 }
 0x4c0   :  { %1449 = vmatpush1.msra.mxu1 %v5429_v35 }
 0x4c1   :  { %1450 = vmatprep.subr.mxu1 %v5413_v19  ;;  %1243 = vrot.lane.b32.xlu1 %v5612_v59, %s4616_s13 }
 0x4c2   :  { %1251 = vrot.lane.b32.xlu0 %v5619_v62, %s4616_s13  ;;  %v1163_v1 = vpop.permute.xlu0 %1162  ;;  %1451 = vmatpush1.msra.mxu1 %v5409_v16 }
 0x4c3   :  { %v1167_v14 = vsel %vm69_vm5, %v1155_v58, %v1163_v1  ;;  %v1171_v15 = vsel %vm69_vm5, %v1163_v1, %v1155_v58  ;;  %1452 = vmatprep.subr.mxu1 %v5397_v4 }
 0x4c4   :  { %1453 = vmatpush1.msra.mxu1 %v5395_v60  ;;  %v1179_v20 = vsel %vm4735_vm7, %v1147_v5, %v1167_v14  ;;  %v1178_v21 = vsel %vm4731_vm6, %v1143_v2, %v1171_v15 }
 0x4c5   :  { %1293 = vrot.lane.b32.xlu1 %v1232_v55, %s4616_s13  ;;  %1454 = vmatprep.subr.mxu1 %v1179_v20 }
 0x4c6   :  { %1301 = vrot.lane.b32.xlu0 %v5559_v52, %s4616_s13  ;;  %1455 = vmatpush1.msra.mxu1 %v1178_v21 }
 0x4c7   :  { %1456 = vmatprep.subr.mxu1 %v1177_v11 }
 0x4c8   :  { %1457 = vmatpush1.msra.mxu1 %v1176_v28 }
 0x4c9   :  { %1245 = vrot.lane.b32.xlu1 %v1176_v28, %s4616_s13  ;;  %1458 = vmatprep.subr.mxu1 %v5619_v62 }
 0x4ca   :  { %1253 = vrot.lane.b32.xlu0 %v1177_v11, %s4616_s13  ;;  %1459 = vmatpush1.msra.mxu1 %v5612_v59 }
 0x4cb   :  { %1460 = vmatprep.subr.mxu1 %v5580_v63 }
 0x4cc   :  { %1461 = vmatpush1.msra.mxu1 %v5576_v61 }
 0x4cd   :  { %1571 = vrot.lane.b32.xlu1 %v1232_v55, %s4622_s21  ;;  %4473 = vmatmul.mubr.msk.f32.vlgmr.msra.gmra.mxu1 %vm695_vm11, %v4465_v6 }
 0x4ce   :  { %1579 = vrot.lane.b32.xlu0 %v5559_v52, %s4622_s21  ;;  %1500 = vmatprep.mubr.f32.mxu1 %v4621_v17 }
 0x4d1   :  { %1295 = vrot.lane.b32.xlu1 %v5541_v38, %s4616_s13 }
 0x4d2   :  { %1303 = vrot.lane.b32.xlu0 %v5537_v32, %s4616_s13 }
 0x4d5   :  { %1569 = vrot.lane.b32.xlu1 %v1230_v37, %s4622_s21 }
 0x4d6   :  { %1577 = vrot.lane.b32.xlu0 %v1231_v12, %s4622_s21 }
 0x4d9   :  { %1567 = vrot.lane.b32.xlu1 %v5505_v51, %s4622_s21  ;;  %v1276_v51 = vpop.permute.xlu0 %1275 }
 0x4da   :  { %1575 = vrot.lane.b32.xlu0 %v5501_v49, %s4622_s21 }
 0x4dd   :  { %1549 = vrot.lane.b32.xlu1 %v5449_v54, %s4622_s21  ;;  %v4466_v54 = vld [vmem:[%s8191_s5 + $0x28] sm:$0xff]  ;;  %v1274_v29 = vpop.permute.xlu0 %1273 }
 0x4de   :  { %1557 = vrot.lane.b32.xlu0 %v5453_v45, %s4622_s21  ;;  %4474 = vmatmul.mubr.msk.f32.gmra.mxu1 %vm695_vm11, %v4466_v54  ;;  %v1272_v45 = vpop.permute.xlu1 %1271 }
 0x4df   :  { %1506 = vmatprep.mubr.f32.mxu1 %v4621_v17 }
 0x4e1   :  { %1247 = vrot.lane.b32.xlu1 %v1178_v21, %s4616_s13  ;;  %v1280_v31 = vpop.permute.xlu0 %1279 }
 0x4e2   :  { %1255 = vrot.lane.b32.xlu0 %v1179_v20, %s4616_s13  ;;  %v1270_v49 = vpop.permute.xlu1 %1269  ;;  %v1284_v57 = vsel %vm107_vm9, %v1272_v45, %v1280_v31  ;;  %v1288_v58 = vsel %vm107_vm9, %v1280_v31, %v1272_v45  ;;  %v1314_v31 = vld [vmem:[%s8191_s5 + $0x8] sm:$0xff] }
 0x4e3   :  { %v1283_v1 = vsel %vm107_vm9, %v1270_v49, %v5588_v41  ;;  %v1287_v14 = vsel %vm107_vm9, %v5588_v41, %v1270_v49 }
 0x4e5   :  { %1547 = vrot.lane.b32.xlu1 %v5429_v35, %s4622_s21  ;;  %v4467_v35 = vld [vmem:[%s8191_s5 + $0x30] sm:$0xff] }
 0x4e6   :  { %1555 = vrot.lane.b32.xlu0 %v5433_v33, %s4622_s21  ;;  %4475 = vmatmul.mubr.msk.f32.gmra.mxu1 %vm695_vm11, %v4467_v35  ;;  %v4468_v33 = vld [vmem:[%s8191_s5 + $0x38] sm:$0xff]  ;;  %v1268_v7 = vpop.permute.xlu1 %1267 }
 0x4e7   :  { %1512 = vmatprep.mubr.f32.mxu1 %v4621_v17  ;;  %v1282_v15 = vsel %vm107_vm9, %v1268_v7, %v1276_v51  ;;  %v1286_v18 = vsel %vm107_vm9, %v1276_v51, %v1268_v7 }
 0x4e9   :  { %1573 = vrot.lane.b32.xlu1 %v5541_v38, %s4622_s21 }
 0x4ea   :  { %1581 = vrot.lane.b32.xlu0 %v5537_v32, %s4622_s21  ;;  %4476 = vmatmul.mubr.msk.f32.gmra.mxu1 %vm695_vm11, %v4468_v33  ;;  %v1266_v30 = vpop.permute.xlu1 %1265 }
 0x4eb   :  { %1999 = vmatprep.mubr.f32.mxu1 %v4621_v17  ;;  %v1285_v8 = vsel %vm107_vm9, %v1274_v29, %v1266_v30 }
 0x4ed   :  { %1545 = vrot.lane.b32.xlu1 %v5409_v16, %s4622_s21  ;;  %v1706_v16 = vld [vmem:[%s8192_s6 + $0x8] sm:$0xff] }
 0x4ee   :  { %1553 = vrot.lane.b32.xlu0 %v5413_v19, %s4622_s21  ;;  %v1705_v19 = vld [vmem:[%s8192_s6] sm:$0xff] }
 0x4f1   :  { %1543 = vrot.lane.b32.xlu1 %v5395_v60, %s4622_s21  ;;  %v1708_v60 = vld [vmem:[%s8192_s6 + $0x18] sm:$0xff] }
 0x4f2   :  { %1551 = vrot.lane.b32.xlu0 %v5397_v4, %s4622_s21  ;;  %v1707_v4 = vld [vmem:[%s8192_s6 + $0x10] sm:$0xff] }
 0x4f5   :  { %1523 = vrot.lane.b32.xlu1 %v1176_v28, %s4622_s21 }
 0x4f6   :  { %1531 = vrot.lane.b32.xlu0 %v1177_v11, %s4622_s21 }
 0x4f9   :  { %1525 = vrot.lane.b32.xlu1 %v1178_v21, %s4622_s21 }
 0x4fa   :  { %1533 = vrot.lane.b32.xlu0 %v1179_v20, %s4622_s21  ;;  %v1281_v20 = vsel %vm107_vm9, %v1266_v30, %v1274_v29 }
 0x4fb   :  { %v1290_v32 = vpop.permute.xlu1 %1289  ;;  %v1298_v38 = vpop.permute.xlu0 %1297 }
 0x4fc   :  { %v1305_v56 = vsel %vm107_vm9, %v1290_v32, %v1298_v38 }
 0x4fd   :  { %1521 = vrot.lane.b32.xlu1 %v5612_v59, %s4622_s21 }
 0x4fe   :  { %1529 = vrot.lane.b32.xlu0 %v5619_v62, %s4622_s21  ;;  %v1309_v62 = vsel %vm107_vm9, %v1298_v38, %v1290_v32 }
 0x501   :  { %1519 = vrot.lane.b32.xlu1 %v5576_v61, %s4622_s21 }
 0x502   :  { %1527 = vrot.lane.b32.xlu0 %v5580_v63, %s4622_s21 }
 0x505   :  { %1726 = vperm.xlu1 %4569, %v1708_v60  }
 0x506   :  { %1721 = vperm.xlu0 %4568, %v1707_v4  }
 0x509   :  { %1716 = vperm.xlu1 %4569, %v1706_v16  }
 0x50a   :  { %1711 = vperm.xlu0 %4568, %v1705_v19   ;;  %v1313_v19 = vld [vmem:[%s8191_s5] sm:$0xff] }
 0x52b   :  { %v5746_v36 = vpop.permute.xlu1 %1241 }
 0x52c   :  { %v5748_v34 = vpop.permute.xlu0 %1249 }
 0x52d   :  { %v1257_v4 = vsel %vm107_vm9, %v5746_v36, %v5748_v34  ;;  %v1261_v49 = vsel %vm107_vm9, %v5748_v34, %v5746_v36 }
 0x52f   :  { %v1292_v39 = vpop.permute.xlu1 %1291 }
 0x530   :  { %v1300_v40 = vpop.permute.xlu0 %1299 }
 0x531   :  { %v1306_v27 = vsel %vm107_vm9, %v1292_v39, %v1300_v40  ;;  %v1310_v44 = vsel %vm107_vm9, %v1300_v40, %v1292_v39 }
 0x533   :  { %v5750_v42 = vpop.permute.xlu1 %1243 }
 0x534   :  { %v1252_v47 = vpop.permute.xlu0 %1251 }
 0x535   :  { %v1258_v33 = vsel %vm107_vm9, %v5750_v42, %v1252_v47  ;;  %v1262_v60 = vsel %vm107_vm9, %v1252_v47, %v5750_v42  ;;  %v1315_v42 = vld [vmem:[%s8191_s5 + $0x10] sm:$0xff] }
 0x537   :  { %v1294_v48 = vpop.permute.xlu1 %1293 }
 0x538   :  { %v1302_v50 = vpop.permute.xlu0 %1301 }
 0x539   :  { %v1307_v63 = vsel %vm107_vm9, %v1294_v48, %v1302_v50  ;;  %v1311_v26 = vsel %vm107_vm9, %v1302_v50, %v1294_v48 }
 0x53b   :  { %v1246_v52 = vpop.permute.xlu1 %1245 }
 0x53c   :  { %v1254_v53 = vpop.permute.xlu0 %1253 }
 0x53d   :  { %v1259_v28 = vsel %vm107_vm9, %v1246_v52, %v1254_v53  ;;  %v1263_v35 = vsel %vm107_vm9, %v1254_v53, %v1246_v52 }
 0x53f   :  { %v5752_v25 = vpop.permute.xlu1 %1571 }
 0x540   :  { %v5754_v46 = vpop.permute.xlu0 %1579 }
 0x541   :  { %v1589_v29 = vsel %vm333_vm10, %v5754_v46, %v5752_v25  ;;  %v1585_v38 = vsel %vm333_vm10, %v5752_v25, %v5754_v46  ;;  %v1316_v46 = vld [vmem:[%s8191_s5 + $0x18] sm:$0xff] }
 0x543   :  { %v1296_v55 = vpop.permute.xlu1 %1295 }
 0x544   :  { %v1304_v43 = vpop.permute.xlu0 %1303 }
 0x545   :  { %v1308_v12 = vsel %vm107_vm9, %v1296_v55, %v1304_v43  ;;  %v1312_v61 = vsel %vm107_vm9, %v1304_v43, %v1296_v55 }
 0x546   :  { %1337 = vmatprep.subr.mxu0 %v1308_v12 }
 0x547   :  { %1338 = vmatpush1.msra.mxu0 %v1312_v61  ;;  %v5762_v37 = vpop.permute.xlu1 %1569 }
 0x548   :  { %v5764_v13 = vpop.permute.xlu0 %1577  ;;  %1339 = vmatprep.subr.mxu0 %v1307_v63 }
 0x549   :  { %1340 = vmatpush1.msra.mxu0 %v1311_v26  ;;  %v1588_v36 = vsel %vm333_vm10, %v5764_v13, %v5762_v37  ;;  %v1584_v34 = vsel %vm333_vm10, %v5762_v37, %v5764_v13 }
 0x54a   :  { %1341 = vmatprep.subr.mxu0 %v1306_v27 }
 0x54b   :  { %1342 = vmatpush1.msra.mxu0 %v1310_v44  ;;  %v5774_v0 = vpop.permute.xlu1 %1567 }
 0x54c   :  { %v5776_v59 = vpop.permute.xlu0 %1575  ;;  %1343 = vmatprep.subr.mxu0 %v1305_v56 }
 0x54d   :  { %1344 = vmatpush1.msra.mxu0 %v1309_v62  ;;  %v1587_v39 = vsel %vm333_vm10, %v5776_v59, %v5774_v0  ;;  %v1583_v48 = vsel %vm333_vm10, %v5774_v0, %v5776_v59 }
 0x54e   :  { %1345 = vmatprep.subr.mxu0 %v1284_v57 }
 0x54f   :  { %1346 = vmatpush1.msra.mxu0 %v1288_v58  ;;  %v5787_v2 = vpop.permute.xlu1 %1549 }
 0x550   :  { %v5789_v5 = vpop.permute.xlu0 %1557  ;;  %1347 = vmatprep.subr.mxu0 %v1283_v1 }
 0x551   :  { %1348 = vmatpush1.msra.mxu0 %v1287_v14  ;;  %v1566_v50 = vsel %vm333_vm10, %v5789_v5, %v5787_v2  ;;  %v1562_v52 = vsel %vm333_vm10, %v5787_v2, %v5789_v5 }
 0x552   :  { %1349 = vmatprep.subr.mxu0 %v1282_v15  ;;  %v4477_v15 = vld [vmem:[%s8191_s5 + $0x40] sm:$0xff] }
 0x553   :  { %1350 = vmatpush1.msra.mxu0 %v1286_v18  ;;  %v1248_v21 = vpop.permute.xlu1 %1247  ;;  %v4478_v18 = vld [vmem:[%s8191_s5 + $0x48] sm:$0xff] }
 0x554   :  { %v1256_v24 = vpop.permute.xlu0 %1255  ;;  %1351 = vmatprep.subr.mxu0 %v1281_v20  ;;  %v4479_v20 = vld [vmem:[%s8191_s5 + $0x50] sm:$0xff] }
 0x555   :  { %1352 = vmatpush1.msra.mxu0 %v1285_v8  ;;  %v1260_v41 = vsel %vm107_vm9, %v1248_v21, %v1256_v24  ;;  %v1264_v11 = vsel %vm107_vm9, %v1256_v24, %v1248_v21  ;;  %v4480_v21 = vld [vmem:[%s8191_s5 + $0x58] sm:$0xff]  ;;  %v5928_v24 = vld [vmem:[#allocation2 + $0x10] sm:$0xff] }
 0x556   :  { %1353 = vmatprep.subr.mxu0 %v1260_v41  ;;  %v5930_v8 = vld [vmem:[#allocation2 + $0x18] sm:$0xff]  ;;  %2260 = vrot.lane.b32.xlu1 %v5928_v24, %s4618_s17 }
 0x557   :  { %1354 = vmatpush1.msra.mxu0 %v1264_v11  ;;  %v1548_v6 = vpop.permute.xlu1 %1547  ;;  %2262 = vrot.lane.b32.xlu0 %v5930_v8, %s4618_s17 }
 0x558   :  { %v1556_v54 = vpop.permute.xlu0 %1555  ;;  %1355 = vmatprep.subr.mxu0 %v1259_v28 }
 0x559   :  { %1356 = vmatpush1.msra.mxu0 %v1263_v35  ;;  %v1565_v53 = vsel %vm333_vm10, %v1556_v54, %v1548_v6  ;;  %v1561_v43 = vsel %vm333_vm10, %v1548_v6, %v1556_v54 }
 0x55a   :  { %1357 = vmatprep.subr.mxu0 %v1258_v33  ;;  %2266 = vrot.lane.b32.xlu1 %v5928_v24, %s4617_s16 }
 0x55b   :  { %1358 = vmatpush1.msra.mxu0 %v1262_v60  ;;  %v1574_v16 = vpop.permute.xlu1 %1573  ;;  %2268 = vrot.lane.b32.xlu0 %v5930_v8, %s4617_s16 }
 0x55c   :  { %v1582_v45 = vpop.permute.xlu0 %1581  ;;  %1359 = vmatprep.subr.mxu0 %v1257_v4 }
 0x55d   :  { %1360 = vmatpush1.msra.mxu0 %v1261_v49  ;;  %v1590_v51 = vsel %vm333_vm10, %v1582_v45, %v1574_v16  ;;  %v1586_v7 = vsel %vm333_vm10, %v1574_v16, %v1582_v45 }
 0x55e   :  { %1616 = vmatprep.subr.mxu0 %v1590_v51  ;;  %4469 = vmatmul.mubr.msk.f32.vlgmr.msra.gmra.mxu0 %vm695_vm11, %v1313_v19 }
 0x55f   :  { %1617 = vmatpush1.msra.mxu0 %v1586_v7  ;;  %v1546_v30 = vpop.permute.xlu1 %1545  ;;  %1399 = vmatprep.mubr.f32.mxu0 %v4621_v17 }
 0x560   :  { %v1554_v32 = vpop.permute.xlu0 %1553  ;;  %1618 = vmatprep.subr.mxu0 %v1589_v29  ;;  %2246 = vrot.lane.b32.xlu1 %v5928_v24, %s4619_s18 }
 0x561   :  { %1619 = vmatpush1.msra.mxu0 %v1585_v38  ;;  %v1564_v12 = vsel %vm333_vm10, %v1554_v32, %v1546_v30  ;;  %v1560_v61 = vsel %vm333_vm10, %v1546_v30, %v1554_v32  ;;  %2248 = vrot.lane.b32.xlu0 %v5930_v8, %s4619_s18 }
 0x562   :  { %1620 = vmatprep.subr.mxu0 %v1588_v36  ;;  %4470 = vmatmul.mubr.msk.f32.gmra.mxu0 %vm695_vm11, %v1314_v31 }
 0x563   :  { %1621 = vmatpush1.msra.mxu0 %v1584_v34  ;;  %v1544_v40 = vpop.permute.xlu1 %1543  ;;  %1405 = vmatprep.mubr.f32.mxu0 %v4621_v17 }
 0x564   :  { %v1552_v47 = vpop.permute.xlu0 %1551  ;;  %1622 = vmatprep.subr.mxu0 %v1587_v39  ;;  %2252 = vrot.lane.b32.xlu1 %v5928_v24, %s4620_s0 }
 0x565   :  { %1623 = vmatpush1.msra.mxu0 %v1583_v48  ;;  %v1563_v63 = vsel %vm333_vm10, %v1552_v47, %v1544_v40  ;;  %v1559_v26 = vsel %vm333_vm10, %v1544_v40, %v1552_v47  ;;  %2254 = vrot.lane.b32.xlu0 %v5930_v8, %s4620_s0 }
 0x566   :  { %1624 = vmatprep.subr.mxu0 %v1566_v50  ;;  %4471 = vmatmul.mubr.msk.f32.gmra.mxu0 %vm695_vm11, %v1315_v42 }
 0x567   :  { %1625 = vmatpush1.msra.mxu0 %v1562_v52  ;;  %v1524_v25 = vpop.permute.xlu1 %1523  ;;  %1411 = vmatprep.mubr.f32.mxu0 %v4621_v17 }
 0x568   :  { %v1532_v55 = vpop.permute.xlu0 %1531  ;;  %1626 = vmatprep.subr.mxu0 %v1565_v53 }
 0x569   :  { %1627 = vmatpush1.msra.mxu0 %v1561_v43  ;;  %v1541_v56 = vsel %vm333_vm10, %v1532_v55, %v1524_v25  ;;  %v1537_v62 = vsel %vm333_vm10, %v1524_v25, %v1532_v55 }
 0x56a   :  { %1628 = vmatprep.subr.mxu0 %v1564_v12  ;;  %4472 = vmatmul.mubr.msk.f32.gmra.mxu0 %vm695_vm11, %v1316_v46 }
 0x56b   :  { %1629 = vmatpush1.msra.mxu0 %v1560_v61  ;;  %v1526_v37 = vpop.permute.xlu1 %1525  ;;  %1672 = vmatprep.mubr.f32.mxu0 %v4621_v17 }
 0x56c   :  { %v1534_v13 = vpop.permute.xlu0 %1533  ;;  %1630 = vmatprep.subr.mxu0 %v1563_v63 }
 0x56d   :  { %1631 = vmatpush1.msra.mxu0 %v1559_v26  ;;  %v1542_v27 = vsel %vm333_vm10, %v1534_v13, %v1526_v37  ;;  %v1538_v44 = vsel %vm333_vm10, %v1526_v37, %v1534_v13 }
 0x56e   :  { %1632 = vmatprep.subr.mxu0 %v1542_v27 }
 0x56f   :  { %1633 = vmatpush1.msra.mxu0 %v1538_v44  ;;  %v1522_v0 = vpop.permute.xlu1 %1521 }
 0x570   :  { %v1530_v59 = vpop.permute.xlu0 %1529  ;;  %1634 = vmatprep.subr.mxu0 %v1541_v56 }
 0x571   :  { %1635 = vmatpush1.msra.mxu0 %v1537_v62  ;;  %v1540_v57 = vsel %vm333_vm10, %v1530_v59, %v1522_v0  ;;  %v1536_v58 = vsel %vm333_vm10, %v1522_v0, %v1530_v59 }
 0x572   :  { %1636 = vmatprep.subr.mxu0 %v1540_v57 }
 0x573   :  { %1637 = vmatpush1.msra.mxu0 %v1536_v58  ;;  %v1520_v1 = vpop.permute.xlu1 %1519 }
 0x574   :  { %v1528_v2 = vpop.permute.xlu0 %1527 }
 0x575   :  { %v1539_v5 = vsel %vm333_vm10, %v1528_v2, %v1520_v1  ;;  %v1535_v14 = vsel %vm333_vm10, %v1520_v1, %v1528_v2 }
 0x576   :  { %1638 = vmatprep.subr.mxu0 %v1539_v5 }
 0x577   :  { %1639 = vmatpush1.msra.mxu0 %v1535_v14 }
 0x578   :  { %4481 = vmatmul.mubr.msk.f32.vlgmr.msra.gmra.mxu0 %vm695_vm11, %v4477_v15 }
 0x579   :  { %1678 = vmatprep.mubr.f32.mxu0 %v4621_v17 }
 0x57c   :  { %4482 = vmatmul.mubr.msk.f32.gmra.mxu0 %vm695_vm11, %v4478_v18 }
 0x57d   :  { %1684 = vmatprep.mubr.f32.mxu0 %v4621_v17 }
 0x580   :  { %4483 = vmatmul.mubr.msk.f32.gmra.mxu0 %vm695_vm11, %v4479_v20  ;;  %v1727_v42 = vpop.permute.xlu1 %1726 }
 0x581   :  { %1690 = vmatprep.mubr.f32.mxu0 %v4621_v17  ;;  %v1722_v4 = vpop.permute.xlu0 %1721 }
 0x584   :  { %4484 = vmatmul.mubr.msk.f32.gmra.mxu0 %vm695_vm11, %v4480_v21  ;;  %v1717_v46 = vpop.permute.xlu1 %1716 }
 0x585   :  { %2073 = vmatprep.mubr.f32.mxu0 %v4621_v17  ;;  %v1712_v29 = vpop.permute.xlu0 %1711 }
 0x58d   :  { %v1496_v33 = vpop.f32.mrf.mxu1 }
 0x58f   :  { %v1498_v16 = vpop.f32.mrf.mxu1 }
 0x59e   :  { %v1502_v39 = vpop.f32.mrf.mxu1 }
 0x5a0   :  { %v1504_v47 = vpop.f32.mrf.mxu1 }
 0x5a6   :  { %v1508_v63 = vpop.f32.mrf.mxu1 }
 0x5a8   :  { %v1510_v13 = vpop.f32.mrf.mxu1 }
 0x5aa   :  { %v1514_v1 = vpop.f32.mrf.mxu1 }
 0x5ac   :  { %v1516_v5 = vpop.f32.mrf.mxu1 }
 0x61e   :  { %v1395_v41 = vpop.f32.mrf.mxu0 }
 0x61f   :  { %v1497_v45 = vadd.f32 %v1496_v33, %v1395_v41 }
 0x620   :  { %v1397_v11 = vpop.f32.mrf.mxu0 }
 0x621   :  { %v1499_v51 = vadd.f32 %v1498_v16, %v1397_v11 }
 0x622   :  { %v1401_v28 = vpop.f32.mrf.mxu0 }
 0x623   :  { %v1503_v48 = vadd.f32 %v1502_v39, %v1401_v28 }
 0x624   :  { %v1403_v6 = vpop.f32.mrf.mxu0 }
 0x625   :  { %v1505_v52 = vadd.f32 %v1504_v47, %v1403_v6 }
 0x626   :  { %v1407_v54 = vpop.f32.mrf.mxu0 }
 0x627   :  { %v1509_v26 = vadd.f32 %v1508_v63, %v1407_v54  ;;  %v6058_v54 = vpop.permute.xlu1 %2260 }
 0x628   :  { %v1409_v35 = vpop.f32.mrf.mxu0 }
 0x629   :  { %v1511_v44 = vadd.f32 %v1510_v13, %v1409_v35  ;;  %v6060_v35 = vpop.permute.xlu0 %2262 }
 0x62a   :  { %v5948_v60 = vpop.f32.mrf.mxu0 }
 0x62b   :  { %v1515_v14 = vadd.f32 %v1514_v1, %v5948_v60  ;;  %v6062_v33 = vpop.permute.xlu1 %2266 }
 0x62c   :  { %v5950_v19 = vpop.f32.mrf.mxu0 }
 0x62d   :  { %v1517_v18 = vadd.f32 %v1516_v5, %v5950_v19  ;;  %v6064_v60 = vpop.permute.xlu0 %2268 }
 0x631   :  { %v6068_v16 = vpop.permute.xlu0 %2248 }
 0x638   :  { %v1674_v49 = vpop.f32.mrf.mxu0 }
 0x639   :  { %v1697_v7 = vadd.f32 %v1674_v49, %v1497_v45  ;;  %v6072_v45 = vpop.permute.xlu0 %2254 }
 0x63a   :  { %v1676_v30 = vpop.f32.mrf.mxu0 }
 0x63b   :  { %v1729_v31 = vadd.f32 %v1712_v29, %v1697_v7  ;;  %v1698_v32 = vadd.f32 %v1676_v30, %v1499_v51 }
 0x63c   :  { %v1680_v40 = vpop.f32.mrf.mxu0 }
 0x63d   :  { %v5952_v38 = vmax.f32 %v1729_v31, 0.0  ;;  %v1730_v36 = vadd.f32 %v1712_v29, %v1698_v32  ;;  %v1699_v53 = vadd.f32 %v1680_v40, %v1503_v48 }
 0x63e   :  { %v1682_v50 = vpop.f32.mrf.mxu0 }
 0x63f   :  { %v5954_v34 = vmax.f32 %v1730_v36, 0.0  ;;  %1801 = vrot.lane.b32.xlu1 %v5952_v38, %s4618_s17  ;;  %v1700_v25 = vadd.f32 %v1682_v50, %v1505_v52  ;;  %v1731_v55 = vadd.f32 %v1717_v46, %v1699_v53 }
 0x640   :  { %v1686_v37 = vpop.f32.mrf.mxu0 }
 0x641   :  { %1809 = vrot.lane.b32.xlu0 %v5954_v34, %s4618_s17  ;;  %v1732_v43 = vadd.f32 %v1717_v46, %v1700_v25  ;;  %v5974_v12 = vmax.f32 %v1731_v55, 0.0  ;;  %v1701_v56 = vadd.f32 %v1686_v37, %v1509_v26 }
 0x642   :  { %v1688_v27 = vpop.f32.mrf.mxu0 }
 0x643   :  { %1825 = vrot.lane.b32.xlu1 %v5952_v38, %s4617_s16  ;;  %v5978_v61 = vmax.f32 %v1732_v43, 0.0  ;;  %v1702_v0 = vadd.f32 %v1688_v27, %v1511_v44  ;;  %v1733_v59 = vadd.f32 %v1722_v4, %v1701_v56 }
 0x644   :  { %v1692_v2 = vpop.f32.mrf.mxu0 }
 0x645   :  { %1833 = vrot.lane.b32.xlu0 %v5954_v34, %s4617_s16  ;;  %v1734_v62 = vadd.f32 %v1722_v4, %v1702_v0  ;;  %v5998_v57 = vmax.f32 %v1733_v59, 0.0  ;;  %v1703_v20 = vadd.f32 %v1692_v2, %v1515_v14  ;;  %v6066_v4 = vpop.permute.xlu1 %2246 }
 0x646   :  { %v1694_v15 = vpop.f32.mrf.mxu0 }
 0x647   :  { %1745 = vrot.lane.b32.xlu1 %v5952_v38, %s4619_s18  ;;  %v6002_v58 = vmax.f32 %v1734_v62, 0.0  ;;  %v1704_v21 = vadd.f32 %v1694_v15, %v1517_v18  ;;  %v1735_v41 = vadd.f32 %v1727_v42, %v1703_v20 }
 0x649   :  { %1753 = vrot.lane.b32.xlu0 %v5954_v34, %s4619_s18  ;;  %v1736_v11 = vadd.f32 %v1727_v42, %v1704_v21  ;;  %v6024_v28 = vmax.f32 %v1735_v41, 0.0  ;;  %v6070_v19 = vpop.permute.xlu1 %2252 }
 0x64b   :  { %1769 = vrot.lane.b32.xlu1 %v5952_v38, %s4620_s0  ;;  %v6028_v6 = vmax.f32 %v1736_v11, 0.0 }
 0x64d   :  { %1777 = vrot.lane.b32.xlu0 %v5954_v34, %s4620_s0 }
 0x64f   :  { %1883 = vrot.lane.b32.xlu1 %v5952_v38, %s4616_s13 }
 0x651   :  { %1891 = vrot.lane.b32.xlu0 %v5954_v34, %s4616_s13 }
 0x653   :  { %1803 = vrot.lane.b32.xlu1 %v5974_v12, %s4618_s17 }
 0x655   :  { %1811 = vrot.lane.b32.xlu0 %v5978_v61, %s4618_s17 }
 0x657   :  { %1827 = vrot.lane.b32.xlu1 %v5974_v12, %s4617_s16 }
 0x659   :  { %1835 = vrot.lane.b32.xlu0 %v5978_v61, %s4617_s16 }
 0x65b   :  { %1747 = vrot.lane.b32.xlu1 %v5974_v12, %s4619_s18 }
 0x65d   :  { %1755 = vrot.lane.b32.xlu0 %v5978_v61, %s4619_s18 }
 0x65f   :  { %1771 = vrot.lane.b32.xlu1 %v5974_v12, %s4620_s0 }
 0x661   :  { %1779 = vrot.lane.b32.xlu0 %v5978_v61, %s4620_s0 }
 0x663   :  { %1885 = vrot.lane.b32.xlu1 %v5974_v12, %s4616_s13 }
 0x665   :  { %1893 = vrot.lane.b32.xlu0 %v5978_v61, %s4616_s13 }
 0x667   :  { %1805 = vrot.lane.b32.xlu1 %v5998_v57, %s4618_s17 }
 0x669   :  { %1813 = vrot.lane.b32.xlu0 %v6002_v58, %s4618_s17 }
 0x66b   :  { %1829 = vrot.lane.b32.xlu1 %v5998_v57, %s4617_s16 }
 0x66d   :  { %1837 = vrot.lane.b32.xlu0 %v6002_v58, %s4617_s16 }
 0x66f   :  { %1749 = vrot.lane.b32.xlu1 %v5998_v57, %s4619_s18 }
 0x671   :  { %1757 = vrot.lane.b32.xlu0 %v6002_v58, %s4619_s18 }
 0x673   :  { %1773 = vrot.lane.b32.xlu1 %v5998_v57, %s4620_s0 }
 0x675   :  { %1781 = vrot.lane.b32.xlu0 %v6002_v58, %s4620_s0 }
 0x677   :  { %1887 = vrot.lane.b32.xlu1 %v5998_v57, %s4616_s13 }
 0x679   :  { %1895 = vrot.lane.b32.xlu0 %v6002_v58, %s4616_s13 }
 0x67b   :  { %1807 = vrot.lane.b32.xlu1 %v6024_v28, %s4618_s17 }
 0x67d   :  { %1815 = vrot.lane.b32.xlu0 %v6028_v6, %s4618_s17 }
 0x67f   :  { %1831 = vrot.lane.b32.xlu1 %v6024_v28, %s4617_s16 }
 0x681   :  { %1839 = vrot.lane.b32.xlu0 %v6028_v6, %s4617_s16 }
 0x683   :  { %2108 = vrot.lane.b32.xlu1 %v5998_v57, %s4622_s21 }
 0x685   :  { %2116 = vrot.lane.b32.xlu0 %v6002_v58, %s4622_s21 }
 0x687   :  { %1751 = vrot.lane.b32.xlu1 %v6024_v28, %s4619_s18 }
 0x689   :  { %1759 = vrot.lane.b32.xlu0 %v6028_v6, %s4619_s18 }
 0x68b   :  { %1775 = vrot.lane.b32.xlu1 %v6024_v28, %s4620_s0 }
 0x68d   :  { %1783 = vrot.lane.b32.xlu0 %v6028_v6, %s4620_s0 }
 0x68f   :  { %1889 = vrot.lane.b32.xlu1 %v6024_v28, %s4616_s13 }
 0x691   :  { %1897 = vrot.lane.b32.xlu0 %v6028_v6, %s4616_s13 }
 0x693   :  { %2110 = vrot.lane.b32.xlu1 %v6024_v28, %s4622_s21 }
 0x695   :  { %2118 = vrot.lane.b32.xlu0 %v6028_v6, %s4622_s21 }
 0x6b1   :  { %v1802_v49 = vpop.permute.xlu1 %1801 }
 0x6b3   :  { %v1810_v51 = vpop.permute.xlu0 %1809 }
 0x6b4   :  { %v1817_v30 = vsel %vm82_vm1, %v1802_v49, %v1810_v51  ;;  %v1821_v31 = vsel %vm82_vm1, %v1810_v51, %v1802_v49 }
 0x6b5   :  { %v1826_v7 = vpop.permute.xlu1 %1825 }
 0x6b7   :  { %v1834_v29 = vpop.permute.xlu0 %1833 }
 0x6b8   :  { %v1841_v32 = vsel %vm89_vm0, %v1826_v7, %v1834_v29  ;;  %v1845_v36 = vsel %vm89_vm0, %v1834_v29, %v1826_v7 }
 0x6b9   :  { %v1746_v39 = vpop.permute.xlu1 %1745  ;;  %v6084_v40 = vsel %vm4708_vm3, %v1817_v30, %v1845_v36  ;;  %v6088_v42 = vsel %vm4704_vm2, %v1821_v31, %v1841_v32 }
 0x6ba   :  { %1915 = vrot.lane.b32.xlu0 %v6084_v40, %s4616_s13  ;;  %1907 = vrot.lane.b32.xlu1 %v6088_v42, %s4616_s13 }
 0x6bb   :  { %v1754_v47 = vpop.permute.xlu0 %1753 }
 0x6bc   :  { %v1761_v52 = vsel %vm62_vm4, %v1746_v39, %v1754_v47  ;;  %v1765_v53 = vsel %vm62_vm4, %v1754_v47, %v1746_v39 }
 0x6bd   :  { %v1770_v48 = vpop.permute.xlu1 %1769 }
 0x6bf   :  { %v1778_v50 = vpop.permute.xlu0 %1777 }
 0x6c0   :  { %v1785_v25 = vsel %vm69_vm5, %v1770_v48, %v1778_v50  ;;  %v1789_v46 = vsel %vm69_vm5, %v1778_v50, %v1770_v48 }
 0x6c1   :  { %v6102_v55 = vpop.permute.xlu1 %1883  ;;  %v6106_v43 = vsel %vm4731_vm6, %v1761_v52, %v1789_v46  ;;  %v6110_v63 = vsel %vm4735_vm7, %v1765_v53, %v1785_v25 }
 0x6c2   :  { %1859 = vrot.lane.b32.xlu1 %v6106_v43, %s4616_s13  ;;  %1867 = vrot.lane.b32.xlu0 %v6110_v63, %s4616_s13 }
 0x6c3   :  { %v6116_v37 = vpop.permute.xlu0 %1891 }
 0x6c5   :  { %v1804_v13 = vpop.permute.xlu1 %1803 }
 0x6c6   :  { %2128 = vrot.lane.b32.xlu1 %v6088_v42, %s4622_s21  ;;  %2136 = vrot.lane.b32.xlu0 %v6084_v40, %s4622_s21 }
 0x6c7   :  { %v1812_v26 = vpop.permute.xlu0 %1811 }
 0x6c8   :  { %v1818_v56 = vsel %vm82_vm1, %v1804_v13, %v1812_v26  ;;  %v1822_v0 = vsel %vm82_vm1, %v1812_v26, %v1804_v13 }
 0x6c9   :  { %v1828_v27 = vpop.permute.xlu1 %1827 }
 0x6cb   :  { %v1836_v44 = vpop.permute.xlu0 %1835 }
 0x6cc   :  { %v1842_v59 = vsel %vm89_vm0, %v1828_v27, %v1836_v44  ;;  %v1846_v62 = vsel %vm89_vm0, %v1836_v44, %v1828_v27 }
 0x6cd   :  { %v1748_v1 = vpop.permute.xlu1 %1747  ;;  %v6132_v2 = vsel %vm4708_vm3, %v1818_v56, %v1846_v62  ;;  %v6136_v5 = vsel %vm4704_vm2, %v1822_v0, %v1842_v59 }
 0x6ce   :  { %1917 = vrot.lane.b32.xlu0 %v6132_v2, %s4616_s13  ;;  %1909 = vrot.lane.b32.xlu1 %v6136_v5, %s4616_s13 }
 0x6cf   :  { %v1756_v14 = vpop.permute.xlu0 %1755 }
 0x6d0   :  { %v1762_v20 = vsel %vm62_vm4, %v1748_v1, %v1756_v14  ;;  %v1766_v21 = vsel %vm62_vm4, %v1756_v14, %v1748_v1 }
 0x6d1   :  { %v1772_v15 = vpop.permute.xlu1 %1771 }
 0x6d3   :  { %v1780_v18 = vpop.permute.xlu0 %1779 }
 0x6d4   :  { %v1786_v41 = vsel %vm69_vm5, %v1772_v15, %v1780_v18  ;;  %v1790_v11 = vsel %vm69_vm5, %v1780_v18, %v1772_v15 }
 0x6d5   :  { %v6150_v49 = vpop.permute.xlu1 %1885  ;;  %v6154_v51 = vsel %vm4731_vm6, %v1762_v20, %v1790_v11  ;;  %v6158_v7 = vsel %vm4735_vm7, %v1766_v21, %v1786_v41 }
 0x6d6   :  { %1861 = vrot.lane.b32.xlu1 %v6154_v51, %s4616_s13  ;;  %1869 = vrot.lane.b32.xlu0 %v6158_v7, %s4616_s13 }
 0x6d7   :  { %v6164_v29 = vpop.permute.xlu0 %1893 }
 0x6d9   :  { %v1806_v30 = vpop.permute.xlu1 %1805 }
 0x6da   :  { %2130 = vrot.lane.b32.xlu1 %v6136_v5, %s4622_s21  ;;  %2138 = vrot.lane.b32.xlu0 %v6132_v2, %s4622_s21 }
 0x6db   :  { %v1814_v31 = vpop.permute.xlu0 %1813 }
 0x6dc   :  { %v1819_v39 = vsel %vm82_vm1, %v1806_v30, %v1814_v31  ;;  %v1823_v47 = vsel %vm82_vm1, %v1814_v31, %v1806_v30 }
 0x6dd   :  { %v1830_v32 = vpop.permute.xlu1 %1829 }
 0x6df   :  { %v1838_v36 = vpop.permute.xlu0 %1837 }
 0x6e0   :  { %v1843_v48 = vsel %vm89_vm0, %v1830_v32, %v1838_v36  ;;  %v1847_v50 = vsel %vm89_vm0, %v1838_v36, %v1830_v32 }
 0x6e1   :  { %v1750_v52 = vpop.permute.xlu1 %1749  ;;  %v1854_v53 = vsel %vm4708_vm3, %v1819_v39, %v1847_v50  ;;  %v1853_v25 = vsel %vm4704_vm2, %v1823_v47, %v1843_v48  ;;  %v2264_v47 = vsel %vm82_vm1, %v6058_v54, %v6060_v35  ;;  %v2271_v48 = vsel %vm89_vm0, %v6064_v60, %v6062_v33 }
 0x6e2   :  { %1919 = vrot.lane.b32.xlu0 %v1854_v53, %s4616_s13  ;;  %1911 = vrot.lane.b32.xlu1 %v1853_v25, %s4616_s13  ;;  %v2265_v50 = vsel %vm82_vm1, %v6060_v35, %v6058_v54 }
 0x6e3   :  { %v1758_v46 = vpop.permute.xlu0 %1757 }
 0x6e4   :  { %v1763_v27 = vsel %vm62_vm4, %v1750_v52, %v1758_v46  ;;  %v1767_v44 = vsel %vm62_vm4, %v1758_v46, %v1750_v52  ;;  %v2270_v52 = vsel %vm89_vm0, %v6062_v33, %v6064_v60 }
 0x6e5   :  { %v1774_v13 = vpop.permute.xlu1 %1773  ;;  %v6252_v54 = vsel %vm4704_vm2, %v2265_v50, %v2270_v52 }
 0x6e7   :  { %v1782_v26 = vpop.permute.xlu0 %1781 }
 0x6e8   :  { %v1787_v56 = vsel %vm69_vm5, %v1774_v13, %v1782_v26  ;;  %v1791_v0 = vsel %vm69_vm5, %v1782_v26, %v1774_v13  ;;  %v6246_v13 = vsel %vm4708_vm3, %v2264_v47, %v2271_v48 }
 0x6e9   :  { %v6192_v59 = vpop.permute.xlu1 %1887  ;;  %v6196_v62 = vsel %vm4731_vm6, %v1763_v27, %v1791_v0  ;;  %v6200_v1 = vsel %vm4735_vm7, %v1767_v44, %v1787_v56 }
 0x6ea   :  { %1863 = vrot.lane.b32.xlu1 %v6196_v62, %s4616_s13  ;;  %1871 = vrot.lane.b32.xlu0 %v6200_v1, %s4616_s13 }
 0x6eb   :  { %v6206_v14 = vpop.permute.xlu0 %1895 }
 0x6ed   :  { %v1808_v15 = vpop.permute.xlu1 %1807 }
 0x6ee   :  { %2132 = vrot.lane.b32.xlu1 %v1853_v25, %s4622_s21  ;;  %2140 = vrot.lane.b32.xlu0 %v1854_v53, %s4622_s21 }
 0x6ef   :  { %v1816_v18 = vpop.permute.xlu0 %1815 }
 0x6f0   :  { %v1820_v41 = vsel %vm82_vm1, %v1808_v15, %v1816_v18  ;;  %v1824_v11 = vsel %vm82_vm1, %v1816_v18, %v1808_v15 }
 0x6f1   :  { %v1832_v20 = vpop.permute.xlu1 %1831 }
 0x6f3   :  { %v1840_v21 = vpop.permute.xlu0 %1839 }
 0x6f4   :  { %v1844_v30 = vsel %vm89_vm0, %v1832_v20, %v1840_v21  ;;  %v1848_v31 = vsel %vm89_vm0, %v1840_v21, %v1832_v20 }
 0x6f5   :  { %v6218_v32 = vpop.permute.xlu1 %2108  ;;  %v1856_v36 = vsel %vm4708_vm3, %v1820_v41, %v1848_v31  ;;  %v1855_v39 = vsel %vm4704_vm2, %v1824_v11, %v1844_v30 }
 0x6f6   :  { %1921 = vrot.lane.b32.xlu0 %v1856_v36, %s4616_s13  ;;  %2017 = vmatprep.subr.mxu0 %v1856_v36 }
 0x6f7   :  { %1913 = vrot.lane.b32.xlu1 %v1855_v39, %s4616_s13  ;;  %v6242_v46 = vpop.permute.xlu0 %2116  ;;  %2018 = vmatpush1.msra.mxu0 %v1855_v39 }
 0x6f8   :  { %2019 = vmatprep.subr.mxu0 %v1854_v53 }
 0x6f9   :  { %2020 = vmatpush1.msra.mxu0 %v1853_v25  ;;  %v1752_v35 = vpop.permute.xlu1 %1751 }
 0x6fa   :  { %2292 = vrot.lane.b32.xlu0 %v6246_v13, %s4616_s13  ;;  %2021 = vmatprep.subr.mxu0 %v6132_v2 }
 0x6fb   :  { %2290 = vrot.lane.b32.xlu1 %v6252_v54, %s4616_s13  ;;  %v1760_v33 = vpop.permute.xlu0 %1759  ;;  %2022 = vmatpush1.msra.mxu0 %v6136_v5  ;;  %v2257_v5 = vsel %vm69_vm5, %v6072_v45, %v6070_v19 }
 0x6fc   :  { %2023 = vmatprep.subr.mxu0 %v6084_v40 }
 0x6fd   :  { %2024 = vmatpush1.msra.mxu0 %v6088_v42  ;;  %v1776_v2 = vpop.permute.xlu1 %1775  ;;  %v2250_v42 = vsel %vm62_vm4, %v6066_v4, %v6068_v16 }
 0x6fe   :  { %2114 = vrot.lane.b32.xlu0 %v5978_v61, %s4622_s21  ;;  %2025 = vmatprep.subr.mxu0 %v6028_v6  ;;  %v6329_v25 = vsel %vm4731_vm6, %v2250_v42, %v2257_v5 }
 0x6ff   :  { %2106 = vrot.lane.b32.xlu1 %v5974_v12, %s4622_s21  ;;  %v1784_v60 = vpop.permute.xlu0 %1783  ;;  %2026 = vmatpush1.msra.mxu0 %v6024_v28 }
 0x700   :  { %2027 = vmatprep.subr.mxu0 %v6002_v58  ;;  %v1788_v40 = vsel %vm69_vm5, %v1776_v2, %v1784_v60  ;;  %v1792_v6 = vsel %vm69_vm5, %v1784_v60, %v1776_v2  ;;  %v1768_v58 = vsel %vm62_vm4, %v1760_v33, %v1752_v35 }
 0x701   :  { %2028 = vmatpush1.msra.mxu0 %v5998_v57  ;;  %v1764_v57 = vsel %vm62_vm4, %v1752_v35, %v1760_v33 }
 0x702   :  { %2286 = vrot.lane.b32.xlu0 %v5930_v8, %s4616_s13  ;;  %2029 = vmatprep.subr.mxu0 %v5978_v61  ;;  %v1800_v61 = vsel %vm4735_vm7, %v1768_v58, %v1788_v40  ;;  %v1799_v28 = vsel %vm4731_vm6, %v1764_v57, %v1792_v6 }
 0x703   :  { %2284 = vrot.lane.b32.xlu1 %v5928_v24, %s4616_s13  ;;  %2030 = vmatpush1.msra.mxu0 %v5974_v12  ;;  %v4485_v12 = vld [vmem:[%s8193_s7 + $0x4] sm:$0xf] }
 0x704   :  { %2031 = vmatprep.subr.mxu0 %v5954_v34 }
 0x705   :  { %2032 = vmatpush1.msra.mxu0 %v5952_v38 }
 0x706   :  { %1873 = vrot.lane.b32.xlu0 %v1800_v61, %s4616_s13  ;;  %2033 = vmatprep.subr.mxu0 %v1800_v61 }
 0x707   :  { %1865 = vrot.lane.b32.xlu1 %v1799_v28, %s4616_s13  ;;  %2034 = vmatpush1.msra.mxu0 %v1799_v28 }
 0x708   :  { %2035 = vmatprep.subr.mxu0 %v6200_v1 }
 0x709   :  { %2036 = vmatpush1.msra.mxu0 %v6196_v62 }
 0x70a   :  { %2112 = vrot.lane.b32.xlu0 %v5954_v34, %s4622_s21  ;;  %2037 = vmatprep.subr.mxu0 %v6158_v7  ;;  %v2251_v34 = vsel %vm62_vm4, %v6068_v16, %v6066_v4  ;;  %v2635_v4 = vld [vmem:[%s8188_s2 + $0x10] sm:$0xff]  ;;  %v2636_v16 = vld [vmem:[%s8188_s2 + $0x18] sm:$0xff] }
 0x70b   :  { %2104 = vrot.lane.b32.xlu1 %v5952_v38, %s4622_s21  ;;  %2038 = vmatpush1.msra.mxu0 %v6154_v51  ;;  %v2256_v38 = vsel %vm69_vm5, %v6070_v19, %v6072_v45  ;;  %v2633_v19 = vld [vmem:[%s8188_s2] sm:$0xff]  ;;  %v1898_v45 = vpop.permute.xlu0 %1897 }
 0x70c   :  { %2039 = vmatprep.subr.mxu0 %v6110_v63  ;;  %v6325_v53 = vsel %vm4735_vm7, %v2251_v34, %v2256_v38 }
 0x70d   :  { %2040 = vmatpush1.msra.mxu0 %v6106_v43 }
 0x70e   :  { %2142 = vrot.lane.b32.xlu0 %v1856_v36, %s4622_s21  ;;  %4487 = vmatmul.mubr.msk.f32.vlgmr.msra.gmra.mxu0 %vm695_vm11, %v4485_v12 }
 0x70f   :  { %2134 = vrot.lane.b32.xlu1 %v1855_v39, %s4622_s21  ;;  %2376 = vmatprep.mubr.f32.mxu0 %v4621_v17 }
 0x712   :  { %2280 = vrot.lane.b32.xlu0 %v6325_v53, %s4616_s13 }
 0x713   :  { %2278 = vrot.lane.b32.xlu1 %v6329_v25, %s4616_s13 }
 0x716   :  { %2092 = vrot.lane.b32.xlu0 %v6200_v1, %s4622_s21 }
 0x717   :  { %2084 = vrot.lane.b32.xlu1 %v6196_v62, %s4622_s21 }
 0x71a   :  { %2090 = vrot.lane.b32.xlu0 %v6158_v7, %s4622_s21 }
 0x71b   :  { %2082 = vrot.lane.b32.xlu1 %v6154_v51, %s4622_s21  ;;  %v6373_v51 = vpop.permute.xlu0 %2118 }
 0x71e   :  { %2094 = vrot.lane.b32.xlu0 %v1800_v61, %s4622_s21 }
 0x71f   :  { %2086 = vrot.lane.b32.xlu1 %v1799_v28, %s4622_s21 }
 0x722   :  { %2088 = vrot.lane.b32.xlu0 %v6110_v63, %s4622_s21  ;;  %v1890_v63 = vpop.permute.xlu1 %1889 }
 0x723   :  { %2080 = vrot.lane.b32.xlu1 %v6106_v43, %s4622_s21  ;;  %v2634_v43 = vld [vmem:[%s8188_s2 + $0x8] sm:$0xff]  ;;  %v1902_v42 = vsel %vm107_vm9, %v1890_v63, %v1898_v45  ;;  %v1906_v5 = vsel %vm107_vm9, %v1898_v45, %v1890_v63  ;;  %v1900_v45 = vsel %vm107_vm9, %v6150_v49, %v6164_v29 }
 0x726   :  { %2516 = vrot.lane.b32.xlu0 %v6246_v13, %s4622_s21  ;;  %v6375_v7 = vpop.permute.xlu1 %2110 }
 0x727   :  { %2514 = vrot.lane.b32.xlu1 %v6252_v54, %s4622_s21 }
 0x72a   :  { %2510 = vrot.lane.b32.xlu0 %v5930_v8, %s4622_s21 }
 0x72b   :  { %2508 = vrot.lane.b32.xlu1 %v5928_v24, %s4622_s21 }
 0x72c   :  { %v1916_v26 = vpop.permute.xlu0 %1915  ;;  %v1908_v27 = vpop.permute.xlu1 %1907 }
 0x72d   :  { %v1923_v12 = vsel %vm107_vm9, %v1908_v27, %v1916_v26  ;;  %v1927_v38 = vsel %vm107_vm9, %v1916_v26, %v1908_v27  ;;  %v1904_v27 = vsel %vm107_vm9, %v6164_v29, %v6150_v49 }
 0x72e   :  { %2504 = vrot.lane.b32.xlu0 %v6325_v53, %s4622_s21 }
 0x72f   :  { %2502 = vrot.lane.b32.xlu1 %v6329_v25, %s4622_s21 }
 0x732   :  { %2649 = vperm.xlu0 %4568, %v2635_v4  }
 0x733   :  { %2654 = vperm.xlu1 %4569, %v2636_v16   ;;  %v1901_v16 = vsel %vm107_vm9, %v6192_v59, %v6206_v14 }
 0x734   :  { %v6377_v44 = vpop.permute.xlu0 %1867  ;;  %v6379_v56 = vpop.permute.xlu1 %1859 }
 0x736   :  { %2639 = vperm.xlu0 %4568, %v2633_v19  }
 0x737   :  { %2644 = vperm.xlu1 %4569, %v2634_v43   ;;  %v1905_v43 = vsel %vm107_vm9, %v6206_v14, %v6192_v59  ;;  %v1899_v14 = vsel %vm107_vm9, %v6102_v55, %v6116_v37 }
 0x738   :  { %v6381_v0 = vpop.permute.xlu0 %2136  ;;  %v6383_v62 = vpop.permute.xlu1 %2128 }
 0x740   :  { %v1918_v1 = vpop.permute.xlu0 %1917  ;;  %v1910_v15 = vpop.permute.xlu1 %1909 }
 0x741   :  { %v1924_v6 = vsel %vm107_vm9, %v1910_v15, %v1918_v1  ;;  %v1928_v61 = vsel %vm107_vm9, %v1918_v1, %v1910_v15  ;;  %v1903_v15 = vsel %vm107_vm9, %v6116_v37, %v6102_v55 }
 0x748   :  { %v6385_v18 = vpop.permute.xlu0 %1869  ;;  %v6387_v20 = vpop.permute.xlu1 %1861 }
 0x749   :  { %v1876_v37 = vsel %vm107_vm9, %v6387_v20, %v6385_v18 }
 0x74c   :  { %v6389_v21 = vpop.permute.xlu0 %2138  ;;  %v6391_v41 = vpop.permute.xlu1 %2130 }
 0x754   :  { %v1920_v11 = vpop.permute.xlu0 %1919  ;;  %v1912_v30 = vpop.permute.xlu1 %1911 }
 0x755   :  { %v1925_v60 = vsel %vm107_vm9, %v1912_v30, %v1920_v11  ;;  %v1929_v40 = vsel %vm107_vm9, %v1920_v11, %v1912_v30 }
 0x75c   :  { %v6393_v31 = vpop.permute.xlu0 %1871  ;;  %v1864_v36 = vpop.permute.xlu1 %1863 }
 0x75d   :  { %v1877_v30 = vsel %vm107_vm9, %v1864_v36, %v6393_v31  ;;  %v1881_v55 = vsel %vm107_vm9, %v6393_v31, %v1864_v36  ;;  %v1931_v31 = vld [vmem:[%s8193_s7] sm:$0xf] }
 0x760   :  { %v6395_v39 = vpop.permute.xlu0 %2140  ;;  %v6397_v47 = vpop.permute.xlu1 %2132 }
 0x768   :  { %v1922_v48 = vpop.permute.xlu0 %1921 }
 0x769   :  { %v1914_v50 = vpop.permute.xlu1 %1913 }
 0x76a   :  { %v1926_v52 = vsel %vm107_vm9, %v1914_v50, %v1922_v48  ;;  %v1930_v35 = vsel %vm107_vm9, %v1922_v48, %v1914_v50  ;;  %v1880_v50 = vsel %vm107_vm9, %v6385_v18, %v6387_v20 }
 0x76b   :  { %1943 = vmatprep.subr.mxu1 %v1926_v52 }
 0x76c   :  { %1944 = vmatpush1.msra.mxu1 %v1930_v35  ;;  %v2293_v33 = vpop.permute.xlu0 %2292  ;;  %v1875_v35 = vsel %vm107_vm9, %v6379_v56, %v6377_v44 }
 0x76d   :  { %1945 = vmatprep.subr.mxu1 %v1925_v60  ;;  %v2291_v2 = vpop.permute.xlu1 %2290 }
 0x76e   :  { %1946 = vmatpush1.msra.mxu1 %v1929_v40  ;;  %v2294_v58 = vsel %vm107_vm9, %v2291_v2, %v2293_v33  ;;  %v2295_v57 = vsel %vm107_vm9, %v2293_v33, %v2291_v2  ;;  %v1879_v33 = vsel %vm107_vm9, %v6377_v44, %v6379_v56  ;;  %v2150_v2 = vsel %vm333_vm10, %v6395_v39, %v6397_v47 }
 0x76f   :  { %1947 = vmatprep.subr.mxu1 %v1924_v6  ;;  %2338 = vmatprep.subr.mxu0 %v2294_v58  ;;  %v2146_v56 = vsel %vm333_vm10, %v6397_v47, %v6395_v39  ;;  %v2149_v40 = vsel %vm333_vm10, %v6389_v21, %v6391_v41  ;;  %v2145_v39 = vsel %vm333_vm10, %v6391_v41, %v6389_v21  ;;  %v2297_v41 = vld [vmem:[%s8187_s1 + $0x8] sm:$0xff] }
 0x770   :  { %1948 = vmatpush1.msra.mxu1 %v1928_v61  ;;  %2339 = vmatpush1.msra.mxu0 %v2295_v57  ;;  %v6415_v28 = vpop.permute.xlu0 %2114  ;;  %v2296_v57 = vld [vmem:[%s8187_s1] sm:$0xff]  ;;  %v2148_v61 = vsel %vm333_vm10, %v6381_v0, %v6383_v62  ;;  %v2127_v21 = vsel %vm333_vm10, %v6373_v51, %v6375_v7 }
 0x771   :  { %1949 = vmatprep.subr.mxu1 %v1923_v12  ;;  %v6419_v34 = vpop.permute.xlu1 %2106 }
 0x772   :  { %1950 = vmatpush1.msra.mxu1 %v1927_v38  ;;  %v2144_v38 = vsel %vm333_vm10, %v6383_v62, %v6381_v0  ;;  %v2123_v0 = vsel %vm333_vm10, %v6375_v7, %v6373_v51  ;;  %v2125_v51 = vsel %vm333_vm10, %v6415_v28, %v6419_v34  ;;  %v2298_v7 = vld [vmem:[%s8187_s1 + $0x10] sm:$0xff] }
 0x773   :  { %1951 = vmatprep.subr.mxu1 %v1902_v42  ;;  %v2126_v42 = vsel %vm333_vm10, %v6242_v46, %v6218_v32 }
 0x774   :  { %1952 = vmatpush1.msra.mxu1 %v1906_v5  ;;  %v2287_v4 = vpop.permute.xlu0 %2286 }
 0x775   :  { %1953 = vmatprep.subr.mxu1 %v1901_v16  ;;  %v2285_v19 = vpop.permute.xlu1 %2284 }
 0x776   :  { %1954 = vmatpush1.msra.mxu1 %v1905_v43  ;;  %v2288_v63 = vsel %vm107_vm9, %v2285_v19, %v2287_v4  ;;  %v2289_v26 = vsel %vm107_vm9, %v2287_v4, %v2285_v19  ;;  %v2122_v4 = vsel %vm333_vm10, %v6218_v32, %v6242_v46  ;;  %v2121_v32 = vsel %vm333_vm10, %v6419_v34, %v6415_v28 }
 0x777   :  { %1955 = vmatprep.subr.mxu1 %v1900_v45  ;;  %2340 = vmatprep.subr.mxu0 %v2288_v63  ;;  %v2299_v45 = vld [vmem:[%s8187_s1 + $0x18] sm:$0xff] }
 0x778   :  { %1956 = vmatpush1.msra.mxu1 %v1904_v27  ;;  %2341 = vmatpush1.msra.mxu0 %v2289_v26  ;;  %v1874_v59 = vpop.permute.xlu0 %1873 }
 0x779   :  { %1957 = vmatprep.subr.mxu1 %v1899_v14  ;;  %v1866_v1 = vpop.permute.xlu1 %1865 }
 0x77a   :  { %1958 = vmatpush1.msra.mxu1 %v1903_v15  ;;  %v1878_v11 = vsel %vm107_vm9, %v1866_v1, %v1874_v59  ;;  %v1882_v49 = vsel %vm107_vm9, %v1874_v59, %v1866_v1 }
 0x77b   :  { %1959 = vmatprep.subr.mxu1 %v1878_v11 }
 0x77c   :  { %1960 = vmatpush1.msra.mxu1 %v1882_v49  ;;  %v6459_v29 = vpop.permute.xlu0 %2112  ;;  %v4488_v49 = vld [vmem:[%s8193_s7 + $0x8] sm:$0xf] }
 0x77d   :  { %1961 = vmatprep.subr.mxu1 %v1877_v30  ;;  %v6464_v48 = vpop.permute.xlu1 %2104 }
 0x77e   :  { %1962 = vmatpush1.msra.mxu1 %v1881_v55  ;;  %v2124_v16 = vsel %vm333_vm10, %v6459_v29, %v6464_v48  ;;  %v2120_v43 = vsel %vm333_vm10, %v6464_v48, %v6459_v29 }
 0x77f   :  { %1963 = vmatprep.subr.mxu1 %v1876_v37 }
 0x780   :  { %1964 = vmatpush1.msra.mxu1 %v1880_v50  ;;  %v2143_v52 = vpop.permute.xlu0 %2142 }
 0x781   :  { %1965 = vmatprep.subr.mxu1 %v1875_v35  ;;  %v2135_v36 = vpop.permute.xlu1 %2134  ;;  %v4490_v35 = vld [vmem:[%s8187_s1 + $0x20] sm:$0xff] }
 0x782   :  { %1966 = vmatpush1.msra.mxu1 %v1879_v33  ;;  %v2151_v18 = vsel %vm333_vm10, %v2143_v52, %v2135_v36  ;;  %v2147_v20 = vsel %vm333_vm10, %v2135_v36, %v2143_v52  ;;  %v4492_v36 = vld [vmem:[%s8187_s1 + $0x30] sm:$0xff]  ;;  %v4503_v33 = vld [vmem:[%s8187_s1 + $0x48] sm:$0xff] }
 0x783   :  { %2165 = vmatprep.subr.mxu1 %v2151_v18  ;;  %4486 = vmatmul.mubr.msk.f32.vlgmr.msra.gmra.mxu1 %vm695_vm11, %v1931_v31  ;;  %v4493_v18 = vld [vmem:[%s8187_s1 + $0x38] sm:$0xff] }
 0x784   :  { %2166 = vmatpush1.msra.mxu1 %v2147_v20  ;;  %v2281_v60 = vpop.permute.xlu0 %2280  ;;  %2221 = vmatprep.mubr.f32.mxu1 %v4621_v17  ;;  %v4504_v20 = vld [vmem:[%s8187_s1 + $0x50] sm:$0xff] }
 0x785   :  { %2167 = vmatprep.subr.mxu1 %v2150_v2  ;;  %v2279_v44 = vpop.permute.xlu1 %2278 }
 0x786   :  { %2168 = vmatpush1.msra.mxu1 %v2146_v56  ;;  %v2282_v6 = vsel %vm107_vm9, %v2279_v44, %v2281_v60  ;;  %v2283_v58 = vsel %vm107_vm9, %v2281_v60, %v2279_v44  ;;  %v4505_v60 = vld [vmem:[%s8187_s1 + $0x58] sm:$0xff] }
 0x787   :  { %2169 = vmatprep.subr.mxu1 %v2149_v40  ;;  %2342 = vmatprep.subr.mxu0 %v2282_v6 }
 0x788   :  { %2170 = vmatpush1.msra.mxu1 %v2145_v39  ;;  %2343 = vmatpush1.msra.mxu0 %v2283_v58  ;;  %v2093_v47 = vpop.permute.xlu0 %2092 }
 0x789   :  { %2171 = vmatprep.subr.mxu1 %v2148_v61  ;;  %v2085_v12 = vpop.permute.xlu1 %2084  ;;  %4494 = vmatmul.mubr.msk.f32.vlgmr.msra.gmra.mxu0 %vm126_vm8, %v2296_v57 }
 0x78a   :  { %2172 = vmatpush1.msra.mxu1 %v2144_v38  ;;  %2382 = vmatprep.mubr.f32.mxu0 %v4621_v17  ;;  %v2102_v26 = vsel %vm333_vm10, %v2093_v47, %v2085_v12  ;;  %v2098_v59 = vsel %vm333_vm10, %v2085_v12, %v2093_v47 }
 0x78b   :  { %2173 = vmatprep.subr.mxu1 %v2127_v21 }
 0x78c   :  { %2174 = vmatpush1.msra.mxu1 %v2123_v0  ;;  %v2091_v62 = vpop.permute.xlu0 %2090 }
 0x78d   :  { %2175 = vmatprep.subr.mxu1 %v2126_v42  ;;  %v2083_v5 = vpop.permute.xlu1 %2082  ;;  %4495 = vmatmul.mubr.msk.f32.gmra.mxu0 %vm126_vm8, %v2297_v41 }
 0x78e   :  { %2176 = vmatpush1.msra.mxu1 %v2122_v4  ;;  %2388 = vmatprep.mubr.f32.mxu0 %v4621_v17  ;;  %v2101_v14 = vsel %vm333_vm10, %v2091_v62, %v2083_v5  ;;  %v2097_v1 = vsel %vm333_vm10, %v2083_v5, %v2091_v62 }
 0x78f   :  { %2177 = vmatprep.subr.mxu1 %v2125_v51 }
 0x790   :  { %2178 = vmatpush1.msra.mxu1 %v2121_v32  ;;  %v2095_v46 = vpop.permute.xlu0 %2094 }
 0x791   :  { %2179 = vmatprep.subr.mxu1 %v2124_v16  ;;  %v2087_v19 = vpop.permute.xlu1 %2086  ;;  %4496 = vmatmul.mubr.msk.f32.gmra.mxu0 %vm126_vm8, %v2298_v7 }
 0x792   :  { %2180 = vmatpush1.msra.mxu1 %v2120_v43  ;;  %v2103_v28 = vsel %vm333_vm10, %v2095_v46, %v2087_v19  ;;  %v2099_v34 = vsel %vm333_vm10, %v2087_v19, %v2095_v46  ;;  %2394 = vmatprep.mubr.f32.mxu0 %v4621_v17 }
 0x793   :  { %2181 = vmatprep.subr.mxu1 %v2103_v28 }
 0x794   :  { %2182 = vmatpush1.msra.mxu1 %v2099_v34  ;;  %v2089_v63 = vpop.permute.xlu0 %2088 }
 0x795   :  { %2183 = vmatprep.subr.mxu1 %v2102_v26  ;;  %v2081_v27 = vpop.permute.xlu1 %2080  ;;  %4497 = vmatmul.mubr.msk.f32.gmra.mxu0 %vm126_vm8, %v2299_v45 }
 0x796   :  { %2184 = vmatpush1.msra.mxu1 %v2098_v59  ;;  %2600 = vmatprep.mubr.f32.mxu0 %v4621_v17  ;;  %v2100_v11 = vsel %vm333_vm10, %v2089_v63, %v2081_v27  ;;  %v2096_v30 = vsel %vm333_vm10, %v2081_v27, %v2089_v63 }
 0x797   :  { %2185 = vmatprep.subr.mxu1 %v2101_v14 }
 0x798   :  { %2186 = vmatpush1.msra.mxu1 %v2097_v1  ;;  %v2517_v15 = vpop.permute.xlu0 %2516 }
 0x799   :  { %2187 = vmatprep.subr.mxu1 %v2100_v11  ;;  %v2515_v29 = vpop.permute.xlu1 %2514 }
 0x79a   :  { %2188 = vmatpush1.msra.mxu1 %v2096_v30  ;;  %v2519_v48 = vsel %vm333_vm10, %v2517_v15, %v2515_v29  ;;  %v2518_v55 = vsel %vm333_vm10, %v2515_v29, %v2517_v15 }
 0x79b   :  { %4489 = vmatmul.mubr.msk.f32.vlgmr.msra.gmra.mxu1 %vm695_vm11, %v4488_v49  ;;  %2439 = vmatprep.subr.mxu1 %v6246_v13 }
 0x79c   :  { %2562 = vmatprep.subr.mxu0 %v2519_v48  ;;  %2440 = vmatpush1.msra.mxu1 %v6252_v54  ;;  %v2511_v37 = vpop.permute.xlu0 %2510 }
 0x79d   :  { %2563 = vmatpush1.msra.mxu0 %v2518_v55  ;;  %2441 = vmatprep.subr.mxu1 %v5930_v8  ;;  %v2509_v50 = vpop.permute.xlu1 %2508 }
 0x79e   :  { %2442 = vmatpush1.msra.mxu1 %v5928_v24  ;;  %2477 = vmatprep.mubr.f32.mxu1 %v4621_v17  ;;  %v2513_v52 = vsel %vm333_vm10, %v2511_v37, %v2509_v50  ;;  %v2512_v13 = vsel %vm333_vm10, %v2509_v50, %v2511_v37 }
 0x79f   :  { %2443 = vmatprep.subr.mxu1 %v6325_v53  ;;  %2564 = vmatprep.subr.mxu0 %v2513_v52  ;;  %v4491_v53 = vld [vmem:[%s8187_s1 + $0x28] sm:$0xff] }
 0x7a0   :  { %2444 = vmatpush1.msra.mxu1 %v6329_v25  ;;  %v2505_v8 = vpop.permute.xlu0 %2504  ;;  %2565 = vmatpush1.msra.mxu0 %v2512_v13  ;;  %v4502_v25 = vld [vmem:[%s8187_s1 + $0x40] sm:$0xff] }
 0x7a1   :  { %4498 = vmatmul.mubr.msk.f32.vlgmr.msra.gmra.mxu1 %vm126_vm8, %v4490_v35  ;;  %v2503_v24 = vpop.permute.xlu1 %2502 }
 0x7a2   :  { %v2507_v54 = vsel %vm333_vm10, %v2505_v8, %v2503_v24  ;;  %2483 = vmatprep.mubr.f32.mxu1 %v4621_v17  ;;  %v2506_v31 = vsel %vm333_vm10, %v2503_v24, %v2505_v8 }
 0x7a3   :  { %2566 = vmatprep.subr.mxu0 %v2507_v54 }
 0x7a4   :  { %2567 = vmatpush1.msra.mxu0 %v2506_v31 }
 0x7a5   :  { %4499 = vmatmul.mubr.msk.f32.gmra.mxu1 %vm126_vm8, %v4491_v53  ;;  %4506 = vmatmul.mubr.msk.f32.vlgmr.msra.gmra.mxu0 %vm126_vm8, %v4502_v25 }
 0x7a6   :  { %2489 = vmatprep.mubr.f32.mxu1 %v4621_v17  ;;  %2606 = vmatprep.mubr.f32.mxu0 %v4621_v17 }
 0x7a9   :  { %4500 = vmatmul.mubr.msk.f32.gmra.mxu1 %vm126_vm8, %v4492_v36  ;;  %4507 = vmatmul.mubr.msk.f32.gmra.mxu0 %vm126_vm8, %v4503_v33 }
 0x7aa   :  { %2495 = vmatprep.mubr.f32.mxu1 %v4621_v17  ;;  %2612 = vmatprep.mubr.f32.mxu0 %v4621_v17 }
 0x7ad   :  { %4501 = vmatmul.mubr.msk.f32.gmra.mxu1 %vm126_vm8, %v4493_v18  ;;  %4508 = vmatmul.mubr.msk.f32.gmra.mxu0 %vm126_vm8, %v4504_v20  ;;  %v2650_v5 = vpop.permute.xlu0 %2649 }
 0x7ae   :  { %2618 = vmatprep.mubr.f32.mxu0 %v4621_v17  ;;  %2941 = vmatprep.mubr.f32.mxu1 %v4621_v17  ;;  %v2655_v14 = vpop.permute.xlu1 %2654 }
 0x7b1   :  { %4509 = vmatmul.mubr.msk.f32.gmra.mxu0 %vm126_vm8, %v4505_v60  ;;  %v2640_v16 = vpop.permute.xlu0 %2639 }
 0x7b2   :  { %3042 = vmatprep.mubr.f32.mxu0 %v4621_v17  ;;  %v2645_v55 = vpop.permute.xlu1 %2644 }
 0x7ce   :  { %v2075_v2 = vpop.f32.mrf.mxu0 }
 0x7d0   :  { %v2077_v56 = vpop.f32.mrf.mxu0 }
 0x843   :  { %v2001_v44 = vpop.f32.mrf.mxu1 }
 0x844   :  { %v2076_v12 = vadd.f32 %v2075_v2, %v2001_v44 }
 0x845   :  { %v2003_v40 = vpop.f32.mrf.mxu1 }
 0x846   :  { %v2078_v6 = vadd.f32 %v2077_v56, %v2003_v40 }
 0x849   :  { %v2378_v58 = vpop.f32.mrf.mxu0 }
 0x84b   :  { %v2380_v57 = vpop.f32.mrf.mxu0 }
 0x84d   :  { %v2384_v39 = vpop.f32.mrf.mxu0 }
 0x84f   :  { %v2386_v47 = vpop.f32.mrf.mxu0 }
 0x851   :  { %v2390_v61 = vpop.f32.mrf.mxu0 }
 0x853   :  { %v2392_v21 = vpop.f32.mrf.mxu0 }
 0x855   :  { %v2396_v42 = vpop.f32.mrf.mxu0 }
 0x857   :  { %v2398_v51 = vpop.f32.mrf.mxu0 }
 0x85b   :  { %v2223_v38 = vpop.f32.mrf.mxu1 }
 0x85c   :  { %v6653_v41 = vadd.f32 %v2223_v38, %v2076_v12 }
 0x85d   :  { %v2225_v0 = vpop.f32.mrf.mxu1 }
 0x85e   :  { %v6655_v62 = vadd.f32 %v2225_v0, %v2078_v6 }
 0x861   :  { %v2479_v4 = vpop.f32.mrf.mxu1 }
 0x862   :  { %v2480_v32 = vadd.f32 %v2479_v4, %v2378_v58 }
 0x863   :  { %v2481_v7 = vpop.f32.mrf.mxu1 }
 0x864   :  { %v2482_v19 = vadd.f32 %v2481_v7, %v2380_v57 }
 0x865   :  { %v2602_v46 = vpop.f32.mrf.mxu0  ;;  %v2485_v28 = vpop.f32.mrf.mxu1 }
 0x866   :  { %v2625_v43 = vadd.f32 %v2602_v46, %v2480_v32  ;;  %v2486_v15 = vadd.f32 %v2485_v28, %v2384_v39 }
 0x867   :  { %v2604_v34 = vpop.f32.mrf.mxu0  ;;  %v2487_v1 = vpop.f32.mrf.mxu1 }
 0x868   :  { %v2657_v45 = vadd.f32 %v2640_v16, %v2625_v43  ;;  %v2626_v63 = vadd.f32 %v2604_v34, %v2482_v19  ;;  %v2488_v29 = vadd.f32 %v2487_v1, %v2386_v47 }
 0x869   :  { %v2608_v26 = vpop.f32.mrf.mxu0  ;;  %v2491_v35 = vpop.f32.mrf.mxu1 }
 0x86a   :  { %v6657_v27 = vmax.f32 %v2657_v45, 0.0  ;;  %v2658_v59 = vadd.f32 %v2640_v16, %v2626_v63  ;;  %v2627_v30 = vadd.f32 %v2608_v26, %v2486_v15  ;;  %v2492_v54 = vadd.f32 %v2491_v35, %v2390_v61 }
 0x86b   :  { %v2610_v49 = vpop.f32.mrf.mxu0  ;;  %v2493_v24 = vpop.f32.mrf.mxu1 }
 0x86c   :  { %v6659_v11 = vmax.f32 %v2658_v59, 0.0  ;;  %2729 = vrot.lane.b32.xlu1 %v6657_v27, %s4618_s17  ;;  %v2628_v48 = vadd.f32 %v2610_v49, %v2488_v29  ;;  %v2659_v37 = vadd.f32 %v2645_v55, %v2627_v30  ;;  %v2494_v53 = vadd.f32 %v2493_v24, %v2392_v21 }
 0x86d   :  { %v2614_v8 = vpop.f32.mrf.mxu0  ;;  %v2497_v60 = vpop.f32.mrf.mxu1 }
 0x86e   :  { %2737 = vrot.lane.b32.xlu0 %v6659_v11, %s4618_s17  ;;  %v2660_v50 = vadd.f32 %v2645_v55, %v2628_v48  ;;  %v6671_v52 = vmax.f32 %v2659_v37, 0.0  ;;  %v2629_v25 = vadd.f32 %v2614_v8, %v2492_v54  ;;  %v2498_v40 = vadd.f32 %v2497_v60, %v2396_v42 }
 0x86f   :  { %v2616_v31 = vpop.f32.mrf.mxu0  ;;  %v2499_v56 = vpop.f32.mrf.mxu1 }
 0x870   :  { %2753 = vrot.lane.b32.xlu1 %v6657_v27, %s4617_s16  ;;  %v6675_v13 = vmax.f32 %v2660_v50, 0.0  ;;  %v2630_v36 = vadd.f32 %v2616_v31, %v2494_v53  ;;  %v2661_v33 = vadd.f32 %v2650_v5, %v2629_v25  ;;  %v2500_v58 = vadd.f32 %v2499_v56, %v2398_v51 }
 0x871   :  { %v2620_v44 = vpop.f32.mrf.mxu0 }
 0x872   :  { %2761 = vrot.lane.b32.xlu0 %v6659_v11, %s4617_s16  ;;  %v2662_v18 = vadd.f32 %v2650_v5, %v2630_v36  ;;  %v6691_v20 = vmax.f32 %v2661_v33, 0.0  ;;  %v2631_v57 = vadd.f32 %v2620_v44, %v2498_v40 }
 0x873   :  { %v2622_v6 = vpop.f32.mrf.mxu0 }
 0x874   :  { %2673 = vrot.lane.b32.xlu1 %v6657_v27, %s4619_s18  ;;  %v6695_v2 = vmax.f32 %v2662_v18, 0.0  ;;  %v2632_v39 = vadd.f32 %v2622_v6, %v2500_v58  ;;  %v2663_v47 = vadd.f32 %v2655_v14, %v2631_v57 }
 0x876   :  { %2681 = vrot.lane.b32.xlu0 %v6659_v11, %s4619_s18  ;;  %v2664_v61 = vadd.f32 %v2655_v14, %v2632_v39  ;;  %v6711_v12 = vmax.f32 %v2663_v47, 0.0 }
 0x878   :  { %2731 = vrot.lane.b32.xlu1 %v6671_v52, %s4618_s17  ;;  %v6715_v38 = vmax.f32 %v2664_v61, 0.0 }
 0x87a   :  { %2739 = vrot.lane.b32.xlu0 %v6675_v13, %s4618_s17 }
 0x87c   :  { %2755 = vrot.lane.b32.xlu1 %v6671_v52, %s4617_s16 }
 0x87e   :  { %2763 = vrot.lane.b32.xlu0 %v6675_v13, %s4617_s16 }
 0x880   :  { %2675 = vrot.lane.b32.xlu1 %v6671_v52, %s4619_s18 }
 0x882   :  { %2683 = vrot.lane.b32.xlu0 %v6675_v13, %s4619_s18 }
 0x884   :  { %2699 = vrot.lane.b32.xlu1 %v6671_v52, %s4620_s0 }
 0x886   :  { %2707 = vrot.lane.b32.xlu0 %v6675_v13, %s4620_s0 }
 0x888   :  { %2733 = vrot.lane.b32.xlu1 %v6691_v20, %s4618_s17 }
 0x88a   :  { %2741 = vrot.lane.b32.xlu0 %v6695_v2, %s4618_s17 }
 0x88c   :  { %2757 = vrot.lane.b32.xlu1 %v6691_v20, %s4617_s16 }
 0x88e   :  { %2765 = vrot.lane.b32.xlu0 %v6695_v2, %s4617_s16 }
 0x890   :  { %2677 = vrot.lane.b32.xlu1 %v6691_v20, %s4619_s18 }
 0x892   :  { %2685 = vrot.lane.b32.xlu0 %v6695_v2, %s4619_s18 }
 0x894   :  { %2701 = vrot.lane.b32.xlu1 %v6691_v20, %s4620_s0 }
 0x896   :  { %2709 = vrot.lane.b32.xlu0 %v6695_v2, %s4620_s0 }
 0x898   :  { %2735 = vrot.lane.b32.xlu1 %v6711_v12, %s4618_s17 }
 0x89a   :  { %2743 = vrot.lane.b32.xlu0 %v6715_v38, %s4618_s17 }
 0x89c   :  { %2759 = vrot.lane.b32.xlu1 %v6711_v12, %s4617_s16 }
 0x89e   :  { %2767 = vrot.lane.b32.xlu0 %v6715_v38, %s4617_s16 }
 0x8a0   :  { %2697 = vrot.lane.b32.xlu1 %v6657_v27, %s4620_s0 }
 0x8a2   :  { %2705 = vrot.lane.b32.xlu0 %v6659_v11, %s4620_s0 }
 0x8a4   :  { %2679 = vrot.lane.b32.xlu1 %v6711_v12, %s4619_s18 }
 0x8a6   :  { %2825 = vrot.lane.b32.xlu0 %v6695_v2, %s4616_s13 }
 0x8a8   :  { %2703 = vrot.lane.b32.xlu1 %v6711_v12, %s4620_s0 }
 0x8aa   :  { %2687 = vrot.lane.b32.xlu0 %v6715_v38, %s4619_s18 }
 0x8ac   :  { %2819 = vrot.lane.b32.xlu1 %v6711_v12, %s4616_s13 }
 0x8ae   :  { %2711 = vrot.lane.b32.xlu0 %v6715_v38, %s4620_s0 }
 0x8b0   :  { %2817 = vrot.lane.b32.xlu1 %v6691_v20, %s4616_s13 }
 0x8b2   :  { %2823 = vrot.lane.b32.xlu0 %v6675_v13, %s4616_s13 }
 0x8b4   :  { %2815 = vrot.lane.b32.xlu1 %v6671_v52, %s4616_s13 }
 0x8b6   :  { %2821 = vrot.lane.b32.xlu0 %v6659_v11, %s4616_s13 }
 0x8b8   :  { %2813 = vrot.lane.b32.xlu1 %v6657_v27, %s4616_s13 }
 0x8ba   :  { %2827 = vrot.lane.b32.xlu0 %v6715_v38, %s4616_s13 }
 0x8de   :  { %v2730_v21 = vpop.permute.xlu1 %2729 }
 0x8e0   :  { %v2738_v0 = vpop.permute.xlu0 %2737 }
 0x8e1   :  { %v2745_v4 = vsel %vm82_vm1, %v2730_v21, %v2738_v0  ;;  %v2749_v51 = vsel %vm82_vm1, %v2738_v0, %v2730_v21 }
 0x8e2   :  { %v2754_v42 = vpop.permute.xlu1 %2753 }
 0x8e4   :  { %v2762_v5 = vpop.permute.xlu0 %2761 }
 0x8e5   :  { %v2769_v7 = vsel %vm89_vm0, %v2754_v42, %v2762_v5  ;;  %v2773_v32 = vsel %vm89_vm0, %v2762_v5, %v2754_v42 }
 0x8e6   :  { %v2674_v46 = vpop.permute.xlu1 %2673  ;;  %v6763_v16 = vsel %vm4708_vm3, %v2745_v4, %v2773_v32  ;;  %v6767_v19 = vsel %vm4704_vm2, %v2749_v51, %v2769_v7 }
 0x8e7   :  { %2845 = vrot.lane.b32.xlu0 %v6763_v16, %s4616_s13  ;;  %2837 = vrot.lane.b32.xlu1 %v6767_v19, %s4616_s13 }
 0x8e8   :  { %v2682_v43 = vpop.permute.xlu0 %2681 }
 0x8e9   :  { %v2689_v56 = vsel %vm62_vm4, %v2674_v46, %v2682_v43  ;;  %v2693_v58 = vsel %vm62_vm4, %v2682_v43, %v2674_v46 }
 0x8ea   :  { %v2732_v28 = vpop.permute.xlu1 %2731 }
 0x8ec   :  { %v2740_v34 = vpop.permute.xlu0 %2739 }
 0x8ed   :  { %v2746_v0 = vsel %vm82_vm1, %v2732_v28, %v2740_v34  ;;  %v2750_v51 = vsel %vm82_vm1, %v2740_v34, %v2732_v28 }
 0x8ee   :  { %v2756_v45 = vpop.permute.xlu1 %2755 }
 0x8f0   :  { %v2764_v63 = vpop.permute.xlu0 %2763 }
 0x8f1   :  { %v2774_v40 = vsel %vm89_vm0, %v2764_v63, %v2756_v45  ;;  %v2770_v57 = vsel %vm89_vm0, %v2756_v45, %v2764_v63 }
 0x8f2   :  { %v6773_v26 = vpop.permute.xlu1 %2675  ;;  %v2780_v7 = vsel %vm4708_vm3, %v2746_v0, %v2774_v40  ;;  %v2779_v43 = vsel %vm4704_vm2, %v2750_v51, %v2770_v57 }
 0x8f4   :  { %v6775_v59 = vpop.permute.xlu0 %2683 }
 0x8f6   :  { %v2700_v14 = vpop.permute.xlu1 %2699 }
 0x8f8   :  { %v2708_v1 = vpop.permute.xlu0 %2707 }
 0x8f9   :  { %v2718_v45 = vsel %vm69_vm5, %v2708_v1, %v2700_v14  ;;  %v2714_v63 = vsel %vm69_vm5, %v2700_v14, %v2708_v1 }
 0x8fa   :  { %v2734_v15 = vpop.permute.xlu1 %2733 }
 0x8fc   :  { %v2742_v49 = vpop.permute.xlu0 %2741 }
 0x8fd   :  { %v2747_v6 = vsel %vm82_vm1, %v2734_v15, %v2742_v49  ;;  %v2751_v39 = vsel %vm82_vm1, %v2742_v49, %v2734_v15  ;;  %v2690_v49 = vsel %vm62_vm4, %v6773_v26, %v6775_v59 }
 0x8fe   :  { %v2758_v29 = vpop.permute.xlu1 %2757  ;;  %v6874_v14 = vsel %vm4731_vm6, %v2690_v49, %v2718_v45 }
 0x900   :  { %v2766_v30 = vpop.permute.xlu0 %2765 }
 0x901   :  { %v2775_v54 = vsel %vm89_vm0, %v2766_v30, %v2758_v29  ;;  %v2771_v18 = vsel %vm89_vm0, %v2758_v29, %v2766_v30  ;;  %v2694_v29 = vsel %vm62_vm4, %v6775_v59, %v6773_v26 }
 0x902   :  { %v6777_v48 = vpop.permute.xlu1 %2677  ;;  %v6821_v21 = vsel %vm4708_vm3, %v2747_v6, %v2775_v54  ;;  %v2781_v4 = vsel %vm4704_vm2, %v2751_v39, %v2771_v18  ;;  %v6881_v1 = vsel %vm4735_vm7, %v2694_v29, %v2714_v63 }
 0x904   :  { %v6779_v55 = vpop.permute.xlu0 %2685 }
 0x906   :  { %v6781_v37 = vpop.permute.xlu1 %2701 }
 0x908   :  { %v6783_v50 = vpop.permute.xlu0 %2709 }
 0x909   :  { %v2715_v26 = vsel %vm69_vm5, %v6781_v37, %v6783_v50 }
 0x90a   :  { %v2736_v35 = vpop.permute.xlu1 %2735 }
 0x90c   :  { %v2744_v8 = vpop.permute.xlu0 %2743 }
 0x90d   :  { %v2748_v53 = vsel %vm82_vm1, %v2736_v35, %v2744_v8  ;;  %v2752_v25 = vsel %vm82_vm1, %v2744_v8, %v2736_v35 }
 0x90e   :  { %v2760_v24 = vpop.permute.xlu1 %2759 }
 0x910   :  { %v2768_v31 = vpop.permute.xlu0 %2767 }
 0x911   :  { %v2772_v36 = vsel %vm89_vm0, %v2760_v24, %v2768_v31  ;;  %v2776_v33 = vsel %vm89_vm0, %v2768_v31, %v2760_v24  ;;  %v2719_v31 = vsel %vm69_vm5, %v6783_v50, %v6781_v37  ;;  %v2691_v37 = vsel %vm62_vm4, %v6777_v48, %v6779_v55 }
 0x912   :  { %v6799_v60 = vsel %vm4708_vm3, %v2748_v53, %v2776_v33  ;;  %v6803_v44 = vsel %vm4704_vm2, %v2752_v25, %v2772_v36  ;;  %v2698_v47 = vpop.permute.xlu1 %2697  ;;  %v2695_v36 = vsel %vm62_vm4, %v6779_v55, %v6777_v48  ;;  %v2725_v33 = vsel %vm4731_vm6, %v2691_v37, %v2719_v31  ;;  %v4510_v48 = vld [vmem:[%s8189_s3 + $0x20] sm:$0xff] }
 0x913   :  { %2986 = vmatprep.subr.mxu0 %v6799_v60  ;;  %v2726_v50 = vsel %vm4735_vm7, %v2695_v36, %v2715_v26 }
 0x914   :  { %v2706_v61 = vpop.permute.xlu0 %2705  ;;  %2987 = vmatpush1.msra.mxu0 %v6803_v44 }
 0x915   :  { %v2713_v42 = vsel %vm69_vm5, %v2698_v47, %v2706_v61  ;;  %v2717_v5 = vsel %vm69_vm5, %v2706_v61, %v2698_v47  ;;  %2988 = vmatprep.subr.mxu0 %v6821_v21 }
 0x916   :  { %2989 = vmatpush1.msra.mxu0 %v2781_v4  ;;  %v6838_v32 = vsel %vm4731_vm6, %v2689_v56, %v2717_v5  ;;  %v6842_v46 = vsel %vm4735_vm7, %v2693_v58, %v2713_v42  ;;  %v2680_v34 = vpop.permute.xlu1 %2679 }
 0x917   :  { %2990 = vmatprep.subr.mxu0 %v2780_v7  ;;  %2789 = vrot.lane.b32.xlu1 %v6838_v32, %s4616_s13 }
 0x918   :  { %2797 = vrot.lane.b32.xlu0 %v6842_v46, %s4616_s13  ;;  %v6850_v28 = vpop.permute.xlu0 %2825  ;;  %2991 = vmatpush1.msra.mxu0 %v2779_v43 }
 0x919   :  { %2992 = vmatprep.subr.mxu0 %v6763_v16 }
 0x91a   :  { %2993 = vmatpush1.msra.mxu0 %v6767_v19  ;;  %v2704_v59 = vpop.permute.xlu1 %2703 }
 0x91b   :  { %2994 = vmatprep.subr.mxu0 %v6715_v38  ;;  %2839 = vrot.lane.b32.xlu1 %v2779_v43, %s4616_s13 }
 0x91c   :  { %2847 = vrot.lane.b32.xlu0 %v2780_v7, %s4616_s13  ;;  %v2688_v15 = vpop.permute.xlu0 %2687  ;;  %2995 = vmatpush1.msra.mxu0 %v6711_v12 }
 0x91d   :  { %2996 = vmatprep.subr.mxu0 %v6695_v2  ;;  %v2692_v35 = vsel %vm62_vm4, %v2680_v34, %v2688_v15  ;;  %v2696_v8 = vsel %vm62_vm4, %v2688_v15, %v2680_v34 }
 0x91e   :  { %2997 = vmatpush1.msra.mxu0 %v6691_v20 }
 0x91f   :  { %2998 = vmatprep.subr.mxu0 %v6675_v13  ;;  %2791 = vrot.lane.b32.xlu1 %v6874_v14, %s4616_s13 }
 0x920   :  { %2799 = vrot.lane.b32.xlu0 %v6881_v1, %s4616_s13  ;;  %v2712_v30 = vpop.permute.xlu0 %2711  ;;  %2999 = vmatpush1.msra.mxu0 %v6671_v52 }
 0x921   :  { %v2716_v24 = vsel %vm69_vm5, %v2704_v59, %v2712_v30  ;;  %v2720_v54 = vsel %vm69_vm5, %v2712_v30, %v2704_v59  ;;  %3000 = vmatprep.subr.mxu0 %v6659_v11 }
 0x922   :  { %3001 = vmatpush1.msra.mxu0 %v6657_v27  ;;  %v2728_v53 = vsel %vm4735_vm7, %v2696_v8, %v2716_v24  ;;  %v2727_v25 = vsel %vm4731_vm6, %v2692_v35, %v2720_v54 }
 0x923   :  { %2841 = vrot.lane.b32.xlu1 %v2781_v4, %s4616_s13  ;;  %3002 = vmatprep.subr.mxu0 %v2728_v53 }
 0x924   :  { %2849 = vrot.lane.b32.xlu0 %v6821_v21, %s4616_s13  ;;  %3003 = vmatpush1.msra.mxu0 %v2727_v25 }
 0x925   :  { %3004 = vmatprep.subr.mxu0 %v2726_v50 }
 0x926   :  { %3005 = vmatpush1.msra.mxu0 %v2725_v33 }
 0x927   :  { %2793 = vrot.lane.b32.xlu1 %v2725_v33, %s4616_s13  ;;  %3006 = vmatprep.subr.mxu0 %v6881_v1 }
 0x928   :  { %2801 = vrot.lane.b32.xlu0 %v2726_v50, %s4616_s13  ;;  %3007 = vmatpush1.msra.mxu0 %v6874_v14 }
 0x929   :  { %3008 = vmatprep.subr.mxu0 %v6842_v46 }
 0x92a   :  { %3009 = vmatpush1.msra.mxu0 %v6838_v32 }
 0x92b   :  { %3119 = vrot.lane.b32.xlu1 %v2781_v4, %s4622_s21  ;;  %4518 = vmatmul.mubr.msk.f32.vlgmr.msra.gmra.mxu0 %vm695_vm11, %v4510_v48 }
 0x92c   :  { %3127 = vrot.lane.b32.xlu0 %v6821_v21, %s4622_s21  ;;  %3048 = vmatprep.mubr.f32.mxu0 %v4621_v17 }
 0x92f   :  { %2843 = vrot.lane.b32.xlu1 %v6803_v44, %s4616_s13 }
 0x930   :  { %2851 = vrot.lane.b32.xlu0 %v6799_v60, %s4616_s13 }
 0x933   :  { %3117 = vrot.lane.b32.xlu1 %v2779_v43, %s4622_s21 }
 0x934   :  { %3125 = vrot.lane.b32.xlu0 %v2780_v7, %s4622_s21 }
 0x937   :  { %3115 = vrot.lane.b32.xlu1 %v6767_v19, %s4622_s21  ;;  %v2824_v19 = vpop.permute.xlu0 %2823 }
 0x938   :  { %3123 = vrot.lane.b32.xlu0 %v6763_v16, %s4622_s21 }
 0x93b   :  { %3097 = vrot.lane.b32.xlu1 %v6711_v12, %s4622_s21  ;;  %v4511_v12 = vld [vmem:[%s8189_s3 + $0x28] sm:$0xff]  ;;  %v2822_v18 = vpop.permute.xlu0 %2821 }
 0x93c   :  { %3105 = vrot.lane.b32.xlu0 %v6715_v38, %s4622_s21  ;;  %4519 = vmatmul.mubr.msk.f32.gmra.mxu0 %vm695_vm11, %v4511_v12  ;;  %v2820_v38 = vpop.permute.xlu1 %2819 }
 0x93d   :  { %3054 = vmatprep.mubr.f32.mxu0 %v4621_v17 }
 0x93f   :  { %2795 = vrot.lane.b32.xlu1 %v2727_v25, %s4616_s13 }
 0x940   :  { %2803 = vrot.lane.b32.xlu0 %v2728_v53, %s4616_s13  ;;  %v2818_v16 = vpop.permute.xlu1 %2817 }
 0x941   :  { %v2831_v8 = vsel %vm107_vm9, %v2818_v16, %v6850_v28  ;;  %v2835_v31 = vsel %vm107_vm9, %v6850_v28, %v2818_v16  ;;  %v2861_v16 = vld [vmem:[%s8189_s3] sm:$0xff] }
 0x943   :  { %3095 = vrot.lane.b32.xlu1 %v6691_v20, %s4622_s21  ;;  %v4512_v20 = vld [vmem:[%s8189_s3 + $0x30] sm:$0xff] }
 0x944   :  { %3103 = vrot.lane.b32.xlu0 %v6695_v2, %s4622_s21  ;;  %4520 = vmatmul.mubr.msk.f32.gmra.mxu0 %vm695_vm11, %v4512_v20  ;;  %v4513_v2 = vld [vmem:[%s8189_s3 + $0x38] sm:$0xff]  ;;  %v2816_v55 = vpop.permute.xlu1 %2815 }
 0x945   :  { %3060 = vmatprep.mubr.f32.mxu0 %v4621_v17 }
 0x947   :  { %3121 = vrot.lane.b32.xlu1 %v6803_v44, %s4622_s21  ;;  %v2828_v44 = vpop.permute.xlu0 %2827 }
 0x948   :  { %3129 = vrot.lane.b32.xlu0 %v6799_v60, %s4622_s21  ;;  %4521 = vmatmul.mubr.msk.f32.gmra.mxu0 %vm695_vm11, %v4513_v2  ;;  %v2814_v60 = vpop.permute.xlu1 %2813  ;;  %v2832_v30 = vsel %vm107_vm9, %v2820_v38, %v2828_v44  ;;  %v2836_v35 = vsel %vm107_vm9, %v2828_v44, %v2820_v38 }
 0x949   :  { %3560 = vmatprep.mubr.f32.mxu0 %v4621_v17  ;;  %v2829_v36 = vsel %vm107_vm9, %v2814_v60, %v2822_v18 }
 0x94b   :  { %3093 = vrot.lane.b32.xlu1 %v6671_v52, %s4622_s21  ;;  %v3253_v52 = vld [vmem:[%s8190_s4 + $0x8] sm:$0xff] }
 0x94c   :  { %3101 = vrot.lane.b32.xlu0 %v6675_v13, %s4622_s21  ;;  %v3252_v13 = vld [vmem:[%s8190_s4] sm:$0xff] }
 0x94f   :  { %3091 = vrot.lane.b32.xlu1 %v6657_v27, %s4622_s21  ;;  %v3255_v27 = vld [vmem:[%s8190_s4 + $0x18] sm:$0xff] }
 0x950   :  { %3099 = vrot.lane.b32.xlu0 %v6659_v11, %s4622_s21  ;;  %v3254_v11 = vld [vmem:[%s8190_s4 + $0x10] sm:$0xff] }
 0x953   :  { %3071 = vrot.lane.b32.xlu1 %v2725_v33, %s4622_s21  ;;  %v2833_v33 = vsel %vm107_vm9, %v2822_v18, %v2814_v60 }
 0x954   :  { %3079 = vrot.lane.b32.xlu0 %v2726_v50, %s4622_s21 }
 0x957   :  { %3073 = vrot.lane.b32.xlu1 %v2727_v25, %s4622_s21  ;;  %v2834_v25 = vsel %vm107_vm9, %v2824_v19, %v2816_v55 }
 0x958   :  { %3081 = vrot.lane.b32.xlu0 %v2728_v53, %s4622_s21  ;;  %v2830_v53 = vsel %vm107_vm9, %v2816_v55, %v2824_v19 }
 0x959   :  { %v2838_v56 = vpop.permute.xlu1 %2837  ;;  %v2846_v40 = vpop.permute.xlu0 %2845 }
 0x95a   :  { %v2857_v59 = vsel %vm107_vm9, %v2846_v40, %v2838_v56 }
 0x95b   :  { %3069 = vrot.lane.b32.xlu1 %v6874_v14, %s4622_s21  ;;  %v2853_v14 = vsel %vm107_vm9, %v2838_v56, %v2846_v40  ;;  %v2862_v40 = vld [vmem:[%s8189_s3 + $0x8] sm:$0xff] }
 0x95c   :  { %3077 = vrot.lane.b32.xlu0 %v6881_v1, %s4622_s21 }
 0x95f   :  { %3067 = vrot.lane.b32.xlu1 %v6838_v32, %s4622_s21 }
 0x960   :  { %3075 = vrot.lane.b32.xlu0 %v6842_v46, %s4622_s21 }
 0x963   :  { %3273 = vperm.xlu1 %4569, %v3255_v27  }
 0x964   :  { %3268 = vperm.xlu0 %4568, %v3254_v11  }
 0x967   :  { %3263 = vperm.xlu1 %4569, %v3253_v52  }
 0x968   :  { %3258 = vperm.xlu0 %4568, %v3252_v13  }
 0x989   :  { %v7008_v6 = vpop.permute.xlu1 %2789 }
 0x98a   :  { %v7010_v58 = vpop.permute.xlu0 %2797 }
 0x98b   :  { %v2805_v13 = vsel %vm107_vm9, %v7008_v6, %v7010_v58  ;;  %v2809_v55 = vsel %vm107_vm9, %v7010_v58, %v7008_v6 }
 0x98d   :  { %v2840_v57 = vpop.permute.xlu1 %2839 }
 0x98e   :  { %v2848_v39 = vpop.permute.xlu0 %2847 }
 0x98f   :  { %v2854_v49 = vsel %vm107_vm9, %v2840_v57, %v2848_v39  ;;  %v2858_v29 = vsel %vm107_vm9, %v2848_v39, %v2840_v57 }
 0x991   :  { %v7012_v47 = vpop.permute.xlu1 %2791 }
 0x992   :  { %v2800_v61 = vpop.permute.xlu0 %2799 }
 0x993   :  { %v2806_v11 = vsel %vm107_vm9, %v7012_v47, %v2800_v61  ;;  %v2810_v52 = vsel %vm107_vm9, %v2800_v61, %v7012_v47 }
 0x995   :  { %v2842_v21 = vpop.permute.xlu1 %2841 }
 0x996   :  { %v2850_v0 = vpop.permute.xlu0 %2849 }
 0x997   :  { %v2855_v34 = vsel %vm107_vm9, %v2842_v21, %v2850_v0  ;;  %v2859_v15 = vsel %vm107_vm9, %v2850_v0, %v2842_v21  ;;  %v2863_v21 = vld [vmem:[%s8189_s3 + $0x10] sm:$0xff] }
 0x999   :  { %v2794_v42 = vpop.permute.xlu1 %2793 }
 0x99a   :  { %v2802_v5 = vpop.permute.xlu0 %2801 }
 0x99b   :  { %v2807_v12 = vsel %vm107_vm9, %v2794_v42, %v2802_v5  ;;  %v2811_v27 = vsel %vm107_vm9, %v2802_v5, %v2794_v42 }
 0x99d   :  { %v7014_v4 = vpop.permute.xlu1 %3119 }
 0x99e   :  { %v7016_v51 = vpop.permute.xlu0 %3127 }
 0x99f   :  { %v3137_v44 = vsel %vm333_vm10, %v7016_v51, %v7014_v4  ;;  %v3133_v58 = vsel %vm333_vm10, %v7014_v4, %v7016_v51 }
 0x9a1   :  { %v2844_v7 = vpop.permute.xlu1 %2843 }
 0x9a2   :  { %v2852_v32 = vpop.permute.xlu0 %2851 }
 0x9a3   :  { %v2856_v46 = vsel %vm107_vm9, %v2844_v7, %v2852_v32  ;;  %v2860_v43 = vsel %vm107_vm9, %v2852_v32, %v2844_v7  ;;  %v2864_v32 = vld [vmem:[%s8189_s3 + $0x18] sm:$0xff] }
 0x9a4   :  { %2885 = vmatprep.subr.mxu1 %v2856_v46 }
 0x9a5   :  { %2886 = vmatpush1.msra.mxu1 %v2860_v43  ;;  %v7024_v45 = vpop.permute.xlu1 %3117 }
 0x9a6   :  { %v7026_v63 = vpop.permute.xlu0 %3125  ;;  %2887 = vmatprep.subr.mxu1 %v2855_v34 }
 0x9a7   :  { %2888 = vmatpush1.msra.mxu1 %v2859_v15  ;;  %v3136_v57 = vsel %vm333_vm10, %v7026_v63, %v7024_v45  ;;  %v3132_v39 = vsel %vm333_vm10, %v7024_v45, %v7026_v63 }
 0x9a8   :  { %2889 = vmatprep.subr.mxu1 %v2854_v49 }
 0x9a9   :  { %2890 = vmatpush1.msra.mxu1 %v2858_v29  ;;  %v7036_v1 = vpop.permute.xlu1 %3115 }
 0x9aa   :  { %v7038_v26 = vpop.permute.xlu0 %3123  ;;  %2891 = vmatprep.subr.mxu1 %v2853_v14 }
 0x9ab   :  { %2892 = vmatpush1.msra.mxu1 %v2857_v59  ;;  %v3135_v47 = vsel %vm333_vm10, %v7038_v26, %v7036_v1  ;;  %v3131_v42 = vsel %vm333_vm10, %v7036_v1, %v7038_v26 }
 0x9ac   :  { %2893 = vmatprep.subr.mxu1 %v2832_v30 }
 0x9ad   :  { %2894 = vmatpush1.msra.mxu1 %v2836_v35  ;;  %v7049_v24 = vpop.permute.xlu1 %3097 }
 0x9ae   :  { %v7051_v54 = vpop.permute.xlu0 %3105  ;;  %2895 = vmatprep.subr.mxu1 %v2831_v8 }
 0x9af   :  { %2896 = vmatpush1.msra.mxu1 %v2835_v31  ;;  %v3114_v5 = vsel %vm333_vm10, %v7051_v54, %v7049_v24  ;;  %v3110_v4 = vsel %vm333_vm10, %v7049_v24, %v7051_v54 }
 0x9b0   :  { %2897 = vmatprep.subr.mxu1 %v2830_v53 }
 0x9b1   :  { %2898 = vmatpush1.msra.mxu1 %v2834_v25  ;;  %v2796_v37 = vpop.permute.xlu1 %2795 }
 0x9b2   :  { %v2804_v50 = vpop.permute.xlu0 %2803  ;;  %2899 = vmatprep.subr.mxu1 %v2829_v36  ;;  %v4522_v36 = vld [vmem:[%s8189_s3 + $0x40] sm:$0xff] }
 0x9b3   :  { %2900 = vmatpush1.msra.mxu1 %v2833_v33  ;;  %v2808_v28 = vsel %vm107_vm9, %v2796_v37, %v2804_v50  ;;  %v2812_v48 = vsel %vm107_vm9, %v2804_v50, %v2796_v37  ;;  %v4523_v37 = vld [vmem:[%s8189_s3 + $0x48] sm:$0xff]  ;;  %v4524_v50 = vld [vmem:[%s8189_s3 + $0x50] sm:$0xff]  ;;  %v4525_v33 = vld [vmem:[%s8189_s3 + $0x58] sm:$0xff] }
 0x9b4   :  { %2901 = vmatprep.subr.mxu1 %v2808_v28 }
 0x9b5   :  { %2902 = vmatpush1.msra.mxu1 %v2812_v48  ;;  %v3096_v20 = vpop.permute.xlu1 %3095 }
 0x9b6   :  { %v3104_v2 = vpop.permute.xlu0 %3103  ;;  %2903 = vmatprep.subr.mxu1 %v2807_v12 }
 0x9b7   :  { %2904 = vmatpush1.msra.mxu1 %v2811_v27  ;;  %v3113_v51 = vsel %vm333_vm10, %v3104_v2, %v3096_v20  ;;  %v3109_v43 = vsel %vm333_vm10, %v3096_v20, %v3104_v2 }
 0x9b8   :  { %2905 = vmatprep.subr.mxu1 %v2806_v11 }
 0x9b9   :  { %2906 = vmatpush1.msra.mxu1 %v2810_v52  ;;  %v3122_v38 = vpop.permute.xlu1 %3121 }
 0x9ba   :  { %v3130_v19 = vpop.permute.xlu0 %3129  ;;  %2907 = vmatprep.subr.mxu1 %v2805_v13 }
 0x9bb   :  { %2908 = vmatpush1.msra.mxu1 %v2809_v55  ;;  %v3138_v18 = vsel %vm333_vm10, %v3130_v19, %v3122_v38  ;;  %v3134_v60 = vsel %vm333_vm10, %v3122_v38, %v3130_v19 }
 0x9bc   :  { %3163 = vmatprep.subr.mxu1 %v3138_v18  ;;  %4514 = vmatmul.mubr.msk.f32.vlgmr.msra.gmra.mxu1 %vm695_vm11, %v2861_v16 }
 0x9bd   :  { %3164 = vmatpush1.msra.mxu1 %v3134_v60  ;;  %v3094_v56 = vpop.permute.xlu1 %3093  ;;  %2947 = vmatprep.mubr.f32.mxu1 %v4621_v17 }
 0x9be   :  { %v3102_v6 = vpop.permute.xlu0 %3101  ;;  %3165 = vmatprep.subr.mxu1 %v3137_v44 }
 0x9bf   :  { %3166 = vmatpush1.msra.mxu1 %v3133_v58  ;;  %v3112_v34 = vsel %vm333_vm10, %v3102_v6, %v3094_v56  ;;  %v3108_v45 = vsel %vm333_vm10, %v3094_v56, %v3102_v6 }
 0x9c0   :  { %3167 = vmatprep.subr.mxu1 %v3136_v57  ;;  %4515 = vmatmul.mubr.msk.f32.gmra.mxu1 %vm695_vm11, %v2862_v40 }
 0x9c1   :  { %3168 = vmatpush1.msra.mxu1 %v3132_v39  ;;  %v3092_v61 = vpop.permute.xlu1 %3091  ;;  %2953 = vmatprep.mubr.f32.mxu1 %v4621_v17 }
 0x9c2   :  { %v3100_v0 = vpop.permute.xlu0 %3099  ;;  %3169 = vmatprep.subr.mxu1 %v3135_v47 }
 0x9c3   :  { %3170 = vmatpush1.msra.mxu1 %v3131_v42  ;;  %v3111_v63 = vsel %vm333_vm10, %v3100_v0, %v3092_v61  ;;  %v3107_v29 = vsel %vm333_vm10, %v3092_v61, %v3100_v0 }
 0x9c4   :  { %3171 = vmatprep.subr.mxu1 %v3114_v5  ;;  %4516 = vmatmul.mubr.msk.f32.gmra.mxu1 %vm695_vm11, %v2863_v21 }
 0x9c5   :  { %3172 = vmatpush1.msra.mxu1 %v3110_v4  ;;  %v3072_v7 = vpop.permute.xlu1 %3071  ;;  %2959 = vmatprep.mubr.f32.mxu1 %v4621_v17 }
 0x9c6   :  { %v3080_v46 = vpop.permute.xlu0 %3079  ;;  %3173 = vmatprep.subr.mxu1 %v3113_v51 }
 0x9c7   :  { %3174 = vmatpush1.msra.mxu1 %v3109_v43  ;;  %v3089_v26 = vsel %vm333_vm10, %v3080_v46, %v3072_v7  ;;  %v3085_v35 = vsel %vm333_vm10, %v3072_v7, %v3080_v46 }
 0x9c8   :  { %3175 = vmatprep.subr.mxu1 %v3112_v34  ;;  %4517 = vmatmul.mubr.msk.f32.gmra.mxu1 %vm695_vm11, %v2864_v32 }
 0x9c9   :  { %3176 = vmatpush1.msra.mxu1 %v3108_v45  ;;  %v3074_v15 = vpop.permute.xlu1 %3073  ;;  %3219 = vmatprep.mubr.f32.mxu1 %v4621_v17 }
 0x9ca   :  { %v3082_v49 = vpop.permute.xlu0 %3081  ;;  %3177 = vmatprep.subr.mxu1 %v3111_v63 }
 0x9cb   :  { %3178 = vmatpush1.msra.mxu1 %v3107_v29  ;;  %v3090_v14 = vsel %vm333_vm10, %v3082_v49, %v3074_v15  ;;  %v3086_v1 = vsel %vm333_vm10, %v3074_v15, %v3082_v49 }
 0x9cc   :  { %3179 = vmatprep.subr.mxu1 %v3090_v14 }
 0x9cd   :  { %3180 = vmatpush1.msra.mxu1 %v3086_v1  ;;  %v3070_v59 = vpop.permute.xlu1 %3069 }
 0x9ce   :  { %v3078_v30 = vpop.permute.xlu0 %3077  ;;  %3181 = vmatprep.subr.mxu1 %v3089_v26 }
 0x9cf   :  { %3182 = vmatpush1.msra.mxu1 %v3085_v35  ;;  %v3088_v8 = vsel %vm333_vm10, %v3078_v30, %v3070_v59  ;;  %v3084_v24 = vsel %vm333_vm10, %v3070_v59, %v3078_v30 }
 0x9d0   :  { %3183 = vmatprep.subr.mxu1 %v3088_v8 }
 0x9d1   :  { %3184 = vmatpush1.msra.mxu1 %v3084_v24  ;;  %v3068_v54 = vpop.permute.xlu1 %3067 }
 0x9d2   :  { %v3076_v31 = vpop.permute.xlu0 %3075 }
 0x9d3   :  { %v3087_v53 = vsel %vm333_vm10, %v3076_v31, %v3068_v54  ;;  %v3083_v25 = vsel %vm333_vm10, %v3068_v54, %v3076_v31 }
 0x9d4   :  { %3185 = vmatprep.subr.mxu1 %v3087_v53 }
 0x9d5   :  { %3186 = vmatpush1.msra.mxu1 %v3083_v25 }
 0x9d6   :  { %4526 = vmatmul.mubr.msk.f32.vlgmr.msra.gmra.mxu1 %vm695_vm11, %v4522_v36 }
 0x9d7   :  { %3225 = vmatprep.mubr.f32.mxu1 %v4621_v17 }
 0x9da   :  { %4527 = vmatmul.mubr.msk.f32.gmra.mxu1 %vm695_vm11, %v4523_v37 }
 0x9db   :  { %3231 = vmatprep.mubr.f32.mxu1 %v4621_v17 }
 0x9de   :  { %4528 = vmatmul.mubr.msk.f32.gmra.mxu1 %vm695_vm11, %v4524_v50  ;;  %v3274_v61 = vpop.permute.xlu1 %3273 }
 0x9df   :  { %3237 = vmatprep.mubr.f32.mxu1 %v4621_v17  ;;  %v3269_v13 = vpop.permute.xlu0 %3268 }
 0x9e2   :  { %4529 = vmatmul.mubr.msk.f32.gmra.mxu1 %vm695_vm11, %v4525_v33  ;;  %v3264_v32 = vpop.permute.xlu1 %3263 }
 0x9e3   :  { %3661 = vmatprep.mubr.f32.mxu1 %v4621_v17  ;;  %v3259_v18 = vpop.permute.xlu0 %3258 }
 0x9eb   :  { %v3044_v11 = vpop.f32.mrf.mxu0 }
 0x9ed   :  { %v3046_v38 = vpop.f32.mrf.mxu0 }
 0x9fc   :  { %v3050_v56 = vpop.f32.mrf.mxu0 }
 0x9fe   :  { %v3052_v21 = vpop.f32.mrf.mxu0 }
 0xa04   :  { %v3056_v45 = vpop.f32.mrf.mxu0 }
 0xa06   :  { %v3058_v49 = vpop.f32.mrf.mxu0 }
 0xa08   :  { %v3062_v24 = vpop.f32.mrf.mxu0 }
 0xa0a   :  { %v3064_v53 = vpop.f32.mrf.mxu0 }
 0xa7c   :  { %v2943_v28 = vpop.f32.mrf.mxu1 }
 0xa7d   :  { %v3045_v19 = vadd.f32 %v3044_v11, %v2943_v28 }
 0xa7e   :  { %v2945_v48 = vpop.f32.mrf.mxu1 }
 0xa7f   :  { %v3047_v60 = vadd.f32 %v3046_v38, %v2945_v48 }
 0xa80   :  { %v2949_v12 = vpop.f32.mrf.mxu1 }
 0xa81   :  { %v3051_v0 = vadd.f32 %v3050_v56, %v2949_v12 }
 0xa82   :  { %v2951_v20 = vpop.f32.mrf.mxu1 }
 0xa83   :  { %v3053_v4 = vadd.f32 %v3052_v21, %v2951_v20 }
 0xa84   :  { %v2955_v2 = vpop.f32.mrf.mxu1 }
 0xa85   :  { %v3057_v29 = vadd.f32 %v3056_v45, %v2955_v2 }
 0xa86   :  { %v2957_v27 = vpop.f32.mrf.mxu1 }
 0xa87   :  { %v3059_v1 = vadd.f32 %v3058_v49, %v2957_v27 }
 0xa88   :  { %v2961_v52 = vpop.f32.mrf.mxu1 }
 0xa89   :  { %v3063_v25 = vadd.f32 %v3062_v24, %v2961_v52 }
 0xa8a   :  { %v2963_v16 = vpop.f32.mrf.mxu1 }
 0xa8b   :  { %v3065_v37 = vadd.f32 %v3064_v53, %v2963_v16 }
 0xa96   :  { %v3221_v55 = vpop.f32.mrf.mxu1 }
 0xa97   :  { %v3244_v44 = vadd.f32 %v3221_v55, %v3045_v19 }
 0xa98   :  { %v3223_v40 = vpop.f32.mrf.mxu1 }
 0xa99   :  { %v3276_v6 = vadd.f32 %v3259_v18, %v3244_v44  ;;  %v3245_v58 = vadd.f32 %v3223_v40, %v3047_v60 }
 0xa9a   :  { %v3227_v57 = vpop.f32.mrf.mxu1 }
 0xa9b   :  { %v7190_v39 = vmax.f32 %v3276_v6, 0.0  ;;  %v3277_v47 = vadd.f32 %v3259_v18, %v3245_v58  ;;  %v3246_v51 = vadd.f32 %v3227_v57, %v3051_v0 }
 0xa9c   :  { %v3229_v5 = vpop.f32.mrf.mxu1 }
 0xa9d   :  { %v7192_v42 = vmax.f32 %v3277_v47, 0.0  ;;  %3348 = vrot.lane.b32.xlu1 %v7190_v39, %s4618_s17  ;;  %v3247_v7 = vadd.f32 %v3229_v5, %v3053_v4  ;;  %v3278_v46 = vadd.f32 %v3264_v32, %v3246_v51 }
 0xa9e   :  { %v3233_v15 = vpop.f32.mrf.mxu1 }
 0xa9f   :  { %3356 = vrot.lane.b32.xlu0 %v7192_v42, %s4618_s17  ;;  %v3279_v43 = vadd.f32 %v3264_v32, %v3247_v7  ;;  %v7204_v34 = vmax.f32 %v3278_v46, 0.0  ;;  %v3248_v26 = vadd.f32 %v3233_v15, %v3057_v29 }
 0xaa0   :  { %v3235_v14 = vpop.f32.mrf.mxu1 }
 0xaa1   :  { %3372 = vrot.lane.b32.xlu1 %v7190_v39, %s4617_s16  ;;  %v7208_v63 = vmax.f32 %v3279_v43, 0.0  ;;  %v3249_v59 = vadd.f32 %v3235_v14, %v3059_v1  ;;  %v3280_v30 = vadd.f32 %v3269_v13, %v3248_v26 }
 0xaa2   :  { %v3239_v31 = vpop.f32.mrf.mxu1 }
 0xaa3   :  { %3380 = vrot.lane.b32.xlu0 %v7192_v42, %s4617_s16  ;;  %v3281_v35 = vadd.f32 %v3269_v13, %v3249_v59  ;;  %v7224_v8 = vmax.f32 %v3280_v30, 0.0  ;;  %v3250_v50 = vadd.f32 %v3239_v31, %v3063_v25 }
 0xaa4   :  { %v3241_v36 = vpop.f32.mrf.mxu1 }
 0xaa5   :  { %3292 = vrot.lane.b32.xlu1 %v7190_v39, %s4619_s18  ;;  %v7228_v54 = vmax.f32 %v3281_v35, 0.0  ;;  %v3251_v33 = vadd.f32 %v3241_v36, %v3065_v37  ;;  %v3282_v28 = vadd.f32 %v3274_v61, %v3250_v50 }
 0xaa7   :  { %3300 = vrot.lane.b32.xlu0 %v7192_v42, %s4619_s18  ;;  %v3283_v48 = vadd.f32 %v3274_v61, %v3251_v33  ;;  %v7244_v12 = vmax.f32 %v3282_v28, 0.0 }
 0xaa9   :  { %3350 = vrot.lane.b32.xlu1 %v7204_v34, %s4618_s17  ;;  %v7248_v20 = vmax.f32 %v3283_v48, 0.0 }
 0xaab   :  { %3358 = vrot.lane.b32.xlu0 %v7208_v63, %s4618_s17 }
 0xaad   :  { %3374 = vrot.lane.b32.xlu1 %v7204_v34, %s4617_s16 }
 0xaaf   :  { %3382 = vrot.lane.b32.xlu0 %v7208_v63, %s4617_s16 }
 0xab1   :  { %3294 = vrot.lane.b32.xlu1 %v7204_v34, %s4619_s18 }
 0xab3   :  { %3302 = vrot.lane.b32.xlu0 %v7208_v63, %s4619_s18 }
 0xab5   :  { %3318 = vrot.lane.b32.xlu1 %v7204_v34, %s4620_s0 }
 0xab7   :  { %3326 = vrot.lane.b32.xlu0 %v7208_v63, %s4620_s0 }
 0xab9   :  { %3352 = vrot.lane.b32.xlu1 %v7224_v8, %s4618_s17 }
 0xabb   :  { %3360 = vrot.lane.b32.xlu0 %v7228_v54, %s4618_s17 }
 0xabd   :  { %3376 = vrot.lane.b32.xlu1 %v7224_v8, %s4617_s16 }
 0xabf   :  { %3384 = vrot.lane.b32.xlu0 %v7228_v54, %s4617_s16 }
 0xac1   :  { %3296 = vrot.lane.b32.xlu1 %v7224_v8, %s4619_s18 }
 0xac3   :  { %3304 = vrot.lane.b32.xlu0 %v7228_v54, %s4619_s18 }
 0xac5   :  { %3320 = vrot.lane.b32.xlu1 %v7224_v8, %s4620_s0 }
 0xac7   :  { %3328 = vrot.lane.b32.xlu0 %v7228_v54, %s4620_s0 }
 0xac9   :  { %3354 = vrot.lane.b32.xlu1 %v7244_v12, %s4618_s17 }
 0xacb   :  { %3362 = vrot.lane.b32.xlu0 %v7248_v20, %s4618_s17 }
 0xacd   :  { %3378 = vrot.lane.b32.xlu1 %v7244_v12, %s4617_s16 }
 0xacf   :  { %3386 = vrot.lane.b32.xlu0 %v7248_v20, %s4617_s16 }
 0xad1   :  { %3316 = vrot.lane.b32.xlu1 %v7190_v39, %s4620_s0 }
 0xad3   :  { %3324 = vrot.lane.b32.xlu0 %v7192_v42, %s4620_s0 }
 0xad5   :  { %3298 = vrot.lane.b32.xlu1 %v7244_v12, %s4619_s18 }
 0xad7   :  { %3444 = vrot.lane.b32.xlu0 %v7228_v54, %s4616_s13 }
 0xad9   :  { %3322 = vrot.lane.b32.xlu1 %v7244_v12, %s4620_s0 }
 0xadb   :  { %3306 = vrot.lane.b32.xlu0 %v7248_v20, %s4619_s18 }
 0xadd   :  { %3438 = vrot.lane.b32.xlu1 %v7244_v12, %s4616_s13 }
 0xadf   :  { %3330 = vrot.lane.b32.xlu0 %v7248_v20, %s4620_s0 }
 0xae1   :  { %3436 = vrot.lane.b32.xlu1 %v7224_v8, %s4616_s13 }
 0xae3   :  { %3442 = vrot.lane.b32.xlu0 %v7208_v63, %s4616_s13 }
 0xae5   :  { %3434 = vrot.lane.b32.xlu1 %v7204_v34, %s4616_s13 }
 0xae7   :  { %3440 = vrot.lane.b32.xlu0 %v7192_v42, %s4616_s13 }
 0xae9   :  { %3432 = vrot.lane.b32.xlu1 %v7190_v39, %s4616_s13 }
 0xaeb   :  { %3446 = vrot.lane.b32.xlu0 %v7248_v20, %s4616_s13 }
 0xb0f   :  { %v3349_v2 = vpop.permute.xlu1 %3348 }
 0xb11   :  { %v3357_v27 = vpop.permute.xlu0 %3356 }
 0xb12   :  { %v3364_v13 = vsel %vm82_vm1, %v3349_v2, %v3357_v27  ;;  %v3368_v38 = vsel %vm82_vm1, %v3357_v27, %v3349_v2 }
 0xb13   :  { %v3373_v11 = vpop.permute.xlu1 %3372 }
 0xb15   :  { %v3381_v52 = vpop.permute.xlu0 %3380 }
 0xb16   :  { %v3388_v16 = vsel %vm89_vm0, %v3373_v11, %v3381_v52  ;;  %v3392_v19 = vsel %vm89_vm0, %v3381_v52, %v3373_v11 }
 0xb17   :  { %v3293_v55 = vpop.permute.xlu1 %3292  ;;  %v7296_v18 = vsel %vm4708_vm3, %v3364_v13, %v3392_v19  ;;  %v7300_v60 = vsel %vm4704_vm2, %v3368_v38, %v3388_v16 }
 0xb18   :  { %3464 = vrot.lane.b32.xlu0 %v7296_v18, %s4616_s13  ;;  %3456 = vrot.lane.b32.xlu1 %v7300_v60, %s4616_s13 }
 0xb19   :  { %v3301_v44 = vpop.permute.xlu0 %3300 }
 0xb1a   :  { %v3308_v53 = vsel %vm62_vm4, %v3293_v55, %v3301_v44  ;;  %v3312_v37 = vsel %vm62_vm4, %v3301_v44, %v3293_v55 }
 0xb1b   :  { %v3351_v56 = vpop.permute.xlu1 %3350 }
 0xb1d   :  { %v3359_v40 = vpop.permute.xlu0 %3358 }
 0xb1e   :  { %v3365_v27 = vsel %vm82_vm1, %v3351_v56, %v3359_v40  ;;  %v3369_v38 = vsel %vm82_vm1, %v3359_v40, %v3351_v56 }
 0xb1f   :  { %v3375_v6 = vpop.permute.xlu1 %3374 }
 0xb21   :  { %v3383_v58 = vpop.permute.xlu0 %3382 }
 0xb22   :  { %v3393_v25 = vsel %vm89_vm0, %v3383_v58, %v3375_v6  ;;  %v3389_v50 = vsel %vm89_vm0, %v3375_v6, %v3383_v58 }
 0xb23   :  { %v7306_v57 = vpop.permute.xlu1 %3294  ;;  %v3399_v16 = vsel %vm4708_vm3, %v3365_v27, %v3393_v25  ;;  %v3398_v44 = vsel %vm4704_vm2, %v3369_v38, %v3389_v50 }
 0xb25   :  { %v7308_v47 = vpop.permute.xlu0 %3302 }
 0xb27   :  { %v3319_v61 = vpop.permute.xlu1 %3318 }
 0xb29   :  { %v3327_v21 = vpop.permute.xlu0 %3326 }
 0xb2a   :  { %v3337_v6 = vsel %vm69_vm5, %v3327_v21, %v3319_v61  ;;  %v3333_v58 = vsel %vm69_vm5, %v3319_v61, %v3327_v21 }
 0xb2b   :  { %v3353_v0 = vpop.permute.xlu1 %3352 }
 0xb2d   :  { %v3361_v5 = vpop.permute.xlu0 %3360 }
 0xb2e   :  { %v3366_v36 = vsel %vm82_vm1, %v3353_v0, %v3361_v5  ;;  %v3370_v33 = vsel %vm82_vm1, %v3361_v5, %v3353_v0  ;;  %v3309_v5 = vsel %vm62_vm4, %v7306_v57, %v7308_v47 }
 0xb2f   :  { %v3377_v4 = vpop.permute.xlu1 %3376  ;;  %v7407_v61 = vsel %vm4731_vm6, %v3309_v5, %v3337_v6 }
 0xb31   :  { %v3385_v51 = vpop.permute.xlu0 %3384 }
 0xb32   :  { %v3394_v29 = vsel %vm89_vm0, %v3385_v51, %v3377_v4  ;;  %v3390_v35 = vsel %vm89_vm0, %v3377_v4, %v3385_v51  ;;  %v3313_v4 = vsel %vm62_vm4, %v7308_v47, %v7306_v57 }
 0xb33   :  { %v7310_v7 = vpop.permute.xlu1 %3296  ;;  %v7354_v2 = vsel %vm4708_vm3, %v3366_v36, %v3394_v29  ;;  %v3400_v13 = vsel %vm4704_vm2, %v3370_v33, %v3390_v35  ;;  %v7414_v21 = vsel %vm4735_vm7, %v3313_v4, %v3333_v58 }
 0xb35   :  { %v7312_v32 = vpop.permute.xlu0 %3304 }
 0xb37   :  { %v7314_v46 = vpop.permute.xlu1 %3320 }
 0xb39   :  { %v7316_v43 = vpop.permute.xlu0 %3328 }
 0xb3a   :  { %v3334_v57 = vsel %vm69_vm5, %v7314_v46, %v7316_v43 }
 0xb3b   :  { %v3355_v45 = vpop.permute.xlu1 %3354 }
 0xb3d   :  { %v3363_v15 = vpop.permute.xlu0 %3362 }
 0xb3e   :  { %v3367_v1 = vsel %vm82_vm1, %v3355_v45, %v3363_v15  ;;  %v3371_v26 = vsel %vm82_vm1, %v3363_v15, %v3355_v45 }
 0xb3f   :  { %v3379_v49 = vpop.permute.xlu1 %3378 }
 0xb41   :  { %v3387_v14 = vpop.permute.xlu0 %3386 }
 0xb42   :  { %v3391_v59 = vsel %vm89_vm0, %v3379_v49, %v3387_v14  ;;  %v3395_v30 = vsel %vm89_vm0, %v3387_v14, %v3379_v49  ;;  %v3338_v14 = vsel %vm69_vm5, %v7316_v43, %v7314_v46  ;;  %v3310_v46 = vsel %vm62_vm4, %v7310_v7, %v7312_v32 }
 0xb43   :  { %v7332_v24 = vsel %vm4708_vm3, %v3367_v1, %v3395_v30  ;;  %v7336_v31 = vsel %vm4704_vm2, %v3371_v26, %v3391_v59  ;;  %v3317_v28 = vpop.permute.xlu1 %3316  ;;  %v3314_v59 = vsel %vm62_vm4, %v7312_v32, %v7310_v7  ;;  %v3344_v30 = vsel %vm4731_vm6, %v3310_v46, %v3338_v14  ;;  %v4530_v7 = vld [vmem:[%s8191_s5 + $0x20] sm:$0xff] }
 0xb44   :  { %3605 = vmatprep.subr.mxu1 %v7332_v24  ;;  %v3345_v43 = vsel %vm4735_vm7, %v3314_v59, %v3334_v57 }
 0xb45   :  { %v3325_v48 = vpop.permute.xlu0 %3324  ;;  %3606 = vmatpush1.msra.mxu1 %v7336_v31 }
 0xb46   :  { %v3332_v11 = vsel %vm69_vm5, %v3317_v28, %v3325_v48  ;;  %v3336_v52 = vsel %vm69_vm5, %v3325_v48, %v3317_v28  ;;  %3607 = vmatprep.subr.mxu1 %v7354_v2 }
 0xb47   :  { %3608 = vmatpush1.msra.mxu1 %v3400_v13  ;;  %v7371_v19 = vsel %vm4731_vm6, %v3308_v53, %v3336_v52  ;;  %v7375_v55 = vsel %vm4735_vm7, %v3312_v37, %v3332_v11  ;;  %v3299_v40 = vpop.permute.xlu1 %3298 }
 0xb48   :  { %3609 = vmatprep.subr.mxu1 %v3399_v16  ;;  %3408 = vrot.lane.b32.xlu1 %v7371_v19, %s4616_s13 }
 0xb49   :  { %3416 = vrot.lane.b32.xlu0 %v7375_v55, %s4616_s13  ;;  %v7383_v56 = vpop.permute.xlu0 %3444  ;;  %3610 = vmatpush1.msra.mxu1 %v3398_v44 }
 0xb4a   :  { %3611 = vmatprep.subr.mxu1 %v7296_v18 }
 0xb4b   :  { %3612 = vmatpush1.msra.mxu1 %v7300_v60  ;;  %v3323_v47 = vpop.permute.xlu1 %3322 }
 0xb4c   :  { %3613 = vmatprep.subr.mxu1 %v7248_v20  ;;  %3458 = vrot.lane.b32.xlu1 %v3398_v44, %s4616_s13 }
 0xb4d   :  { %3466 = vrot.lane.b32.xlu0 %v3399_v16, %s4616_s13  ;;  %v3307_v0 = vpop.permute.xlu0 %3306  ;;  %3614 = vmatpush1.msra.mxu1 %v7244_v12 }
 0xb4e   :  { %3615 = vmatprep.subr.mxu1 %v7228_v54  ;;  %v3311_v45 = vsel %vm62_vm4, %v3299_v40, %v3307_v0  ;;  %v3315_v15 = vsel %vm62_vm4, %v3307_v0, %v3299_v40 }
 0xb4f   :  { %3616 = vmatpush1.msra.mxu1 %v7224_v8 }
 0xb50   :  { %3617 = vmatprep.subr.mxu1 %v7208_v63  ;;  %3410 = vrot.lane.b32.xlu1 %v7407_v61, %s4616_s13 }
 0xb51   :  { %3418 = vrot.lane.b32.xlu0 %v7414_v21, %s4616_s13  ;;  %v3331_v51 = vpop.permute.xlu0 %3330  ;;  %3618 = vmatpush1.msra.mxu1 %v7204_v34 }
 0xb52   :  { %v3335_v49 = vsel %vm69_vm5, %v3323_v47, %v3331_v51  ;;  %v3339_v29 = vsel %vm69_vm5, %v3331_v51, %v3323_v47  ;;  %3619 = vmatprep.subr.mxu1 %v7192_v42 }
 0xb53   :  { %3620 = vmatpush1.msra.mxu1 %v7190_v39  ;;  %v3347_v1 = vsel %vm4735_vm7, %v3315_v15, %v3335_v49  ;;  %v3346_v26 = vsel %vm4731_vm6, %v3311_v45, %v3339_v29 }
 0xb54   :  { %3460 = vrot.lane.b32.xlu1 %v3400_v13, %s4616_s13  ;;  %3621 = vmatprep.subr.mxu1 %v3347_v1 }
 0xb55   :  { %3468 = vrot.lane.b32.xlu0 %v7354_v2, %s4616_s13  ;;  %3622 = vmatpush1.msra.mxu1 %v3346_v26 }
 0xb56   :  { %3623 = vmatprep.subr.mxu1 %v3345_v43 }
 0xb57   :  { %3624 = vmatpush1.msra.mxu1 %v3344_v30 }
 0xb58   :  { %3412 = vrot.lane.b32.xlu1 %v3344_v30, %s4616_s13  ;;  %3625 = vmatprep.subr.mxu1 %v7414_v21 }
 0xb59   :  { %3420 = vrot.lane.b32.xlu0 %v3345_v43, %s4616_s13  ;;  %3626 = vmatpush1.msra.mxu1 %v7407_v61 }
 0xb5a   :  { %3627 = vmatprep.subr.mxu1 %v7375_v55 }
 0xb5b   :  { %3628 = vmatpush1.msra.mxu1 %v7371_v19 }
 0xb5c   :  { %3738 = vrot.lane.b32.xlu1 %v3400_v13, %s4622_s21  ;;  %4538 = vmatmul.mubr.msk.f32.vlgmr.msra.gmra.mxu1 %vm695_vm11, %v4530_v7 }
 0xb5d   :  { %3746 = vrot.lane.b32.xlu0 %v7354_v2, %s4622_s21  ;;  %3667 = vmatprep.mubr.f32.mxu1 %v4621_v17 }
 0xb60   :  { %3462 = vrot.lane.b32.xlu1 %v7336_v31, %s4616_s13 }
 0xb61   :  { %3470 = vrot.lane.b32.xlu0 %v7332_v24, %s4616_s13 }
 0xb64   :  { %3736 = vrot.lane.b32.xlu1 %v3398_v44, %s4622_s21 }
 0xb65   :  { %3744 = vrot.lane.b32.xlu0 %v3399_v16, %s4622_s21 }
 0xb68   :  { %3734 = vrot.lane.b32.xlu1 %v7300_v60, %s4622_s21  ;;  %v3443_v60 = vpop.permute.xlu0 %3442 }
 0xb69   :  { %3742 = vrot.lane.b32.xlu0 %v7296_v18, %s4622_s21 }
 0xb6c   :  { %3716 = vrot.lane.b32.xlu1 %v7244_v12, %s4622_s21  ;;  %v4531_v12 = vld [vmem:[%s8191_s5 + $0x28] sm:$0xff]  ;;  %v3441_v35 = vpop.permute.xlu0 %3440 }
 0xb6d   :  { %3724 = vrot.lane.b32.xlu0 %v7248_v20, %s4622_s21  ;;  %4539 = vmatmul.mubr.msk.f32.gmra.mxu1 %vm695_vm11, %v4531_v12  ;;  %v3439_v20 = vpop.permute.xlu1 %3438 }
 0xb6e   :  { %3673 = vmatprep.mubr.f32.mxu1 %v4621_v17 }
 0xb70   :  { %3414 = vrot.lane.b32.xlu1 %v3346_v26, %s4616_s13 }
 0xb71   :  { %3422 = vrot.lane.b32.xlu0 %v3347_v1, %s4616_s13  ;;  %v3437_v18 = vpop.permute.xlu1 %3436 }
 0xb72   :  { %v3450_v15 = vsel %vm107_vm9, %v3437_v18, %v7383_v56  ;;  %v3454_v14 = vsel %vm107_vm9, %v7383_v56, %v3437_v18  ;;  %v3480_v18 = vld [vmem:[%s8191_s5] sm:$0xff] }
 0xb74   :  { %3714 = vrot.lane.b32.xlu1 %v7224_v8, %s4622_s21  ;;  %v4532_v8 = vld [vmem:[%s8191_s5 + $0x30] sm:$0xff] }
 0xb75   :  { %3722 = vrot.lane.b32.xlu0 %v7228_v54, %s4622_s21  ;;  %4540 = vmatmul.mubr.msk.f32.gmra.mxu1 %vm695_vm11, %v4532_v8  ;;  %v4533_v54 = vld [vmem:[%s8191_s5 + $0x38] sm:$0xff]  ;;  %v3435_v32 = vpop.permute.xlu1 %3434 }
 0xb76   :  { %3679 = vmatprep.mubr.f32.mxu1 %v4621_v17 }
 0xb78   :  { %3740 = vrot.lane.b32.xlu1 %v7336_v31, %s4622_s21  ;;  %v3447_v31 = vpop.permute.xlu0 %3446 }
 0xb79   :  { %3748 = vrot.lane.b32.xlu0 %v7332_v24, %s4622_s21  ;;  %4541 = vmatmul.mubr.msk.f32.gmra.mxu1 %vm695_vm11, %v4533_v54  ;;  %v3433_v24 = vpop.permute.xlu1 %3432  ;;  %v3451_v51 = vsel %vm107_vm9, %v3439_v20, %v3447_v31  ;;  %v3455_v45 = vsel %vm107_vm9, %v3447_v31, %v3439_v20 }
 0xb7a   :  { %4164 = vmatprep.mubr.f32.mxu1 %v4621_v17  ;;  %v3448_v59 = vsel %vm107_vm9, %v3433_v24, %v3441_v35 }
 0xb7c   :  { %3712 = vrot.lane.b32.xlu1 %v7204_v34, %s4622_s21  ;;  %v3872_v34 = vld [vmem:[%s8192_s6 + $0x8] sm:$0xff] }
 0xb7d   :  { %3720 = vrot.lane.b32.xlu0 %v7208_v63, %s4622_s21  ;;  %v3871_v63 = vld [vmem:[%s8192_s6] sm:$0xff] }
 0xb80   :  { %3710 = vrot.lane.b32.xlu1 %v7190_v39, %s4622_s21  ;;  %v3874_v39 = vld [vmem:[%s8192_s6 + $0x18] sm:$0xff] }
 0xb81   :  { %3718 = vrot.lane.b32.xlu0 %v7192_v42, %s4622_s21  ;;  %v3873_v42 = vld [vmem:[%s8192_s6 + $0x10] sm:$0xff] }
 0xb84   :  { %3690 = vrot.lane.b32.xlu1 %v3344_v30, %s4622_s21  ;;  %v3452_v30 = vsel %vm107_vm9, %v3441_v35, %v3433_v24 }
 0xb85   :  { %3698 = vrot.lane.b32.xlu0 %v3345_v43, %s4622_s21 }
 0xb88   :  { %3692 = vrot.lane.b32.xlu1 %v3346_v26, %s4622_s21  ;;  %v3453_v26 = vsel %vm107_vm9, %v3443_v60, %v3435_v32 }
 0xb89   :  { %3700 = vrot.lane.b32.xlu0 %v3347_v1, %s4622_s21  ;;  %v3449_v1 = vsel %vm107_vm9, %v3435_v32, %v3443_v60 }
 0xb8a   :  { %v3457_v53 = vpop.permute.xlu1 %3456  ;;  %v3465_v25 = vpop.permute.xlu0 %3464 }
 0xb8b   :  { %v3476_v47 = vsel %vm107_vm9, %v3465_v25, %v3457_v53 }
 0xb8c   :  { %3688 = vrot.lane.b32.xlu1 %v7407_v61, %s4622_s21  ;;  %v3472_v61 = vsel %vm107_vm9, %v3457_v53, %v3465_v25  ;;  %v3481_v25 = vld [vmem:[%s8191_s5 + $0x8] sm:$0xff] }
 0xb8d   :  { %3696 = vrot.lane.b32.xlu0 %v7414_v21, %s4622_s21 }
 0xb90   :  { %3686 = vrot.lane.b32.xlu1 %v7371_v19, %s4622_s21 }
 0xb91   :  { %3694 = vrot.lane.b32.xlu0 %v7375_v55, %s4622_s21 }
 0xb94   :  { %3892 = vperm.xlu1 %4569, %v3874_v39  }
 0xb95   :  { %3887 = vperm.xlu0 %4568, %v3873_v42  }
 0xb98   :  { %3882 = vperm.xlu1 %4569, %v3872_v34  }
 0xb99   :  { %3877 = vperm.xlu0 %4568, %v3871_v63  }
 0xbba   :  { %v7541_v36 = vpop.permute.xlu1 %3408 }
 0xbbb   :  { %v7543_v37 = vpop.permute.xlu0 %3416 }
 0xbbc   :  { %v3424_v63 = vsel %vm107_vm9, %v7541_v36, %v7543_v37  ;;  %v3428_v32 = vsel %vm107_vm9, %v7543_v37, %v7541_v36 }
 0xbbe   :  { %v3459_v50 = vpop.permute.xlu1 %3458 }
 0xbbf   :  { %v3467_v33 = vpop.permute.xlu0 %3466 }
 0xbc0   :  { %v3473_v5 = vsel %vm107_vm9, %v3459_v50, %v3467_v33  ;;  %v3477_v4 = vsel %vm107_vm9, %v3467_v33, %v3459_v50 }
 0xbc2   :  { %v7545_v28 = vpop.permute.xlu1 %3410 }
 0xbc3   :  { %v3419_v48 = vpop.permute.xlu0 %3418 }
 0xbc4   :  { %v3425_v42 = vsel %vm107_vm9, %v7545_v28, %v3419_v48  ;;  %v3429_v34 = vsel %vm107_vm9, %v3419_v48, %v7545_v28 }
 0xbc6   :  { %v3461_v2 = vpop.permute.xlu1 %3460 }
 0xbc7   :  { %v3469_v27 = vpop.permute.xlu0 %3468 }
 0xbc8   :  { %v3474_v40 = vsel %vm107_vm9, %v3461_v2, %v3469_v27  ;;  %v3478_v0 = vsel %vm107_vm9, %v3469_v27, %v3461_v2  ;;  %v3482_v2 = vld [vmem:[%s8191_s5 + $0x10] sm:$0xff] }
 0xbca   :  { %v3413_v11 = vpop.permute.xlu1 %3412 }
 0xbcb   :  { %v3421_v52 = vpop.permute.xlu0 %3420 }
 0xbcc   :  { %v3426_v12 = vsel %vm107_vm9, %v3413_v11, %v3421_v52  ;;  %v3430_v39 = vsel %vm107_vm9, %v3421_v52, %v3413_v11 }
 0xbce   :  { %v7547_v13 = vpop.permute.xlu1 %3738 }
 0xbcf   :  { %v7549_v38 = vpop.permute.xlu0 %3746 }
 0xbd0   :  { %v3756_v31 = vsel %vm333_vm10, %v7549_v38, %v7547_v13  ;;  %v3752_v37 = vsel %vm333_vm10, %v7547_v13, %v7549_v38 }
 0xbd2   :  { %v3463_v16 = vpop.permute.xlu1 %3462 }
 0xbd3   :  { %v3471_v19 = vpop.permute.xlu0 %3470 }
 0xbd4   :  { %v3475_v55 = vsel %vm107_vm9, %v3463_v16, %v3471_v19  ;;  %v3479_v44 = vsel %vm107_vm9, %v3471_v19, %v3463_v16  ;;  %v3483_v19 = vld [vmem:[%s8191_s5 + $0x18] sm:$0xff] }
 0xbd5   :  { %3504 = vmatprep.subr.mxu0 %v3475_v55 }
 0xbd6   :  { %3505 = vmatpush1.msra.mxu0 %v3479_v44  ;;  %v7557_v6 = vpop.permute.xlu1 %3736 }
 0xbd7   :  { %v7559_v58 = vpop.permute.xlu0 %3744  ;;  %3506 = vmatprep.subr.mxu0 %v3474_v40 }
 0xbd8   :  { %3507 = vmatpush1.msra.mxu0 %v3478_v0  ;;  %v3755_v50 = vsel %vm333_vm10, %v7559_v58, %v7557_v6  ;;  %v3751_v33 = vsel %vm333_vm10, %v7557_v6, %v7559_v58 }
 0xbd9   :  { %3508 = vmatprep.subr.mxu0 %v3473_v5 }
 0xbda   :  { %3509 = vmatpush1.msra.mxu0 %v3477_v4  ;;  %v7569_v21 = vpop.permute.xlu1 %3734 }
 0xbdb   :  { %v7571_v57 = vpop.permute.xlu0 %3742  ;;  %3510 = vmatprep.subr.mxu0 %v3472_v61 }
 0xbdc   :  { %3511 = vmatpush1.msra.mxu0 %v3476_v47  ;;  %v3754_v28 = vsel %vm333_vm10, %v7571_v57, %v7569_v21  ;;  %v3750_v11 = vsel %vm333_vm10, %v7569_v21, %v7571_v57 }
 0xbdd   :  { %3512 = vmatprep.subr.mxu0 %v3451_v51 }
 0xbde   :  { %3513 = vmatpush1.msra.mxu0 %v3455_v45  ;;  %v7582_v49 = vpop.permute.xlu1 %3716 }
 0xbdf   :  { %v7584_v29 = vpop.permute.xlu0 %3724  ;;  %3514 = vmatprep.subr.mxu0 %v3450_v15 }
 0xbe0   :  { %3515 = vmatpush1.msra.mxu0 %v3454_v14  ;;  %v3733_v52 = vsel %vm333_vm10, %v7584_v29, %v7582_v49  ;;  %v3729_v13 = vsel %vm333_vm10, %v7582_v49, %v7584_v29 }
 0xbe1   :  { %3516 = vmatprep.subr.mxu0 %v3449_v1 }
 0xbe2   :  { %3517 = vmatpush1.msra.mxu0 %v3453_v26  ;;  %v3415_v46 = vpop.permute.xlu1 %3414 }
 0xbe3   :  { %v3423_v43 = vpop.permute.xlu0 %3422  ;;  %3518 = vmatprep.subr.mxu0 %v3448_v59  ;;  %v4542_v59 = vld [vmem:[%s8191_s5 + $0x40] sm:$0xff] }
 0xbe4   :  { %3519 = vmatpush1.msra.mxu0 %v3452_v30  ;;  %v3427_v56 = vsel %vm107_vm9, %v3415_v46, %v3423_v43  ;;  %v3431_v7 = vsel %vm107_vm9, %v3423_v43, %v3415_v46  ;;  %v4543_v46 = vld [vmem:[%s8191_s5 + $0x48] sm:$0xff]  ;;  %v4544_v43 = vld [vmem:[%s8191_s5 + $0x50] sm:$0xff]  ;;  %v4545_v30 = vld [vmem:[%s8191_s5 + $0x58] sm:$0xff] }
 0xbe5   :  { %3520 = vmatprep.subr.mxu0 %v3427_v56 }
 0xbe6   :  { %3521 = vmatpush1.msra.mxu0 %v3431_v7  ;;  %v3715_v8 = vpop.permute.xlu1 %3714 }
 0xbe7   :  { %v3723_v54 = vpop.permute.xlu0 %3722  ;;  %3522 = vmatprep.subr.mxu0 %v3426_v12 }
 0xbe8   :  { %3523 = vmatpush1.msra.mxu0 %v3430_v39  ;;  %v3732_v38 = vsel %vm333_vm10, %v3723_v54, %v3715_v8  ;;  %v3728_v44 = vsel %vm333_vm10, %v3715_v8, %v3723_v54 }
 0xbe9   :  { %3524 = vmatprep.subr.mxu0 %v3425_v42 }
 0xbea   :  { %3525 = vmatpush1.msra.mxu0 %v3429_v34  ;;  %v3741_v20 = vpop.permute.xlu1 %3740 }
 0xbeb   :  { %v3749_v60 = vpop.permute.xlu0 %3748  ;;  %3526 = vmatprep.subr.mxu0 %v3424_v63 }
 0xbec   :  { %3527 = vmatpush1.msra.mxu0 %v3428_v32  ;;  %v3757_v35 = vsel %vm333_vm10, %v3749_v60, %v3741_v20  ;;  %v3753_v24 = vsel %vm333_vm10, %v3741_v20, %v3749_v60 }
 0xbed   :  { %3782 = vmatprep.subr.mxu0 %v3757_v35  ;;  %4534 = vmatmul.mubr.msk.f32.vlgmr.msra.gmra.mxu0 %vm695_vm11, %v3480_v18 }
 0xbee   :  { %3783 = vmatpush1.msra.mxu0 %v3753_v24  ;;  %v3713_v53 = vpop.permute.xlu1 %3712  ;;  %3566 = vmatprep.mubr.f32.mxu0 %v4621_v17 }
 0xbef   :  { %v3721_v36 = vpop.permute.xlu0 %3720  ;;  %3784 = vmatprep.subr.mxu0 %v3756_v31 }
 0xbf0   :  { %3785 = vmatpush1.msra.mxu0 %v3752_v37  ;;  %v3731_v40 = vsel %vm333_vm10, %v3721_v36, %v3713_v53  ;;  %v3727_v6 = vsel %vm333_vm10, %v3713_v53, %v3721_v36 }
 0xbf1   :  { %3786 = vmatprep.subr.mxu0 %v3755_v50  ;;  %4535 = vmatmul.mubr.msk.f32.gmra.mxu0 %vm695_vm11, %v3481_v25 }
 0xbf2   :  { %3787 = vmatpush1.msra.mxu0 %v3751_v33  ;;  %v3711_v48 = vpop.permute.xlu1 %3710  ;;  %3572 = vmatprep.mubr.f32.mxu0 %v4621_v17 }
 0xbf3   :  { %v3719_v27 = vpop.permute.xlu0 %3718  ;;  %3788 = vmatprep.subr.mxu0 %v3754_v28 }
 0xbf4   :  { %3789 = vmatpush1.msra.mxu0 %v3750_v11  ;;  %v3730_v58 = vsel %vm333_vm10, %v3719_v27, %v3711_v48  ;;  %v3726_v5 = vsel %vm333_vm10, %v3711_v48, %v3719_v27 }
 0xbf5   :  { %3790 = vmatprep.subr.mxu0 %v3733_v52  ;;  %4536 = vmatmul.mubr.msk.f32.gmra.mxu0 %vm695_vm11, %v3482_v2 }
 0xbf6   :  { %3791 = vmatpush1.msra.mxu0 %v3729_v13  ;;  %v3691_v16 = vpop.permute.xlu1 %3690  ;;  %3578 = vmatprep.mubr.f32.mxu0 %v4621_v17 }
 0xbf7   :  { %v3699_v55 = vpop.permute.xlu0 %3698  ;;  %3792 = vmatprep.subr.mxu0 %v3732_v38 }
 0xbf8   :  { %3793 = vmatpush1.msra.mxu0 %v3728_v44  ;;  %v3708_v57 = vsel %vm333_vm10, %v3699_v55, %v3691_v16  ;;  %v3704_v51 = vsel %vm333_vm10, %v3691_v16, %v3699_v55 }
 0xbf9   :  { %3794 = vmatprep.subr.mxu0 %v3731_v40  ;;  %4537 = vmatmul.mubr.msk.f32.gmra.mxu0 %vm695_vm11, %v3483_v19 }
 0xbfa   :  { %3795 = vmatpush1.msra.mxu0 %v3727_v6  ;;  %v3693_v0 = vpop.permute.xlu1 %3692  ;;  %3838 = vmatprep.mubr.f32.mxu0 %v4621_v17 }
 0xbfb   :  { %v3701_v4 = vpop.permute.xlu0 %3700  ;;  %3796 = vmatprep.subr.mxu0 %v3730_v58 }
 0xbfc   :  { %v3705_v61 = vsel %vm333_vm10, %v3693_v0, %v3701_v4  ;;  %3797 = vmatpush1.msra.mxu0 %v3726_v5  ;;  %v3709_v21 = vsel %vm333_vm10, %v3701_v4, %v3693_v0 }
 0xbfd   :  { %3798 = vmatprep.subr.mxu0 %v3709_v21 }
 0xbfe   :  { %3799 = vmatpush1.msra.mxu0 %v3705_v61  ;;  %v3689_v47 = vpop.permute.xlu1 %3688 }
 0xbff   :  { %v3697_v45 = vpop.permute.xlu0 %3696  ;;  %3800 = vmatprep.subr.mxu0 %v3708_v57 }
 0xc00   :  { %v3703_v15 = vsel %vm333_vm10, %v3689_v47, %v3697_v45  ;;  %3801 = vmatpush1.msra.mxu0 %v3704_v51  ;;  %v3707_v49 = vsel %vm333_vm10, %v3697_v45, %v3689_v47 }
 0xc01   :  { %3802 = vmatprep.subr.mxu0 %v3707_v49 }
 0xc02   :  { %3803 = vmatpush1.msra.mxu0 %v3703_v15  ;;  %v3687_v29 = vpop.permute.xlu1 %3686 }
 0xc03   :  { %v3695_v14 = vpop.permute.xlu0 %3694 }
 0xc04   :  { %v3702_v1 = vsel %vm333_vm10, %v3687_v29, %v3695_v14  ;;  %v3706_v26 = vsel %vm333_vm10, %v3695_v14, %v3687_v29 }
 0xc05   :  { %3804 = vmatprep.subr.mxu0 %v3706_v26 }
 0xc06   :  { %3805 = vmatpush1.msra.mxu0 %v3702_v1 }
 0xc07   :  { %4546 = vmatmul.mubr.msk.f32.vlgmr.msra.gmra.mxu0 %vm695_vm11, %v4542_v59 }
 0xc08   :  { %3844 = vmatprep.mubr.f32.mxu0 %v4621_v17 }
 0xc0b   :  { %4547 = vmatmul.mubr.msk.f32.gmra.mxu0 %vm695_vm11, %v4543_v46 }
 0xc0c   :  { %3850 = vmatprep.mubr.f32.mxu0 %v4621_v17 }
 0xc0f   :  { %4548 = vmatmul.mubr.msk.f32.gmra.mxu0 %vm695_vm11, %v4544_v43  ;;  %v3893_v48 = vpop.permute.xlu1 %3892 }
 0xc10   :  { %3856 = vmatprep.mubr.f32.mxu0 %v4621_v17  ;;  %v3888_v63 = vpop.permute.xlu0 %3887 }
 0xc13   :  { %4549 = vmatmul.mubr.msk.f32.gmra.mxu0 %vm695_vm11, %v4545_v30  ;;  %v3883_v19 = vpop.permute.xlu1 %3882 }
 0xc14   :  { %4238 = vmatprep.mubr.f32.mxu0 %v4621_v17  ;;  %v3878_v35 = vpop.permute.xlu0 %3877 }
 0xc1c   :  { %v3663_v42 = vpop.f32.mrf.mxu1 }
 0xc1e   :  { %v3665_v20 = vpop.f32.mrf.mxu1 }
 0xc2d   :  { %v3669_v53 = vpop.f32.mrf.mxu1 }
 0xc2f   :  { %v3671_v2 = vpop.f32.mrf.mxu1 }
 0xc35   :  { %v3675_v6 = vpop.f32.mrf.mxu1 }
 0xc37   :  { %v3677_v5 = vpop.f32.mrf.mxu1 }
 0xc39   :  { %v3681_v49 = vpop.f32.mrf.mxu1 }
 0xc3b   :  { %v3683_v1 = vpop.f32.mrf.mxu1 }
 0xcad   :  { %v3562_v56 = vpop.f32.mrf.mxu0 }
 0xcae   :  { %v3664_v60 = vadd.f32 %v3663_v42, %v3562_v56 }
 0xcaf   :  { %v3564_v7 = vpop.f32.mrf.mxu0 }
 0xcb0   :  { %v3666_v24 = vadd.f32 %v3665_v20, %v3564_v7 }
 0xcb1   :  { %v3568_v12 = vpop.f32.mrf.mxu0 }
 0xcb2   :  { %v3670_v27 = vadd.f32 %v3669_v53, %v3568_v12 }
 0xcb3   :  { %v3570_v8 = vpop.f32.mrf.mxu0 }
 0xcb4   :  { %v3672_v13 = vadd.f32 %v3671_v2, %v3570_v8 }
 0xcb5   :  { %v3574_v54 = vpop.f32.mrf.mxu0 }
 0xcb6   :  { %v3676_v4 = vadd.f32 %v3675_v6, %v3574_v54 }
 0xcb7   :  { %v3576_v39 = vpop.f32.mrf.mxu0 }
 0xcb8   :  { %v3678_v21 = vadd.f32 %v3677_v5, %v3576_v39 }
 0xcb9   :  { %v3580_v34 = vpop.f32.mrf.mxu0 }
 0xcba   :  { %v3682_v26 = vadd.f32 %v3681_v49, %v3580_v34 }
 0xcbb   :  { %v3582_v18 = vpop.f32.mrf.mxu0 }
 0xcbc   :  { %v3684_v46 = vadd.f32 %v3683_v1, %v3582_v18 }
 0xcc7   :  { %v3840_v32 = vpop.f32.mrf.mxu0 }
 0xcc8   :  { %v3863_v31 = vadd.f32 %v3840_v32, %v3664_v60 }
 0xcc9   :  { %v3842_v25 = vpop.f32.mrf.mxu0 }
 0xcca   :  { %v3895_v36 = vadd.f32 %v3878_v35, %v3863_v31  ;;  %v3864_v37 = vadd.f32 %v3842_v25, %v3666_v24 }
 0xccb   :  { %v3846_v50 = vpop.f32.mrf.mxu0 }
 0xccc   :  { %v7723_v33 = vmax.f32 %v3895_v36, 0.0  ;;  %v3896_v28 = vadd.f32 %v3878_v35, %v3864_v37  ;;  %v3865_v38 = vadd.f32 %v3846_v50, %v3670_v27 }
 0xccd   :  { %v3848_v52 = vpop.f32.mrf.mxu0 }
 0xcce   :  { %v7725_v11 = vmax.f32 %v3896_v28, 0.0  ;;  %3967 = vrot.lane.b32.xlu1 %v7723_v33, %s4618_s17  ;;  %v3866_v16 = vadd.f32 %v3848_v52, %v3672_v13  ;;  %v3897_v55 = vadd.f32 %v3883_v19, %v3865_v38 }
 0xccf   :  { %v3852_v0 = vpop.f32.mrf.mxu0 }
 0xcd0   :  { %3975 = vrot.lane.b32.xlu0 %v7725_v11, %s4618_s17  ;;  %v3898_v44 = vadd.f32 %v3883_v19, %v3866_v16  ;;  %v7737_v40 = vmax.f32 %v3897_v55, 0.0  ;;  %v3867_v57 = vadd.f32 %v3852_v0, %v3676_v4 }
 0xcd1   :  { %v3854_v61 = vpop.f32.mrf.mxu0 }
 0xcd2   :  { %3991 = vrot.lane.b32.xlu1 %v7723_v33, %s4617_s16  ;;  %v7741_v58 = vmax.f32 %v3898_v44, 0.0  ;;  %v3868_v47 = vadd.f32 %v3854_v61, %v3678_v21  ;;  %v3899_v51 = vadd.f32 %v3888_v63, %v3867_v57 }
 0xcd3   :  { %v3858_v14 = vpop.f32.mrf.mxu0 }
 0xcd4   :  { %3999 = vrot.lane.b32.xlu0 %v7725_v11, %s4617_s16  ;;  %v3900_v45 = vadd.f32 %v3888_v63, %v3868_v47  ;;  %v7757_v15 = vmax.f32 %v3899_v51, 0.0  ;;  %v3869_v43 = vadd.f32 %v3858_v14, %v3682_v26 }
 0xcd5   :  { %v3860_v59 = vpop.f32.mrf.mxu0 }
 0xcd6   :  { %3911 = vrot.lane.b32.xlu1 %v7723_v33, %s4619_s18  ;;  %v7761_v29 = vmax.f32 %v3900_v45, 0.0  ;;  %v3870_v30 = vadd.f32 %v3860_v59, %v3684_v46  ;;  %v3901_v56 = vadd.f32 %v3893_v48, %v3869_v43 }
 0xcd8   :  { %3919 = vrot.lane.b32.xlu0 %v7725_v11, %s4619_s18  ;;  %v3902_v7 = vadd.f32 %v3893_v48, %v3870_v30  ;;  %v7777_v12 = vmax.f32 %v3901_v56, 0.0 }
 0xcda   :  { %3969 = vrot.lane.b32.xlu1 %v7737_v40, %s4618_s17  ;;  %v7781_v8 = vmax.f32 %v3902_v7, 0.0 }
 0xcdc   :  { %3977 = vrot.lane.b32.xlu0 %v7741_v58, %s4618_s17 }
 0xcde   :  { %3993 = vrot.lane.b32.xlu1 %v7737_v40, %s4617_s16 }
 0xce0   :  { %4001 = vrot.lane.b32.xlu0 %v7741_v58, %s4617_s16 }
 0xce2   :  { %3913 = vrot.lane.b32.xlu1 %v7737_v40, %s4619_s18 }
 0xce4   :  { %3921 = vrot.lane.b32.xlu0 %v7741_v58, %s4619_s18 }
 0xce6   :  { %3937 = vrot.lane.b32.xlu1 %v7737_v40, %s4620_s0 }
 0xce8   :  { %3945 = vrot.lane.b32.xlu0 %v7741_v58, %s4620_s0 }
 0xcea   :  { %3971 = vrot.lane.b32.xlu1 %v7757_v15, %s4618_s17 }
 0xcec   :  { %3979 = vrot.lane.b32.xlu0 %v7761_v29, %s4618_s17 }
 0xcee   :  { %3995 = vrot.lane.b32.xlu1 %v7757_v15, %s4617_s16 }
 0xcf0   :  { %4003 = vrot.lane.b32.xlu0 %v7761_v29, %s4617_s16 }
 0xcf2   :  { %3915 = vrot.lane.b32.xlu1 %v7757_v15, %s4619_s18 }
 0xcf4   :  { %3923 = vrot.lane.b32.xlu0 %v7761_v29, %s4619_s18 }
 0xcf6   :  { %3939 = vrot.lane.b32.xlu1 %v7757_v15, %s4620_s0 }
 0xcf8   :  { %3947 = vrot.lane.b32.xlu0 %v7761_v29, %s4620_s0 }
 0xcfa   :  { %3973 = vrot.lane.b32.xlu1 %v7777_v12, %s4618_s17 }
 0xcfc   :  { %3981 = vrot.lane.b32.xlu0 %v7781_v8, %s4618_s17 }
 0xcfe   :  { %3997 = vrot.lane.b32.xlu1 %v7777_v12, %s4617_s16 }
 0xd00   :  { %4005 = vrot.lane.b32.xlu0 %v7781_v8, %s4617_s16 }
 0xd02   :  { %3935 = vrot.lane.b32.xlu1 %v7723_v33, %s4620_s0 }
 0xd04   :  { %3943 = vrot.lane.b32.xlu0 %v7725_v11, %s4620_s0 }
 0xd06   :  { %3917 = vrot.lane.b32.xlu1 %v7777_v12, %s4619_s18 }
 0xd08   :  { %4060 = vrot.lane.b32.xlu0 %v7761_v29, %s4616_s13 }
 0xd0a   :  { %3941 = vrot.lane.b32.xlu1 %v7777_v12, %s4620_s0 }
 0xd0c   :  { %3925 = vrot.lane.b32.xlu0 %v7781_v8, %s4619_s18 }
 0xd0e   :  { %4054 = vrot.lane.b32.xlu1 %v7777_v12, %s4616_s13 }
 0xd10   :  { %3949 = vrot.lane.b32.xlu0 %v7781_v8, %s4620_s0 }
 0xd12   :  { %4052 = vrot.lane.b32.xlu1 %v7757_v15, %s4616_s13 }
 0xd14   :  { %4058 = vrot.lane.b32.xlu0 %v7741_v58, %s4616_s13 }
 0xd16   :  { %4050 = vrot.lane.b32.xlu1 %v7737_v40, %s4616_s13 }
 0xd18   :  { %4056 = vrot.lane.b32.xlu0 %v7725_v11, %s4616_s13 }
 0xd1a   :  { %4048 = vrot.lane.b32.xlu1 %v7723_v33, %s4616_s13 }
 0xd1c   :  { %4062 = vrot.lane.b32.xlu0 %v7781_v8, %s4616_s13 }
 0xd40   :  { %v3968_v54 = vpop.permute.xlu1 %3967 }
 0xd42   :  { %v3976_v39 = vpop.permute.xlu0 %3975 }
 0xd43   :  { %v3983_v63 = vsel %vm82_vm1, %v3968_v54, %v3976_v39  ;;  %v3987_v20 = vsel %vm82_vm1, %v3976_v39, %v3968_v54 }
 0xd44   :  { %v3992_v42 = vpop.permute.xlu1 %3991 }
 0xd46   :  { %v4000_v34 = vpop.permute.xlu0 %3999 }
 0xd47   :  { %v4007_v18 = vsel %vm89_vm0, %v3992_v42, %v4000_v34  ;;  %v4011_v60 = vsel %vm89_vm0, %v4000_v34, %v3992_v42 }
 0xd48   :  { %v3912_v32 = vpop.permute.xlu1 %3911  ;;  %v7829_v35 = vsel %vm4708_vm3, %v3983_v63, %v4011_v60  ;;  %v7833_v24 = vsel %vm4704_vm2, %v3987_v20, %v4007_v18 }
 0xd49   :  { %4080 = vrot.lane.b32.xlu0 %v7829_v35, %s4616_s13  ;;  %4072 = vrot.lane.b32.xlu1 %v7833_v24, %s4616_s13 }
 0xd4a   :  { %v3920_v31 = vpop.permute.xlu0 %3919 }
 0xd4b   :  { %v3927_v1 = vsel %vm62_vm4, %v3912_v32, %v3920_v31  ;;  %v3931_v46 = vsel %vm62_vm4, %v3920_v31, %v3912_v32 }
 0xd4c   :  { %v3970_v53 = vpop.permute.xlu1 %3969 }
 0xd4e   :  { %v3978_v25 = vpop.permute.xlu0 %3977 }
 0xd4f   :  { %v3984_v39 = vsel %vm82_vm1, %v3970_v53, %v3978_v25  ;;  %v3988_v20 = vsel %vm82_vm1, %v3978_v25, %v3970_v53 }
 0xd50   :  { %v3994_v36 = vpop.permute.xlu1 %3993 }
 0xd52   :  { %v4002_v37 = vpop.permute.xlu0 %4001 }
 0xd53   :  { %v4012_v26 = vsel %vm89_vm0, %v4002_v37, %v3994_v36  ;;  %v4008_v43 = vsel %vm89_vm0, %v3994_v36, %v4002_v37 }
 0xd54   :  { %v7839_v50 = vpop.permute.xlu1 %3913  ;;  %v4018_v18 = vsel %vm4708_vm3, %v3984_v39, %v4012_v26  ;;  %v4017_v31 = vsel %vm4704_vm2, %v3988_v20, %v4008_v43 }
 0xd56   :  { %v7841_v28 = vpop.permute.xlu0 %3921 }
 0xd57   :  { %v3928_v37 = vsel %vm62_vm4, %v7839_v50, %v7841_v28 }
 0xd58   :  { %v3938_v48 = vpop.permute.xlu1 %3937 }
 0xd5a   :  { %v3946_v2 = vpop.permute.xlu0 %3945 }
 0xd5b   :  { %v3956_v25 = vsel %vm69_vm5, %v3946_v2, %v3938_v48  ;;  %v3952_v9 = vsel %vm69_vm5, %v3938_v48, %v3946_v2 }
 0xd5c   :  { %v3972_v27 = vpop.permute.xlu1 %3971  ;;  %v3961_v48 = vsel %vm4731_vm6, %v3928_v37, %v3956_v25 }
 0xd5e   :  { %v3980_v52 = vpop.permute.xlu0 %3979 }
 0xd5f   :  { %v3985_v59 = vsel %vm82_vm1, %v3972_v27, %v3980_v52  ;;  %v3989_v30 = vsel %vm82_vm1, %v3980_v52, %v3972_v27  ;;  %v3932_v27 = vsel %vm62_vm4, %v7841_v28, %v7839_v50 }
 0xd60   :  { %v3996_v13 = vpop.permute.xlu1 %3995  ;;  %v3962_v2 = vsel %vm4735_vm7, %v3932_v27, %v3952_v9 }
 0xd62   :  { %v4004_v38 = vpop.permute.xlu0 %4003 }
 0xd63   :  { %v4013_v4 = vsel %vm89_vm0, %v4004_v38, %v3996_v13  ;;  %v4009_v45 = vsel %vm89_vm0, %v3996_v13, %v4004_v38 }
 0xd64   :  { %v7843_v16 = vpop.permute.xlu1 %3915  ;;  %v7887_v54 = vsel %vm4708_vm3, %v3985_v59, %v4013_v4  ;;  %v4019_v63 = vsel %vm4704_vm2, %v3989_v30, %v4009_v45 }
 0xd66   :  { %v7845_v19 = vpop.permute.xlu0 %3923 }
 0xd68   :  { %v7847_v55 = vpop.permute.xlu1 %3939 }
 0xd6a   :  { %v7849_v44 = vpop.permute.xlu0 %3947 }
 0xd6b   :  { %v3953_v52 = vsel %vm69_vm5, %v7847_v55, %v7849_v44 }
 0xd6c   :  { %v3974_v6 = vpop.permute.xlu1 %3973 }
 0xd6e   :  { %v3982_v0 = vpop.permute.xlu0 %3981 }
 0xd6f   :  { %v3986_v21 = vsel %vm82_vm1, %v3974_v6, %v3982_v0  ;;  %v3990_v57 = vsel %vm82_vm1, %v3982_v0, %v3974_v6 }
 0xd70   :  { %v3998_v5 = vpop.permute.xlu1 %3997 }
 0xd72   :  { %v4006_v61 = vpop.permute.xlu0 %4005 }
 0xd73   :  { %v4010_v47 = vsel %vm89_vm0, %v3998_v5, %v4006_v61  ;;  %v4014_v51 = vsel %vm89_vm0, %v4006_v61, %v3998_v5  ;;  %v3957_v5 = vsel %vm69_vm5, %v7849_v44, %v7847_v55  ;;  %v3929_v55 = vsel %vm62_vm4, %v7843_v16, %v7845_v19 }
 0xd74   :  { %v7865_v49 = vsel %vm4708_vm3, %v3986_v21, %v4014_v51  ;;  %v7869_v14 = vsel %vm4704_vm2, %v3990_v57, %v4010_v47  ;;  %v3936_v56 = vpop.permute.xlu1 %3935  ;;  %v3933_v21 = vsel %vm62_vm4, %v7845_v19, %v7843_v16  ;;  %v3963_v57 = vsel %vm4731_vm6, %v3929_v55, %v3957_v5 }
 0xd75   :  { %4182 = vmatprep.subr.mxu0 %v7865_v49  ;;  %v3964_v44 = vsel %vm4735_vm7, %v3933_v21, %v3953_v52 }
 0xd76   :  { %v3944_v7 = vpop.permute.xlu0 %3943  ;;  %4183 = vmatpush1.msra.mxu0 %v7869_v14 }
 0xd77   :  { %v3951_v42 = vsel %vm69_vm5, %v3936_v56, %v3944_v7  ;;  %v3955_v34 = vsel %vm69_vm5, %v3944_v7, %v3936_v56  ;;  %4184 = vmatprep.subr.mxu0 %v7887_v54 }
 0xd78   :  { %4185 = vmatpush1.msra.mxu0 %v4019_v63  ;;  %v7904_v60 = vsel %vm4731_vm6, %v3927_v1, %v3955_v34  ;;  %v7908_v32 = vsel %vm4735_vm7, %v3931_v46, %v3951_v42  ;;  %v3918_v53 = vpop.permute.xlu1 %3917 }
 0xd79   :  { %4186 = vmatprep.subr.mxu0 %v4018_v18  ;;  %4024 = vrot.lane.b32.xlu1 %v7904_v60, %s4616_s13 }
 0xd7a   :  { %4032 = vrot.lane.b32.xlu0 %v7908_v32, %s4616_s13  ;;  %v7916_v10 = vpop.permute.xlu0 %4060  ;;  %4187 = vmatpush1.msra.mxu0 %v4017_v31 }
 0xd7b   :  { %4188 = vmatprep.subr.mxu0 %v7829_v35 }
 0xd7c   :  { %4189 = vmatpush1.msra.mxu0 %v7833_v24  ;;  %v3942_v13 = vpop.permute.xlu1 %3941 }
 0xd7d   :  { %4190 = vmatprep.subr.mxu0 %v7781_v8  ;;  %4074 = vrot.lane.b32.xlu1 %v4017_v31, %s4616_s13 }
 0xd7e   :  { %4082 = vrot.lane.b32.xlu0 %v4018_v18, %s4616_s13  ;;  %v3926_v36 = vpop.permute.xlu0 %3925  ;;  %4191 = vmatpush1.msra.mxu0 %v7777_v12 }
 0xd7f   :  { %4192 = vmatprep.subr.mxu0 %v7761_v29  ;;  %v3930_v28 = vsel %vm62_vm4, %v3918_v53, %v3926_v36  ;;  %v3934_v38 = vsel %vm62_vm4, %v3926_v36, %v3918_v53 }
 0xd80   :  { %4193 = vmatpush1.msra.mxu0 %v7757_v15 }
 0xd81   :  { %4194 = vmatprep.subr.mxu0 %v7741_v58  ;;  %4026 = vrot.lane.b32.xlu1 %v3961_v48, %s4616_s13 }
 0xd82   :  { %4034 = vrot.lane.b32.xlu0 %v3962_v2, %s4616_s13  ;;  %v3950_v50 = vpop.permute.xlu0 %3949  ;;  %4195 = vmatpush1.msra.mxu0 %v7737_v40 }
 0xd83   :  { %v3954_v6 = vsel %vm69_vm5, %v3942_v13, %v3950_v50  ;;  %v3958_v0 = vsel %vm69_vm5, %v3950_v50, %v3942_v13  ;;  %4196 = vmatprep.subr.mxu0 %v7725_v11 }
 0xd84   :  { %4197 = vmatpush1.msra.mxu0 %v7723_v33  ;;  %v3966_v4 = vsel %vm4735_vm7, %v3934_v38, %v3954_v6  ;;  %v3965_v61 = vsel %vm4731_vm6, %v3930_v28, %v3958_v0 }
 0xd85   :  { %4076 = vrot.lane.b32.xlu1 %v4019_v63, %s4616_s13  ;;  %4198 = vmatprep.subr.mxu0 %v3966_v4 }
 0xd86   :  { %4084 = vrot.lane.b32.xlu0 %v7887_v54, %s4616_s13  ;;  %4199 = vmatpush1.msra.mxu0 %v3965_v61 }
 0xd87   :  { %4200 = vmatprep.subr.mxu0 %v3964_v44 }
 0xd88   :  { %4201 = vmatpush1.msra.mxu0 %v3963_v57 }
 0xd89   :  { %4028 = vrot.lane.b32.xlu1 %v3963_v57, %s4616_s13  ;;  %4202 = vmatprep.subr.mxu0 %v3962_v2 }
 0xd8a   :  { %4036 = vrot.lane.b32.xlu0 %v3964_v44, %s4616_s13  ;;  %4203 = vmatpush1.msra.mxu0 %v3961_v48 }
 0xd8b   :  { %4204 = vmatprep.subr.mxu0 %v7908_v32 }
 0xd8c   :  { %4205 = vmatpush1.msra.mxu0 %v7904_v60 }
 0xd8d   :  { %4297 = vrot.lane.b32.xlu1 %v4019_v63, %s4622_s21  ;;  %4552 = vmatmul.mubr.msk.f32.vlgmr.msra.gmra.mxu0 %vm695_vm11, %v4550_v22  ;;  %v4096_v22 = vld [vmem:[%s8193_s7] sm:$0xf] }
 0xd8e   :  { %4305 = vrot.lane.b32.xlu0 %v7887_v54, %s4622_s21 }
 0xd91   :  { %4078 = vrot.lane.b32.xlu1 %v7869_v14, %s4616_s13 }
 0xd92   :  { %4086 = vrot.lane.b32.xlu0 %v7865_v49, %s4616_s13 }
 0xd95   :  { %4295 = vrot.lane.b32.xlu1 %v4017_v31, %s4622_s21 }
 0xd96   :  { %4303 = vrot.lane.b32.xlu0 %v4018_v18, %s4622_s21 }
 0xd99   :  { %4293 = vrot.lane.b32.xlu1 %v7833_v24, %s4622_s21 }
 0xd9a   :  { %4301 = vrot.lane.b32.xlu0 %v7829_v35, %s4622_s21 }
 0xd9d   :  { %4275 = vrot.lane.b32.xlu1 %v7777_v12, %s4622_s21 }
 0xd9e   :  { %4283 = vrot.lane.b32.xlu0 %v7781_v8, %s4622_s21 }
 0xda1   :  { %4030 = vrot.lane.b32.xlu1 %v3965_v61, %s4616_s13 }
 0xda2   :  { %4038 = vrot.lane.b32.xlu0 %v3966_v4, %s4616_s13 }
 0xda5   :  { %4273 = vrot.lane.b32.xlu1 %v7757_v15, %s4622_s21 }
 0xda6   :  { %4281 = vrot.lane.b32.xlu0 %v7761_v29, %s4622_s21 }
 0xda9   :  { %4299 = vrot.lane.b32.xlu1 %v7869_v14, %s4622_s21 }
 0xdaa   :  { %4307 = vrot.lane.b32.xlu0 %v7865_v49, %s4622_s21 }
 0xdad   :  { %4271 = vrot.lane.b32.xlu1 %v7737_v40, %s4622_s21 }
 0xdae   :  { %4279 = vrot.lane.b32.xlu0 %v7741_v58, %s4622_s21  ;;  %v4059_v58 = vpop.permute.xlu0 %4058 }
 0xdb1   :  { %4269 = vrot.lane.b32.xlu1 %v7723_v33, %s4622_s21  ;;  %v4394_v33 = vld [vmem:[%s8194_s8] sm:$0xf] }
 0xdb2   :  { %4277 = vrot.lane.b32.xlu0 %v7725_v11, %s4622_s21  ;;  %v4055_v11 = vpop.permute.xlu1 %4054  ;;  %v4057_v29 = vpop.permute.xlu0 %4056 }
 0xdb5   :  { %4249 = vrot.lane.b32.xlu1 %v3963_v57, %s4622_s21 }
 0xdb6   :  { %4257 = vrot.lane.b32.xlu0 %v3964_v44, %s4622_s21  ;;  %v4053_v40 = vpop.permute.xlu1 %4052  ;;  %v4063_v8 = vpop.permute.xlu0 %4062 }
 0xdb7   :  { %v4067_v25 = vsel %vm107_vm9, %v4055_v11, %v4063_v8  ;;  %v4071_v9 = vsel %vm107_vm9, %v4063_v8, %v4055_v11  ;;  %v4066_v36 = vsel %vm107_vm9, %v4053_v40, %v7916_v10  ;;  %v4070_v27 = vsel %vm107_vm9, %v7916_v10, %v4053_v40 }
 0xdb9   :  { %4251 = vrot.lane.b32.xlu1 %v3965_v61, %s4622_s21 }
 0xdba   :  { %4259 = vrot.lane.b32.xlu0 %v3966_v4, %s4622_s21  ;;  %v4051_v15 = vpop.permute.xlu1 %4050 }
 0xdbb   :  { %v4081_v24 = vpop.permute.xlu0 %4080  ;;  %v4069_v52 = vsel %vm107_vm9, %v4059_v58, %v4051_v15 }
 0xdbd   :  { %4247 = vrot.lane.b32.xlu1 %v3961_v48, %s4622_s21 }
 0xdbe   :  { %4255 = vrot.lane.b32.xlu0 %v3962_v2, %s4622_s21  ;;  %v4049_v12 = vpop.permute.xlu1 %4048  ;;  %v4065_v2 = vsel %vm107_vm9, %v4051_v15, %v4059_v58 }
 0xdbf   :  { %v4064_v13 = vsel %vm107_vm9, %v4049_v12, %v4057_v29  ;;  %v4068_v28 = vsel %vm107_vm9, %v4057_v29, %v4049_v12 }
 0xdc1   :  { %4245 = vrot.lane.b32.xlu1 %v7904_v60, %s4622_s21 }
 0xdc2   :  { %4253 = vrot.lane.b32.xlu0 %v7908_v32, %s4622_s21  ;;  %v4073_v35 = vpop.permute.xlu1 %4072 }
 0xdc3   :  { %v4088_v60 = vsel %vm107_vm9, %v4073_v35, %v4081_v24  ;;  %v4092_v31 = vsel %vm107_vm9, %v4081_v24, %v4073_v35 }
 0xdc5   :  { %2233 = vperm.xlu1 %4569, %v2230_v23  }
 0xdc6   :  { %4397 = vperm.xlu0 %4568, %v4394_v33  }
 0xdeb   :  { %v8042_v16 = vpop.permute.xlu1 %4024 }
 0xdec   :  { %v8044_v19 = vpop.permute.xlu0 %4032 }
 0xded   :  { %v4040_v44 = vsel %vm107_vm9, %v8042_v16, %v8044_v19  ;;  %v4044_v23 = vsel %vm107_vm9, %v8044_v19, %v8042_v16 }
 0xdef   :  { %v4075_v47 = vpop.permute.xlu1 %4074 }
 0xdf0   :  { %v4083_v51 = vpop.permute.xlu0 %4082 }
 0xdf1   :  { %v4089_v20 = vsel %vm107_vm9, %v4075_v47, %v4083_v51  ;;  %v4093_v18 = vsel %vm107_vm9, %v4083_v51, %v4075_v47 }
 0xdf3   :  { %v4027_v45 = vpop.permute.xlu1 %4026 }
 0xdf4   :  { %v4035_v49 = vpop.permute.xlu0 %4034 }
 0xdf5   :  { %v4041_v21 = vsel %vm107_vm9, %v4027_v45, %v4035_v49  ;;  %v4045_v55 = vsel %vm107_vm9, %v4035_v49, %v4027_v45 }
 0xdf7   :  { %v4077_v14 = vpop.permute.xlu1 %4076 }
 0xdf8   :  { %v4085_v1 = vpop.permute.xlu0 %4084 }
 0xdf9   :  { %v4090_v39 = vsel %vm107_vm9, %v4077_v14, %v4085_v1  ;;  %v4094_v34 = vsel %vm107_vm9, %v4085_v1, %v4077_v14 }
 0xdfb   :  { %v4029_v26 = vpop.permute.xlu1 %4028 }
 0xdfc   :  { %v4037_v59 = vpop.permute.xlu0 %4036 }
 0xdfd   :  { %v4042_v0 = vsel %vm107_vm9, %v4029_v26, %v4037_v59  ;;  %v4046_v4 = vsel %vm107_vm9, %v4037_v59, %v4029_v26 }
 0xdff   :  { %v8046_v46 = vpop.permute.xlu1 %4297 }
 0xe00   :  { %v8048_v43 = vpop.permute.xlu0 %4305 }
 0xe01   :  { %v4315_v58 = vsel %vm333_vm10, %v8048_v43, %v8046_v46  ;;  %v4311_v29 = vsel %vm333_vm10, %v8046_v46, %v8048_v43 }
 0xe03   :  { %v4079_v30 = vpop.permute.xlu1 %4078 }
 0xe04   :  { %v4087_v56 = vpop.permute.xlu0 %4086 }
 0xe05   :  { %v4095_v7 = vsel %vm107_vm9, %v4087_v56, %v4079_v30  ;;  %v4091_v54 = vsel %vm107_vm9, %v4079_v30, %v4087_v56 }
 0xe06   :  { %4108 = vmatprep.subr.mxu1 %v4091_v54 }
 0xe07   :  { %4109 = vmatpush1.msra.mxu1 %v4095_v7  ;;  %v8056_v42 = vpop.permute.xlu1 %4295 }
 0xe08   :  { %v8060_v63 = vpop.permute.xlu0 %4303  ;;  %4110 = vmatprep.subr.mxu1 %v4090_v39 }
 0xe09   :  { %4111 = vmatpush1.msra.mxu1 %v4094_v34  ;;  %v4314_v8 = vsel %vm333_vm10, %v8060_v63, %v8056_v42  ;;  %v4310_v35 = vsel %vm333_vm10, %v8056_v42, %v8060_v63 }
 0xe0a   :  { %4112 = vmatprep.subr.mxu1 %v4089_v20 }
 0xe0b   :  { %4113 = vmatpush1.msra.mxu1 %v4093_v18  ;;  %v8068_v32 = vpop.permute.xlu1 %4293 }
 0xe0c   :  { %v8072_v53 = vpop.permute.xlu0 %4301  ;;  %4114 = vmatprep.subr.mxu1 %v4088_v60 }
 0xe0d   :  { %4115 = vmatpush1.msra.mxu1 %v4092_v31  ;;  %v4309_v16 = vsel %vm333_vm10, %v8068_v32, %v8072_v53 }
 0xe0e   :  { %4116 = vmatprep.subr.mxu1 %v4067_v25  ;;  %v4553_v25 = vld [vmem:[%s8193_s7 + $0x8] sm:$0xf]  ;;  %s4624_s7 = smov [#allocation5]  }
 0xe0f   :  { %4117 = vmatpush1.msra.mxu1 %v4071_v9  ;;  %v4276_v37 = vpop.permute.xlu1 %4275  ;;  %s4413_s29 = sshll.u32 %s4624_s7, 4  ;;  %s4414_s29 = int_to_ptr.vmem [resolvable:$true] %s4413_s29 }
 0xe10   :  { %v4284_v48 = vpop.permute.xlu0 %4283  ;;  %4118 = vmatprep.subr.mxu1 %v4066_v36  ;;  %s4590_s2 = scalar_lea.vmem %s4414_s29, 256  ;;  %p4595_p6 = scmp.lt.s32.totalorder %s4414_s29, %s4414_s29 }
 0xe11   :  { %4119 = vmatpush1.msra.mxu1 %v4070_v27  ;;  %v4292_v47 = vsel %vm333_vm10, %v4284_v48, %v4276_v37  ;;  %v4288_v51 = vsel %vm333_vm10, %v4276_v37, %v4284_v48  ;;  %p4591_p5 = scmp.ne.s32.totalorder %s4414_s29, %s4590_s2  ;;  %p4596_p7 = scmp.lt.s32.totalorder %s4590_s2, %s4590_s2 }
 0xe12   :  { %4120 = vmatprep.subr.mxu1 %v4065_v2 }
 0xe13   :  { %4121 = vmatpush1.msra.mxu1 %v4069_v52  ;;  %v4031_v50 = vpop.permute.xlu1 %4030  ;;  %p4597_p8 = por %p4596_p7, %p4595_p6 }
 0xe14   :  { %v4039_v38 = vpop.permute.xlu0 %4038  ;;  %4122 = vmatprep.subr.mxu1 %v4064_v13 }
 0xe15   :  { %v4047_v10 = vsel %vm107_vm9, %v4039_v38, %v4031_v50  ;;  %4123 = vmatpush1.msra.mxu1 %v4068_v28  ;;  %v4043_v6 = vsel %vm107_vm9, %v4031_v50, %v4039_v38  ;;  %p4598_p9 = pnand %p4597_p8, %p4591_p5 }
 0xe16   :  { %4124 = vmatprep.subr.mxu1 %v4043_v6 }
 0xe17   :  { %4125 = vmatpush1.msra.mxu1 %v4047_v10  ;;  %v4274_v5 = vpop.permute.xlu1 %4273 }
 0xe18   :  { %v4282_v61 = vpop.permute.xlu0 %4281  ;;  %4126 = vmatprep.subr.mxu1 %v4042_v0 }
 0xe19   :  { %4127 = vmatpush1.msra.mxu1 %v4046_v4  ;;  %v4291_v45 = vsel %vm333_vm10, %v4282_v61, %v4274_v5  ;;  %v4287_v14 = vsel %vm333_vm10, %v4274_v5, %v4282_v61 }
 0xe1a   :  { %4128 = vmatprep.subr.mxu1 %v4041_v21 }
 0xe1b   :  { %4129 = vmatpush1.msra.mxu1 %v4045_v55  ;;  %v4300_v57 = vpop.permute.xlu1 %4299 }
 0xe1c   :  { %v4308_v33 = vpop.permute.xlu0 %4307  ;;  %4130 = vmatprep.subr.mxu1 %v4040_v44 }
 0xe1d   :  { %v4312_v11 = vsel %vm333_vm10, %v4300_v57, %v4308_v33  ;;  %4131 = vmatpush1.msra.mxu1 %v4044_v23  ;;  %v4316_v40 = vsel %vm333_vm10, %v4308_v33, %v4300_v57 }
 0xe1e   :  { %4329 = vmatprep.subr.mxu1 %v4316_v40  ;;  %4551 = vmatmul.mubr.msk.f32.vlgmr.msra.gmra.mxu1 %vm695_vm11, %v4096_v22 }
 0xe1f   :  { %4330 = vmatpush1.msra.mxu1 %v4312_v11  ;;  %v4272_v15 = vpop.permute.xlu1 %4271  ;;  %4385 = vmatprep.mubr.f32.mxu1 %v4621_v17  ;;  %v4313_v17 = vsel %vm333_vm10, %v8072_v53, %v8068_v32 }
 0xe20   :  { %v4280_v12 = vpop.permute.xlu0 %4279  ;;  %4331 = vmatprep.subr.mxu1 %v4315_v58 }
 0xe21   :  { %4332 = vmatpush1.msra.mxu1 %v4311_v29  ;;  %v4290_v26 = vsel %vm333_vm10, %v4280_v12, %v4272_v15  ;;  %v4286_v59 = vsel %vm333_vm10, %v4272_v15, %v4280_v12 }
 0xe22   :  { %4333 = vmatprep.subr.mxu1 %v4314_v8 }
 0xe23   :  { %4334 = vmatpush1.msra.mxu1 %v4310_v35  ;;  %v4270_v24 = vpop.permute.xlu1 %4269 }
 0xe24   :  { %v4278_v19 = vpop.permute.xlu0 %4277  ;;  %4335 = vmatprep.subr.mxu1 %v4313_v17 }
 0xe25   :  { %4336 = vmatpush1.msra.mxu1 %v4309_v16  ;;  %v4289_v46 = vsel %vm333_vm10, %v4278_v19, %v4270_v24  ;;  %v4285_v30 = vsel %vm333_vm10, %v4270_v24, %v4278_v19 }
 0xe26   :  { %4337 = vmatprep.subr.mxu1 %v4292_v47 }
 0xe27   :  { %4338 = vmatpush1.msra.mxu1 %v4288_v51  ;;  %v4250_v49 = vpop.permute.xlu1 %4249 }
 0xe28   :  { %v4258_v1 = vpop.permute.xlu0 %4257  ;;  %4339 = vmatprep.subr.mxu1 %v4291_v45 }
 0xe29   :  { %4340 = vmatpush1.msra.mxu1 %v4287_v14  ;;  %v4267_v39 = vsel %vm333_vm10, %v4258_v1, %v4250_v49  ;;  %v4263_v34 = vsel %vm333_vm10, %v4250_v49, %v4258_v1 }
 0xe2a   :  { %4341 = vmatprep.subr.mxu1 %v4290_v26 }
 0xe2b   :  { %4342 = vmatpush1.msra.mxu1 %v4286_v59  ;;  %v4252_v43 = vpop.permute.xlu1 %4251 }
 0xe2c   :  { %v4260_v56 = vpop.permute.xlu0 %4259  ;;  %4343 = vmatprep.subr.mxu1 %v4289_v46 }
 0xe2d   :  { %v4264_v7 = vsel %vm333_vm10, %v4252_v43, %v4260_v56  ;;  %4344 = vmatpush1.msra.mxu1 %v4285_v30  ;;  %v4268_v54 = vsel %vm333_vm10, %v4260_v56, %v4252_v43 }
 0xe2e   :  { %4345 = vmatprep.subr.mxu1 %v4268_v54 }
 0xe2f   :  { %4346 = vmatpush1.msra.mxu1 %v4264_v7  ;;  %v4248_v42 = vpop.permute.xlu1 %4247 }
 0xe30   :  { %v4256_v63 = vpop.permute.xlu0 %4255  ;;  %4347 = vmatprep.subr.mxu1 %v4267_v39 }
 0xe31   :  { %v4262_v20 = vsel %vm333_vm10, %v4248_v42, %v4256_v63  ;;  %4348 = vmatpush1.msra.mxu1 %v4263_v34  ;;  %v4266_v18 = vsel %vm333_vm10, %v4256_v63, %v4248_v42 }
 0xe32   :  { %4349 = vmatprep.subr.mxu1 %v4266_v18 }
 0xe33   :  { %4350 = vmatpush1.msra.mxu1 %v4262_v20  ;;  %v4246_v60 = vpop.permute.xlu1 %4245 }
 0xe34   :  { %v4254_v32 = vpop.permute.xlu0 %4253 }
 0xe35   :  { %v4261_v31 = vsel %vm333_vm10, %v4246_v60, %v4254_v32  ;;  %v4265_v53 = vsel %vm333_vm10, %v4254_v32, %v4246_v60 }
 0xe36   :  { %4351 = vmatprep.subr.mxu1 %v4265_v53 }
 0xe37   :  { %4352 = vmatpush1.msra.mxu1 %v4261_v31 }
 0xe38   :  { %4554 = vmatmul.mubr.msk.f32.vlgmr.msra.gmra.mxu1 %vm695_vm11, %v4553_v25 }
 0xe40   :  { %v2234_v9 = vpop.permute.xlu1 %2233 }
 0xe41   :  { %v2236_v36 = vadd.f32 %v2234_v9, %v6653_v41  ;;  %v2237_v37 = vadd.f32 %v2234_v9, %v6655_v62  ;;  %v4398_v0 = vpop.permute.xlu0 %4397 }
 0xe43   :  { %v2240_v27 = vcombine.low %v2236_v36, %v2237_v37 }
 0xe45   :  { %2242 = vst [vmem:[#allocation5] sm:$0xff] %v2240_v27 }
 0xe4d   :  { %v4240_v2 = vpop.f32.mrf.mxu0 }
 0xe4f   :  { %v4242_v3 = vpop.f32.mrf.mxu0 }
 0xede   :  { %v4166_v48 = vpop.f32.mrf.mxu1 }
 0xedf   :  { %v4241_v13 = vadd.f32 %v4240_v2, %v4166_v48 }
 0xee0   :  { %v4168_v52 = vpop.f32.mrf.mxu1 }
 0xee1   :  { %v4243_v28 = vadd.f32 %v4242_v3, %v4168_v52 }
 0xef8   :  { %v4387_v50 = vpop.f32.mrf.mxu1 }
 0xef9   :  { %v4392_v38 = vadd.f32 %v4387_v50, %v4241_v13 }
 0xefa   :  { %v4389_v10 = vpop.f32.mrf.mxu1 }
 0xefb   :  { %v4393_v6 = vadd.f32 %v4389_v10, %v4243_v28  ;;  %v4400_v5 = vadd.f32 %v4398_v0, %v4392_v38 }
 0xefd   :  { %v4401_v4 = vadd.f32 %v4398_v0, %v4393_v6 }
 0xeff   :  { %v4404_v41 = vcombine.low %v4400_v5, %v4401_v4 }
 0xf01   :  { %4407 = vst [vmem:[#allocation5 + $0x8] sm:$0xff] %v4404_v41 }
 0xf02   :  { %4601 = shalt.err (!%p4598_p9)
}
 0xf03   :  { %s4625_s30 = smov 128   ;;  %s4626_s6 = smov 8  }
 0xf04   :  { %4419 = dma.vmem_to_hbm [thread:$0]  %s4414_s29, 256, %s8195_s9, [#allocation4], %s4625_s30, %s4625_s30, %s4626_s6  }
 0xf05   :  { %4612 = dma.done.wait [#allocation4], 256  }
 0xf06   :  { %4613 = vsyncadd [#allocation4], 4294967040 }
 0xf07   :  { %4423 = vsyncpa [#allocation3], 1 }
 0xf08   :  { %4424 = vsyncpa [#allocation4], 1 }

</bundles_post_ra>
